<compile_context>
chip_gen: v5e
topology: v5e:2x2
jax: 0.10.0
libtpu: 0.0.40
codegen_flags: <defaults>
</compile_context>

<pallas_src>
import functools
import math

import jax
import jax.numpy as jnp
from jax.experimental import pallas as pl
from jax.experimental.pallas import tpu as pltpu

IN_DIM = 768
HIDDEN_DIM = 256
OUT_DIM = 128
NUM_RELATIONS = 3
NUM_CLASSES = 2
CLS_PAD = 128          # lane-dense logits slab (classes padded 2 -> 128)


def _round_up(x, m):
    return ((x + m - 1) // m) * m


# ---------------------------------------------------------------------------
# Single fused forward kernel (no grid; everything resident in VMEM).
#   x    : (Mp, 768)  bf16       adj : (R, Mp, Mp) f32 (row-normalized, mean)
#   w*   : bf16 weights          b*  : (1, N) f32 biases
#   out  : (Mp, 128)  f32        (only first NUM_CLASSES columns are real)
# ---------------------------------------------------------------------------
def _forward_kernel(x_ref, adj_ref,
                    w1_ref, b1_ref,
                    wc1_ref, bc1_ref,
                    wc2_ref, bc2_ref,
                    w2_ref, b2_ref,
                    wcls_ref, bcls_ref,
                    o_ref, *, hidden, num_relations):
    f32, bf16 = jnp.float32, jnp.bfloat16
    C, R = hidden, num_relations

    # linear1 + ReLU : (Mp, 768) @ (768, 256)
    h = jnp.dot(x_ref[...], w1_ref[...], preferred_element_type=f32) + b1_ref[...]
    h = jnp.maximum(h, 0.0)

    def rgcn(h_f32, wc_ref, bc_ref):
        # fused per-node transform: [root(+bias) | rel_0 | ... | rel_{R-1}]
        z = jnp.dot(h_f32.astype(bf16), wc_ref[...],
                    preferred_element_type=f32) + bc_ref[...]      # (Mp, (R+1)*C)
        out = z[:, :C]                                             # root + bias
        for r in range(R):                                         # unrolled, R=3
            msg = z[:, (r + 1) * C:(r + 2) * C]                    # (Mp, C) f32
            # per-relation MEAN aggregation as a dense normalized-adjacency matmul
            out = out + jnp.dot(adj_ref[r], msg, preferred_element_type=f32)
        return out

    h = rgcn(h, wc1_ref, bc1_ref)          # conv1
    # nn.Dropout: identity in eval mode
    h = rgcn(h, wc2_ref, bc2_ref)          # conv2

    # linear2 + ReLU : (Mp, 256) @ (256, 128)
    h = jnp.dot(h.astype(bf16), w2_ref[...], preferred_element_type=f32) + b2_ref[...]
    h = jnp.maximum(h, 0.0)

    # classifier : (Mp, 128) @ (128, 128pad)  -> lane-dense f32 output slab
    o_ref[...] = (jnp.dot(h.astype(bf16), wcls_ref[...],
                          preferred_element_type=f32) + bcls_ref[...])


@functools.lru_cache(maxsize=None)
def _build_forward(Mp):
    kernel = functools.partial(_forward_kernel, hidden=HIDDEN_DIM,
                               num_relations=NUM_RELATIONS)
    n_in = 12
    return pl.pallas_call(
        kernel,
        out_shape=jax.ShapeDtypeStruct((Mp, CLS_PAD), jnp.float32),
        in_specs=[pl.BlockSpec(memory_space=pltpu.MemorySpace.VMEM)] * n_in,
        out_specs=pl.BlockSpec(memory_space=pltpu.MemorySpace.VMEM),
    )


# ---------------------------------------------------------------------------
# Dense row-normalized adjacency (PyG RGCNConv mean aggregation), built in XLA
# once per forward; tiny (two segment_sums over E edges).
#   A[r, dst, src] = multiplicity(src->dst of type r) / deg_r(dst)
# ---------------------------------------------------------------------------
def build_norm_adjacency(edge_index, edge_type, num_nodes, num_relations, pad_nodes):
    src, dst = edge_index[0], edge_index[1]
    ones = jnp.ones(src.shape, jnp.float32)
    rel_dst = edge_type * num_nodes + dst
    counts = jax.ops.segment_sum(ones, rel_dst,
                                 num_segments=num_relations * num_nodes)
    adj = jax.ops.segment_sum(ones, rel_dst * num_nodes + src,
                              num_segments=num_relations * num_nodes * num_nodes)
    adj = adj.reshape(num_relations, num_nodes, num_nodes)
    counts = counts.reshape(num_relations, num_nodes, 1)
    adj = adj / jnp.maximum(counts, 1.0)
    pad = pad_nodes - num_nodes
    if pad:
        adj = jnp.pad(adj, ((0, 0), (0, pad), (0, pad)))
    return adj


def rgcn_forward(params, x, edge_index, edge_type):
    N = x.shape[0]
    Mp = _round_up(max(N, 1), 16)                 # bf16 sublane packing
    adj = build_norm_adjacency(edge_index, edge_type, N, NUM_RELATIONS, Mp)
    xp = jnp.pad(x.astype(jnp.bfloat16), ((0, Mp - N), (0, 0)))   # 768 is lane-aligned
    out = _build_forward(Mp)(
        xp, adj,
        params['lin1']['w'], params['lin1']['b'],
        params['conv1']['w'], params['conv1']['b'],
        params['conv2']['w'], params['conv2']['b'],
        params['lin2']['w'], params['lin2']['b'],
        params['cls']['w'], params['cls']['b'],
    )
    return out[:N, :NUM_CLASSES]                  # slice exactly once


rgcn_forward_jit = jax.jit(rgcn_forward)


# ---------------------------------------------------------------------------
# Deterministic parameter init (PyTorch-Linear-style uniform bounds),
# padded/fused ONCE at init: bf16 weights, f32 biases.
# ---------------------------------------------------------------------------
def init_linear(key, fin, fout, pad_out=None):
    kw, kb = jax.random.split(key)
    bound = 1.0 / math.sqrt(fin)
    W = jax.random.uniform(kw, (fin, fout), jnp.float32, -bound, bound)
    b = jax.random.uniform(kb, (fout,), jnp.float32, -bound, bound)
    if pad_out is not None and pad_out > fout:
        W = jnp.pad(W, ((0, 0), (0, pad_out - fout)))
        b = jnp.pad(b, (0, pad_out - fout))
    return {'w': W.astype(jnp.bfloat16), 'b': b.reshape(1, -1).astype(jnp.float32)}


def init_rgcn_conv(key, C, R):
    k_rel, k_root, k_bias = jax.random.split(key, 3)
    bound = 1.0 / math.sqrt(C)
    W_rel = jax.random.uniform(k_rel, (R, C, C), jnp.float32, -bound, bound)
    W_root = jax.random.uniform(k_root, (C, C), jnp.float32, -bound, bound)
    bias = jax.random.uniform(k_bias, (C,), jnp.float32, -bound, bound)
    # Fuse [W_root | W_0 | ... | W_{R-1}] into one (C, (R+1)*C) matmul; the
    # output bias is folded into the root columns (added exactly once / node).
    W_fused = jnp.concatenate([W_root] + [W_rel[r] for r in range(R)], axis=1)
    b_fused = jnp.concatenate([bias, jnp.zeros((R * C,), jnp.float32)])
    return {'w': W_fused.astype(jnp.bfloat16),
            'b': b_fused.reshape(1, -1).astype(jnp.float32)}


def init_params(key):
    k1, k2, k3, k4, k5 = jax.random.split(key, 5)
    return {
        'lin1': init_linear(k1, IN_DIM, HIDDEN_DIM),
        'conv1': init_rgcn_conv(k2, HIDDEN_DIM, NUM_RELATIONS),
        'conv2': init_rgcn_conv(k3, HIDDEN_DIM, NUM_RELATIONS),
        'lin2': init_linear(k4, HIDDEN_DIM, OUT_DIM),
        'cls': init_linear(k5, OUT_DIM, NUM_CLASSES, pad_out=CLS_PAD),
    }


# ---------------------------------------------------------------------------
if __name__ == "__main__":
    root_key = jax.random.PRNGKey(0)
    k_param, k_data = jax.random.split(root_key)
    params = init_params(k_param)

    num_nodes, num_edges, batch_size = 16, 24, 4
    kx, ksrc, kdst, ktype = jax.random.split(k_data, 4)
    x = jax.random.normal(kx, (num_nodes, IN_DIM), jnp.float32)
    edge_index = jnp.stack([
        jax.random.randint(ksrc, (num_edges,), 0, num_nodes),
        jax.random.randint(kdst, (num_edges,), 0, num_nodes),
    ]).astype(jnp.int32)
    edge_type = jax.random.randint(
        ktype, (num_edges,), 0, NUM_RELATIONS).astype(jnp.int32)

    logits_all = rgcn_forward_jit(params, x, edge_index, edge_type)
    logits = jax.block_until_ready(logits_all)[:batch_size]   # x[:data.batch_size]

    assert logits.shape == (batch_size, NUM_CLASSES)
    assert bool(jnp.all(jnp.isfinite(logits)))
    print("KERNEL_OK")
</pallas_src>

<mosaic_0001>
module attributes {stable_mosaic.version = 11 : i64} {
  func.func @_forward_kernel(%arg0: memref<16x768xbf16, #tpu.memory_space<vmem>>, %arg1: memref<3x16x16xf32, #tpu.memory_space<vmem>>, %arg2: memref<768x256xbf16, #tpu.memory_space<vmem>>, %arg3: memref<1x256xf32, #tpu.memory_space<vmem>>, %arg4: memref<256x1024xbf16, #tpu.memory_space<vmem>>, %arg5: memref<1x1024xf32, #tpu.memory_space<vmem>>, %arg6: memref<256x1024xbf16, #tpu.memory_space<vmem>>, %arg7: memref<1x1024xf32, #tpu.memory_space<vmem>>, %arg8: memref<256x128xbf16, #tpu.memory_space<vmem>>, %arg9: memref<1x128xf32, #tpu.memory_space<vmem>>, %arg10: memref<128x128xbf16, #tpu.memory_space<vmem>>, %arg11: memref<1x128xf32, #tpu.memory_space<vmem>>, %arg12: memref<16x128xf32, #tpu.memory_space<vmem>>) attributes {dimension_semantics = [], scalar_prefetch = 0 : i64, scratch_operands = 0 : i64, tpu.core_type = #tpu.core_type<tc>} {
    %c0 = arith.constant 0 : index
    %c0_0 = arith.constant 0 : index
    %0 = vector.load %arg0[%c0, %c0_0] : memref<16x768xbf16, #tpu.memory_space<vmem>>, vector<16x768xbf16>
    %c0_1 = arith.constant 0 : index
    %c0_2 = arith.constant 0 : index
    %1 = vector.load %arg2[%c0_1, %c0_2] : memref<768x256xbf16, #tpu.memory_space<vmem>>, vector<768x256xbf16>
    %cst = arith.constant dense<0.000000e+00> : vector<16x256xf32>
    %2 = tpu.matmul %0, %1, %cst {dimension_numbers = #tpu.dot_dimension_numbers<[1], [0], [0], [1], [0, 0, 1, 1], [], []>} : vector<16x768xbf16>, vector<768x256xbf16>, vector<16x256xf32> -> vector<16x256xf32>
    %c0_3 = arith.constant 0 : index
    %c0_4 = arith.constant 0 : index
    %3 = vector.load %arg3[%c0_3, %c0_4] : memref<1x256xf32, #tpu.memory_space<vmem>>, vector<1x256xf32>
    %4 = vector.broadcast %3 : vector<1x256xf32> to vector<16x256xf32>
    %5 = arith.addf %2, %4 : vector<16x256xf32>
    %cst_5 = arith.constant 0.000000e+00 : f32
    %6 = vector.broadcast %cst_5 : f32 to vector<16x256xf32>
    %7 = arith.maximumf %5, %6 : vector<16x256xf32>
    %8 = arith.truncf %7 : vector<16x256xf32> to vector<16x256xbf16>
    %c0_6 = arith.constant 0 : index
    %c0_7 = arith.constant 0 : index
    %9 = vector.load %arg4[%c0_6, %c0_7] : memref<256x1024xbf16, #tpu.memory_space<vmem>>, vector<256x1024xbf16>
    %cst_8 = arith.constant dense<0.000000e+00> : vector<16x1024xf32>
    %10 = tpu.matmul %8, %9, %cst_8 {dimension_numbers = #tpu.dot_dimension_numbers<[1], [0], [0], [1], [0, 0, 1, 1], [], []>} : vector<16x256xbf16>, vector<256x1024xbf16>, vector<16x1024xf32> -> vector<16x1024xf32>
    %c0_9 = arith.constant 0 : index
    %c0_10 = arith.constant 0 : index
    %11 = vector.load %arg5[%c0_9, %c0_10] : memref<1x1024xf32, #tpu.memory_space<vmem>>, vector<1x1024xf32>
    %12 = vector.broadcast %11 : vector<1x1024xf32> to vector<16x1024xf32>
    %13 = arith.addf %10, %12 : vector<16x1024xf32>
    %14 = vector.extract_strided_slice %13 {offsets = [0, 0], sizes = [16, 256], strides = [1, 1]} : vector<16x1024xf32> to vector<16x256xf32>
    %15 = vector.extract_strided_slice %13 {offsets = [0, 256], sizes = [16, 256], strides = [1, 1]} : vector<16x1024xf32> to vector<16x256xf32>
    %c0_11 = arith.constant 0 : index
    %c0_12 = arith.constant 0 : index
    %c0_13 = arith.constant 0 : index
    %16 = vector.load %arg1[%c0_11, %c0_12, %c0_13] : memref<3x16x16xf32, #tpu.memory_space<vmem>>, vector<1x16x16xf32>
    %17 = vector.shape_cast %16 : vector<1x16x16xf32> to vector<16x16xf32>
    %cst_14 = arith.constant dense<0.000000e+00> : vector<16x256xf32>
    %18 = tpu.matmul %17, %15, %cst_14 {dimension_numbers = #tpu.dot_dimension_numbers<[1], [0], [0], [1], [0, 0, 1, 1], [], []>} : vector<16x16xf32>, vector<16x256xf32>, vector<16x256xf32> -> vector<16x256xf32>
    %19 = arith.addf %14, %18 : vector<16x256xf32>
    %20 = vector.extract_strided_slice %13 {offsets = [0, 512], sizes = [16, 256], strides = [1, 1]} : vector<16x1024xf32> to vector<16x256xf32>
    %c1 = arith.constant 1 : index
    %c0_15 = arith.constant 0 : index
    %c0_16 = arith.constant 0 : index
    %21 = vector.load %arg1[%c1, %c0_15, %c0_16] : memref<3x16x16xf32, #tpu.memory_space<vmem>>, vector<1x16x16xf32>
    %22 = vector.shape_cast %21 : vector<1x16x16xf32> to vector<16x16xf32>
    %cst_17 = arith.constant dense<0.000000e+00> : vector<16x256xf32>
    %23 = tpu.matmul %22, %20, %cst_17 {dimension_numbers = #tpu.dot_dimension_numbers<[1], [0], [0], [1], [0, 0, 1, 1], [], []>} : vector<16x16xf32>, vector<16x256xf32>, vector<16x256xf32> -> vector<16x256xf32>
    %24 = arith.addf %19, %23 : vector<16x256xf32>
    %25 = vector.extract_strided_slice %13 {offsets = [0, 768], sizes = [16, 256], strides = [1, 1]} : vector<16x1024xf32> to vector<16x256xf32>
    %c2 = arith.constant 2 : index
    %c0_18 = arith.constant 0 : index
    %c0_19 = arith.constant 0 : index
    %26 = vector.load %arg1[%c2, %c0_18, %c0_19] : memref<3x16x16xf32, #tpu.memory_space<vmem>>, vector<1x16x16xf32>
    %27 = vector.shape_cast %26 : vector<1x16x16xf32> to vector<16x16xf32>
    %cst_20 = arith.constant dense<0.000000e+00> : vector<16x256xf32>
    %28 = tpu.matmul %27, %25, %cst_20 {dimension_numbers = #tpu.dot_dimension_numbers<[1], [0], [0], [1], [0, 0, 1, 1], [], []>} : vector<16x16xf32>, vector<16x256xf32>, vector<16x256xf32> -> vector<16x256xf32>
    %29 = arith.addf %24, %28 : vector<16x256xf32>
    %30 = arith.truncf %29 : vector<16x256xf32> to vector<16x256xbf16>
    %c0_21 = arith.constant 0 : index
    %c0_22 = arith.constant 0 : index
    %31 = vector.load %arg6[%c0_21, %c0_22] : memref<256x1024xbf16, #tpu.memory_space<vmem>>, vector<256x1024xbf16>
    %cst_23 = arith.constant dense<0.000000e+00> : vector<16x1024xf32>
    %32 = tpu.matmul %30, %31, %cst_23 {dimension_numbers = #tpu.dot_dimension_numbers<[1], [0], [0], [1], [0, 0, 1, 1], [], []>} : vector<16x256xbf16>, vector<256x1024xbf16>, vector<16x1024xf32> -> vector<16x1024xf32>
    %c0_24 = arith.constant 0 : index
    %c0_25 = arith.constant 0 : index
    %33 = vector.load %arg7[%c0_24, %c0_25] : memref<1x1024xf32, #tpu.memory_space<vmem>>, vector<1x1024xf32>
    %34 = vector.broadcast %33 : vector<1x1024xf32> to vector<16x1024xf32>
    %35 = arith.addf %32, %34 : vector<16x1024xf32>
    %36 = vector.extract_strided_slice %35 {offsets = [0, 0], sizes = [16, 256], strides = [1, 1]} : vector<16x1024xf32> to vector<16x256xf32>
    %37 = vector.extract_strided_slice %35 {offsets = [0, 256], sizes = [16, 256], strides = [1, 1]} : vector<16x1024xf32> to vector<16x256xf32>
    %c0_26 = arith.constant 0 : index
    %c0_27 = arith.constant 0 : index
    %c0_28 = arith.constant 0 : index
    %38 = vector.load %arg1[%c0_26, %c0_27, %c0_28] : memref<3x16x16xf32, #tpu.memory_space<vmem>>, vector<1x16x16xf32>
    %39 = vector.shape_cast %38 : vector<1x16x16xf32> to vector<16x16xf32>
    %cst_29 = arith.constant dense<0.000000e+00> : vector<16x256xf32>
    %40 = tpu.matmul %39, %37, %cst_29 {dimension_numbers = #tpu.dot_dimension_numbers<[1], [0], [0], [1], [0, 0, 1, 1], [], []>} : vector<16x16xf32>, vector<16x256xf32>, vector<16x256xf32> -> vector<16x256xf32>
    %41 = arith.addf %36, %40 : vector<16x256xf32>
    %42 = vector.extract_strided_slice %35 {offsets = [0, 512], sizes = [16, 256], strides = [1, 1]} : vector<16x1024xf32> to vector<16x256xf32>
    %c1_30 = arith.constant 1 : index
    %c0_31 = arith.constant 0 : index
    %c0_32 = arith.constant 0 : index
    %43 = vector.load %arg1[%c1_30, %c0_31, %c0_32] : memref<3x16x16xf32, #tpu.memory_space<vmem>>, vector<1x16x16xf32>
    %44 = vector.shape_cast %43 : vector<1x16x16xf32> to vector<16x16xf32>
    %cst_33 = arith.constant dense<0.000000e+00> : vector<16x256xf32>
    %45 = tpu.matmul %44, %42, %cst_33 {dimension_numbers = #tpu.dot_dimension_numbers<[1], [0], [0], [1], [0, 0, 1, 1], [], []>} : vector<16x16xf32>, vector<16x256xf32>, vector<16x256xf32> -> vector<16x256xf32>
    %46 = arith.addf %41, %45 : vector<16x256xf32>
    %47 = vector.extract_strided_slice %35 {offsets = [0, 768], sizes = [16, 256], strides = [1, 1]} : vector<16x1024xf32> to vector<16x256xf32>
    %c2_34 = arith.constant 2 : index
    %c0_35 = arith.constant 0 : index
    %c0_36 = arith.constant 0 : index
    %48 = vector.load %arg1[%c2_34, %c0_35, %c0_36] : memref<3x16x16xf32, #tpu.memory_space<vmem>>, vector<1x16x16xf32>
    %49 = vector.shape_cast %48 : vector<1x16x16xf32> to vector<16x16xf32>
    %cst_37 = arith.constant dense<0.000000e+00> : vector<16x256xf32>
    %50 = tpu.matmul %49, %47, %cst_37 {dimension_numbers = #tpu.dot_dimension_numbers<[1], [0], [0], [1], [0, 0, 1, 1], [], []>} : vector<16x16xf32>, vector<16x256xf32>, vector<16x256xf32> -> vector<16x256xf32>
    %51 = arith.addf %46, %50 : vector<16x256xf32>
    %52 = arith.truncf %51 : vector<16x256xf32> to vector<16x256xbf16>
    %c0_38 = arith.constant 0 : index
    %c0_39 = arith.constant 0 : index
    %53 = vector.load %arg8[%c0_38, %c0_39] : memref<256x128xbf16, #tpu.memory_space<vmem>>, vector<256x128xbf16>
    %cst_40 = arith.constant dense<0.000000e+00> : vector<16x128xf32>
    %54 = tpu.matmul %52, %53, %cst_40 {dimension_numbers = #tpu.dot_dimension_numbers<[1], [0], [0], [1], [0, 0, 1, 1], [], []>} : vector<16x256xbf16>, vector<256x128xbf16>, vector<16x128xf32> -> vector<16x128xf32>
    %c0_41 = arith.constant 0 : index
    %c0_42 = arith.constant 0 : index
    %55 = vector.load %arg9[%c0_41, %c0_42] : memref<1x128xf32, #tpu.memory_space<vmem>>, vector<1x128xf32>
    %56 = vector.broadcast %55 : vector<1x128xf32> to vector<16x128xf32>
    %57 = arith.addf %54, %56 : vector<16x128xf32>
    %cst_43 = arith.constant 0.000000e+00 : f32
    %58 = vector.broadcast %cst_43 : f32 to vector<16x128xf32>
    %59 = arith.maximumf %57, %58 : vector<16x128xf32>
    %60 = arith.truncf %59 : vector<16x128xf32> to vector<16x128xbf16>
    %c0_44 = arith.constant 0 : index
    %c0_45 = arith.constant 0 : index
    %61 = vector.load %arg10[%c0_44, %c0_45] : memref<128x128xbf16, #tpu.memory_space<vmem>>, vector<128x128xbf16>
    %cst_46 = arith.constant dense<0.000000e+00> : vector<16x128xf32>
    %62 = tpu.matmul %60, %61, %cst_46 {dimension_numbers = #tpu.dot_dimension_numbers<[1], [0], [0], [1], [0, 0, 1, 1], [], []>} : vector<16x128xbf16>, vector<128x128xbf16>, vector<16x128xf32> -> vector<16x128xf32>
    %c0_47 = arith.constant 0 : index
    %c0_48 = arith.constant 0 : index
    %63 = vector.load %arg11[%c0_47, %c0_48] : memref<1x128xf32, #tpu.memory_space<vmem>>, vector<1x128xf32>
    %64 = vector.broadcast %63 : vector<1x128xf32> to vector<16x128xf32>
    %65 = arith.addf %62, %64 : vector<16x128xf32>
    %c0_49 = arith.constant 0 : index
    %c0_50 = arith.constant 0 : index
    %66 = vector.load %arg12[%c0_49, %c0_50] : memref<16x128xf32, #tpu.memory_space<vmem>>, vector<16x128xf32>
    tpu.vector_store %arg12[%c0_49, %c0_50], %65 {strides = array<i32>} : memref<16x128xf32, #tpu.memory_space<vmem>>, vector<16x128xf32>,
    return
  }
}

</mosaic_0001>

<bundles_post_ra>
// kernel: rgcn_forward.1
= control target key start
LH: loop header
LB: loop body
LE: loop exit
PB: predicated region body
PF: predicated region fallthrough
CT: control target
= control target key end

     0   :  { %17 = vsyncpa [#allocation3], 0  ;;  %s5906_s0 = inlined_call_operand.vmem [shape: bf16[16,768], index: 0, kind: input, shape index: {}]   ;;  %s5907_s1 = inlined_call_operand.vmem [shape: f32[3,16,16], index: 1, kind: input, shape index: {}]   ;;  %s5908_s2 = inlined_call_operand.hbm [shape: bf16[768,256], index: 2, kind: input, shape index: {}]   ;;  %s5909_s3 = inlined_call_operand.vmem [shape: f32[1,256], index: 3, kind: input, shape index: {}]   ;;  %s5910_s4 = inlined_call_operand.hbm [shape: bf16[256,1024], index: 4, kind: input, shape index: {}]   ;;  %s5911_s5 = inlined_call_operand.vmem [shape: f32[1,1024], index: 5, kind: input, shape index: {}]   ;;  %s5912_s6 = inlined_call_operand.hbm [shape: bf16[256,1024], index: 6, kind: input, shape index: {}]   ;;  %s5913_s7 = inlined_call_operand.vmem [shape: f32[1,1024], index: 7, kind: input, shape index: {}]   ;;  %s5914_s8 = inlined_call_operand.vmem [shape: bf16[256,128], index: 8, kind: input, shape index: {}]   ;;  %s5915_s9 = inlined_call_operand.vmem [shape: f32[1,128], index: 9, kind: input, shape index: {}]   ;;  %s5916_s10 = inlined_call_operand.vmem [shape: bf16[128,128], index: 10, kind: input, shape index: {}]   ;;  %s5917_s11 = inlined_call_operand.vmem [shape: f32[1,128], index: 11, kind: input, shape index: {}]   ;;  %s5918_s12 = inlined_call_operand.vmem [shape: f32[16,128], index: 12, kind: output, shape index: {}]  }
   0x1   :  { %18 = vsyncpa [#allocation5], 0  ;;  %s42_s23 = sshll.u32 %s5910_s4, 4  ;;  %s5517_s24 = smov [#allocation4]   ;;  %s43_s23 = int_to_ptr.hbm [resolvable:$true] %s42_s23 }
   0x2   :  { %s44_s25 = sshll.u32 %s5517_s24, 4  ;;  %s27_s28 = sshll.u32 %s5908_s2, 4  ;;  %s45_s25 = int_to_ptr.vmem [resolvable:$true] %s44_s25  ;;  %s28_s28 = int_to_ptr.hbm [resolvable:$true] %s27_s28 }
   0x3   :  { %s5518_s29 = smov 512   ;;  %s5519_s30 = smov 32  }
   0x4   :  { %50 = dma.hbm_to_vmem [thread:$0]  %s43_s23, 16384, %s45_s25, [#allocation5], %s5518_s29, %s5518_s29, %s5519_s30  }
   0x5   :  { %s5520_s13 = smov [#allocation2]   ;;  %s5521_s15 = smov 128  }
   0x6   :  { %s29_s14 = sshll.u32 %s5520_s13, 4  ;;  %s5522_s16 = smov 8   ;;  %s30_s14 = int_to_ptr.vmem [resolvable:$true] %s29_s14 }
   0x7   :  { %35 = dma.hbm_to_vmem [thread:$0]  %s28_s28, 12288, %s30_s14, [#allocation3], %s5521_s15, %s5521_s15, %s5522_s16  }
   0x8   :  { %s57_s18 = sshll.u32 %s5912_s6, 4  ;;  %s5523_s19 = smov [#allocation6]   ;;  %s58_s18 = int_to_ptr.hbm [resolvable:$true] %s57_s18 }
   0x9   :  { %s59_s20 = sshll.u32 %s5523_s19, 4  ;;  %s60_s20 = int_to_ptr.vmem [resolvable:$true] %s59_s20 }
   0xa   :  { %65 = dma.hbm_to_vmem [thread:$0]  %s58_s18, 16384, %s60_s20, [#allocation5], %s5518_s29, %s5518_s29, %s5519_s30  }
   0xb   :  { %5513 = dma.done.wait [#allocation3], 12288  }
   0xc   :  { %5514 = vsyncadd [#allocation3], 4294955008 }
   0xd   :  { %5515 = dma.done.wait [#allocation5], 32768  }
   0xe   :  { %5516 = vsyncadd [#allocation5], 4294934528  ;;  %v3566_v0 = vld [vmem:[#allocation2 + $0x70] sm:$0xf]  ;;  %v5061_v1 = vld [vmem:[#allocation2 + $0x74] sm:$0xf0] }
   0xf   :  { %v3630_v2 = vld [vmem:[#allocation2 + $0xf0] sm:$0xf]  ;;  %v3567_v3 = vor.u32 %v5061_v1, %v3566_v0  ;;  %v5077_v4 = vld [vmem:[#allocation2 + $0xf4] sm:$0xf0]  ;;  %v3558_v11 = vld [vmem:[#allocation2 + $0x60] sm:$0xf] }
  0x10   :  { %v3694_v5 = vld [vmem:[#allocation2 + $0x170] sm:$0xf]  ;;  %v5093_v6 = vld [vmem:[#allocation2 + $0x174] sm:$0xf0]  ;;  %v3631_v7 = vor.u32 %v5077_v4, %v3630_v2  ;;  %v5059_v13 = vld [vmem:[#allocation2 + $0x64] sm:$0xf0] }
  0x11   :  { %v3695_v8 = vor.u32 %v5093_v6, %v3694_v5  ;;  %v3758_v9 = vld [vmem:[#allocation2 + $0x1f0] sm:$0xf]  ;;  %v5109_v10 = vld [vmem:[#allocation2 + $0x1f4] sm:$0xf0]  ;;  %706 = vmatpush.bf16.msra.mxu0 %v3567_v3  ;;  %v3622_v14 = vld [vmem:[#allocation2 + $0xe0] sm:$0xf]  ;;  %v3559_v16 = vor.u32 %v5059_v13, %v3558_v11 }
  0x12   :  { %v3759_v12 = vor.u32 %v5109_v10, %v3758_v9  ;;  %v5075_v15 = vld [vmem:[#allocation2 + $0xe4] sm:$0xf0]  ;;  %720 = vmatpush.bf16.msra.mxu1 %v3631_v7  ;;  %v3686_v18 = vld [vmem:[#allocation2 + $0x160] sm:$0xf]  ;;  %v3550_v23 = vld [vmem:[#allocation2 + $0x50] sm:$0xf] }
  0x13   :  { %734 = vmatpush.bf16.msra.mxu2 %v3695_v8  ;;  %v3623_v17 = vor.u32 %v5075_v15, %v3622_v14  ;;  %v5091_v19 = vld [vmem:[#allocation2 + $0x164] sm:$0xf0]  ;;  %v3750_v20 = vld [vmem:[#allocation2 + $0x1e0] sm:$0xf]  ;;  %v5057_v24 = vld [vmem:[#allocation2 + $0x54] sm:$0xf0] }
  0x14   :  { %748 = vmatpush.bf16.msra.mxu3 %v3759_v12  ;;  %v3687_v21 = vor.u32 %v5091_v19, %v3686_v18  ;;  %v5107_v22 = vld [vmem:[#allocation2 + $0x1e4] sm:$0xf0]  ;;  %v3614_v26 = vld [vmem:[#allocation2 + $0xd0] sm:$0xf]  ;;  %v5073_v27 = vld [vmem:[#allocation2 + $0xd4] sm:$0xf0]  ;;  %v3551_v29 = vor.u32 %v5057_v24, %v3550_v23 }
  0x15   :  { %v3751_v25 = vor.u32 %v5107_v22, %v3750_v20  ;;  %v3678_v28 = vld [vmem:[#allocation2 + $0x150] sm:$0xf]  ;;  %707 = vmatpush.bf16.msra.mxu0 %v3559_v16  ;;  %v5089_v30 = vld [vmem:[#allocation2 + $0x154] sm:$0xf0]  ;;  %v3615_v33 = vor.u32 %v5073_v27, %v3614_v26  ;;  %v3542_v35 = vld [vmem:[#allocation2 + $0x40] sm:$0xf] }
  0x16   :  { %v3742_v31 = vld [vmem:[#allocation2 + $0x1d0] sm:$0xf]  ;;  %v5105_v32 = vld [vmem:[#allocation2 + $0x1d4] sm:$0xf0]  ;;  %721 = vmatpush.bf16.msra.mxu1 %v3623_v17  ;;  %v3679_v34 = vor.u32 %v5089_v30, %v3678_v28  ;;  %v5055_v36 = vld [vmem:[#allocation2 + $0x44] sm:$0xf0] }
  0x17   :  { %735 = vmatpush.bf16.msra.mxu2 %v3687_v21  ;;  %v3606_v37 = vld [vmem:[#allocation2 + $0xc0] sm:$0xf]  ;;  %v3743_v38 = vor.u32 %v5105_v32, %v3742_v31  ;;  %v5071_v39 = vld [vmem:[#allocation2 + $0xc4] sm:$0xf0]  ;;  %v3543_v44 = vor.u32 %v5055_v36, %v3542_v35  ;;  %v3534_v47 = vld [vmem:[#allocation2 + $0x30] sm:$0xf] }
  0x18   :  { %749 = vmatpush.bf16.msra.mxu3 %v3751_v25  ;;  %v3670_v40 = vld [vmem:[#allocation2 + $0x140] sm:$0xf]  ;;  %v5087_v41 = vld [vmem:[#allocation2 + $0x144] sm:$0xf0]  ;;  %v3607_v45 = vor.u32 %v5071_v39, %v3606_v37  ;;  %v5053_v48 = vld [vmem:[#allocation2 + $0x34] sm:$0xf0] }
  0x19   :  { %v3734_v42 = vld [vmem:[#allocation2 + $0x1c0] sm:$0xf]  ;;  %v5103_v43 = vld [vmem:[#allocation2 + $0x1c4] sm:$0xf0]  ;;  %708 = vmatpush.bf16.msra.mxu0 %v3551_v29  ;;  %v3671_v46 = vor.u32 %v5087_v41, %v3670_v40  ;;  %v3598_v49 = vld [vmem:[#allocation2 + $0xb0] sm:$0xf]  ;;  %v3535_v56 = vor.u32 %v5053_v48, %v3534_v47 }
  0x1a   :  { %722 = vmatpush.bf16.msra.mxu1 %v3615_v33  ;;  %v3735_v50 = vor.u32 %v5103_v43, %v3734_v42  ;;  %v5069_v51 = vld [vmem:[#allocation2 + $0xb4] sm:$0xf0]  ;;  %v3662_v52 = vld [vmem:[#allocation2 + $0x130] sm:$0xf]  ;;  %v3526_v59 = vld [vmem:[#allocation2 + $0x20] sm:$0xf] }
  0x1b   :  { %736 = vmatpush.bf16.msra.mxu2 %v3679_v34  ;;  %v5085_v53 = vld [vmem:[#allocation2 + $0x134] sm:$0xf0]  ;;  %v3726_v54 = vld [vmem:[#allocation2 + $0x1b0] sm:$0xf]  ;;  %v3599_v57 = vor.u32 %v5069_v51, %v3598_v49  ;;  %v5051_v60 = vld [vmem:[#allocation2 + $0x24] sm:$0xf0] }
  0x1c   :  { %750 = vmatpush.bf16.msra.mxu3 %v3743_v38  ;;  %v5101_v55 = vld [vmem:[#allocation2 + $0x1b4] sm:$0xf0]  ;;  %v3663_v58 = vor.u32 %v5085_v53, %v3662_v52  ;;  %v3590_v61 = vld [vmem:[#allocation2 + $0xa0] sm:$0xf]  ;;  %v5067_v63 = vld [vmem:[#allocation2 + $0xa4] sm:$0xf0]  ;;  %v3527_v4 = vor.u32 %v5051_v60, %v3526_v59 }
  0x1d   :  { %709 = vmatpush.bf16.msra.mxu0 %v3543_v44  ;;  %v3727_v62 = vor.u32 %v5101_v55, %v3726_v54  ;;  %v3654_v0 = vld [vmem:[#allocation2 + $0x120] sm:$0xf]  ;;  %v5083_v1 = vld [vmem:[#allocation2 + $0x124] sm:$0xf0]  ;;  %v3591_v5 = vor.u32 %v5067_v63, %v3590_v61  ;;  %v3518_v7 = vld [vmem:[#allocation2 + $0x10] sm:$0xf] }
  0x1e   :  { %723 = vmatpush.bf16.msra.mxu1 %v3607_v45  ;;  %v3718_v2 = vld [vmem:[#allocation2 + $0x1a0] sm:$0xf]  ;;  %v5099_v3 = vld [vmem:[#allocation2 + $0x1a4] sm:$0xf0]  ;;  %v3655_v6 = vor.u32 %v5083_v1, %v3654_v0  ;;  %v5049_v8 = vld [vmem:[#allocation2 + $0x14] sm:$0xf0] }
  0x1f   :  { %737 = vmatpush.bf16.msra.mxu2 %v3671_v46  ;;  %v3582_v9 = vld [vmem:[#allocation2 + $0x90] sm:$0xf]  ;;  %v3719_v10 = vor.u32 %v5099_v3, %v3718_v2  ;;  %v5065_v11 = vld [vmem:[#allocation2 + $0x94] sm:$0xf0]  ;;  %v3519_v16 = vor.u32 %v5049_v8, %v3518_v7  ;;  %v3510_v17 = vld [vmem:[#allocation2] sm:$0xf] }
  0x20   :  { %751 = vmatpush.bf16.msra.mxu3 %v3735_v50  ;;  %v3646_v12 = vld [vmem:[#allocation2 + $0x110] sm:$0xf]  ;;  %v5081_v13 = vld [vmem:[#allocation2 + $0x114] sm:$0xf0]  ;;  %v5047_v18 = vld [vmem:[#allocation2 + $0x4] sm:$0xf0]  ;;  %v3583_v19 = vor.u32 %v5065_v11, %v3582_v9 }
  0x21   :  { %710 = vmatpush.bf16.msra.mxu0 %v3535_v56  ;;  %v3710_v14 = vld [vmem:[#allocation2 + $0x190] sm:$0xf]  ;;  %v5097_v15 = vld [vmem:[#allocation2 + $0x194] sm:$0xf0]  ;;  %v3647_v20 = vor.u32 %v5081_v13, %v3646_v12  ;;  %v3574_v21 = vld [vmem:[#allocation2 + $0x80] sm:$0xf]  ;;  %v3511_v31 = vor.u32 %v5047_v18, %v3510_v17 }
  0x22   :  { %724 = vmatpush.bf16.msra.mxu1 %v3599_v57  ;;  %v5063_v22 = vld [vmem:[#allocation2 + $0x84] sm:$0xf0]  ;;  %v3638_v23 = vld [vmem:[#allocation2 + $0x100] sm:$0xf]  ;;  %v3711_v24 = vor.u32 %v5097_v15, %v3710_v14  ;;  %v3822_v28 = vld [vmem:[#allocation2 + $0x270] sm:$0xf] }
  0x23   :  { %738 = vmatpush.bf16.msra.mxu2 %v3663_v58  ;;  %v5079_v25 = vld [vmem:[#allocation2 + $0x104] sm:$0xf0]  ;;  %v3702_v26 = vld [vmem:[#allocation2 + $0x180] sm:$0xf]  ;;  %v5125_v29 = vld [vmem:[#allocation2 + $0x274] sm:$0xf0]  ;;  %v3575_v35 = vor.u32 %v5063_v22, %v3574_v21 }
  0x24   :  { %752 = vmatpush.bf16.msra.mxu3 %v3727_v62  ;;  %v5095_v27 = vld [vmem:[#allocation2 + $0x184] sm:$0xf0]  ;;  %v3886_v30 = vld [vmem:[#allocation2 + $0x2f0] sm:$0xf]  ;;  %v5141_v32 = vld [vmem:[#allocation2 + $0x2f4] sm:$0xf0]  ;;  %v3639_v36 = vor.u32 %v5079_v25, %v3638_v23  ;;  %v3823_v40 = vor.u32 %v5125_v29, %v3822_v28 }
  0x25   :  { %711 = vmatpush.bf16.msra.mxu0 %v3527_v4  ;;  %v5060_v33 = vld [vmem:[#allocation2 + $0x74] sm:$0xf]  ;;  %v3568_v34 = vld [vmem:[#allocation2 + $0x78] sm:$0xf0]  ;;  %v3703_v39 = vor.u32 %v5095_v27, %v3702_v26  ;;  %v3814_v41 = vld [vmem:[#allocation2 + $0x260] sm:$0xf]  ;;  %v3887_v42 = vor.u32 %v5141_v32, %v3886_v30 }
  0x26   :  { %725 = vmatpush.bf16.msra.mxu1 %v3591_v5  ;;  %v5076_v37 = vld [vmem:[#allocation2 + $0xf4] sm:$0xf]  ;;  %v3632_v38 = vld [vmem:[#allocation2 + $0xf8] sm:$0xf0]  ;;  %v3571_v43 = vor.u32 %v5060_v33, %v3568_v34  ;;  %v5123_v44 = vld [vmem:[#allocation2 + $0x264] sm:$0xf0] }
  0x27   :  { %739 = vmatpush.bf16.msra.mxu2 %v3655_v6  ;;  %v3878_v45 = vld [vmem:[#allocation2 + $0x2e0] sm:$0xf]  ;;  %v5139_v46 = vld [vmem:[#allocation2 + $0x2e4] sm:$0xf0]  ;;  %v3635_v47 = vor.u32 %v5076_v37, %v3632_v38  ;;  %v5058_v48 = vld [vmem:[#allocation2 + $0x64] sm:$0xf]  ;;  %v3815_v54 = vor.u32 %v5123_v44, %v3814_v41 }
  0x28   :  { %753 = vmatpush.bf16.msra.mxu3 %v3719_v10  ;;  %v3560_v49 = vld [vmem:[#allocation2 + $0x68] sm:$0xf0]  ;;  %v5074_v50 = vld [vmem:[#allocation2 + $0xe4] sm:$0xf]  ;;  %v3486_v52 = vld [vmem:[%s5906_s0] sm:$0xf]  ;;  %v3879_v59 = vor.u32 %v5139_v46, %v3878_v45 }
  0x29   :  { %712 = vmatpush.bf16.msra.mxu0 %v3519_v16  ;;  %v3624_v51 = vld [vmem:[#allocation2 + $0xe8] sm:$0xf0]  ;;  %v5043_v53 = vld [vmem:[%s5906_s0 + $0x14] sm:$0xf0]  ;;  %v3806_v55 = vld [vmem:[#allocation2 + $0x250] sm:$0xf]  ;;  %v3563_v60 = vor.u32 %v5058_v48, %v3560_v49 }
  0x2a   :  { %726 = vmatpush.bf16.msra.mxu1 %v3583_v19  ;;  %v5121_v56 = vld [vmem:[#allocation2 + $0x254] sm:$0xf0]  ;;  %v3870_v57 = vld [vmem:[#allocation2 + $0x2d0] sm:$0xf]  ;;  %v5604_v58 = vor.u32 %v5043_v53, %v3486_v52  ;;  %v5056_v62 = vld [vmem:[#allocation2 + $0x54] sm:$0xf]  ;;  %v3627_v0 = vor.u32 %v5074_v50, %v3624_v51 }
  0x2b   :  { %740 = vmatpush.bf16.msra.mxu2 %v3647_v20  ;;  %v5137_v61 = vld [vmem:[#allocation2 + $0x2d4] sm:$0xf0]  ;;  %v3552_v63 = vld [vmem:[#allocation2 + $0x58] sm:$0xf0]  ;;  %v5072_v1 = vld [vmem:[#allocation2 + $0xd4] sm:$0xf]  ;;  %v3807_v8 = vor.u32 %v5121_v56, %v3806_v55 }
  0x2c   :  { %754 = vmatpush.bf16.msra.mxu3 %v3711_v24  ;;  %v5040_v2 = vld [vmem:[%s5906_s0 + $0x4] sm:$0xf]  ;;  %v3488_v3 = vld [vmem:[%s5906_s0 + $0x18] sm:$0xf0]  ;;  %v3494_v6 = vld [vmem:[%s5906_s0 + $0x8] sm:$0xf]  ;;  %v3871_v12 = vor.u32 %v5137_v61, %v3870_v57  ;;  %v3555_v13 = vor.u32 %v5056_v62, %v3552_v63 }
  0x2d   :  { %713 = vmatpush.bf16.msra.mxu0 %v3511_v31  ;;  %v3616_v4 = vld [vmem:[#allocation2 + $0xd8] sm:$0xf0]  ;;  %v5613_v5 = vor.u32 %v5040_v2, %v3488_v3  ;;  %v5044_v7 = vld [vmem:[%s5906_s0 + $0x1c] sm:$0xf0]  ;;  %v5119_v10 = vld [vmem:[#allocation2 + $0x244] sm:$0xf0] }
  0x2e   :  { %727 = vmatpush.bf16.msra.mxu1 %v3575_v35  ;;  %v3798_v9 = vld [vmem:[#allocation2 + $0x240] sm:$0xf]  ;;  %v5621_v11 = vor.u32 %v5044_v7, %v3494_v6  ;;  %v5135_v15 = vld [vmem:[#allocation2 + $0x2c4] sm:$0xf0]  ;;  %v5054_v16 = vld [vmem:[#allocation2 + $0x44] sm:$0xf]  ;;  %v3619_v17 = vor.u32 %v5072_v1, %v3616_v4 }
  0x2f   :  { %741 = vmatpush.bf16.msra.mxu2 %v3639_v36  ;;  %v3862_v14 = vld [vmem:[#allocation2 + $0x2c0] sm:$0xf]  ;;  %v3544_v18 = vld [vmem:[#allocation2 + $0x48] sm:$0xf0]  ;;  %v3496_v20 = vld [vmem:[%s5906_s0 + $0x20] sm:$0xf0]  ;;  %v3799_v24 = vor.u32 %v5119_v10, %v3798_v9 }
  0x30   :  { %755 = vmatpush.bf16.msra.mxu3 %v3703_v39  ;;  %714 = vmatmul.bf16.vlgmr.msra.gmra.mxu0 %v5604_v58  ;;  %v5041_v19 = vld [vmem:[%s5906_s0 + $0xc] sm:$0xf]  ;;  %v5070_v21 = vld [vmem:[#allocation2 + $0xc4] sm:$0xf]  ;;  %v3863_v25 = vor.u32 %v5135_v15, %v3862_v14  ;;  %v3547_v26 = vor.u32 %v5054_v16, %v3544_v18  ;;  %v3790_v27 = vld [vmem:[#allocation2 + $0x230] sm:$0xf] }
  0x31   :  { %762 = vmatpush.bf16.msrb.mxu0 %v3823_v40  ;;  %728 = vmatmul.bf16.vlgmr.msra.gmra.mxu1 %v5613_v5  ;;  %v3608_v22 = vld [vmem:[#allocation2 + $0xc8] sm:$0xf0]  ;;  %v5631_v23 = vor.u32 %v5041_v19, %v3496_v20  ;;  %v5117_v28 = vld [vmem:[#allocation2 + $0x234] sm:$0xf0]  ;;  %v3854_v29 = vld [vmem:[#allocation2 + $0x2b0] sm:$0xf] }
  0x32   :  { %776 = vmatpush.bf16.msrb.mxu1 %v3887_v42  ;;  %742 = vmatmul.bf16.vlgmr.msra.gmra.mxu2 %v5621_v11  ;;  %v3611_v30 = vor.u32 %v5070_v21, %v3608_v22  ;;  %v5133_v31 = vld [vmem:[#allocation2 + $0x2b4] sm:$0xf0]  ;;  %v5052_v32 = vld [vmem:[#allocation2 + $0x34] sm:$0xf]  ;;  %v3536_v33 = vld [vmem:[#allocation2 + $0x38] sm:$0xf0]  ;;  %v3791_v36 = vor.u32 %v5117_v28, %v3790_v27 }
  0x33   :  { %790 = vmatpush.bf16.msrb.mxu2 %v3571_v43  ;;  %v5068_v34 = vld [vmem:[#allocation2 + $0xb4] sm:$0xf]  ;;  %v3600_v35 = vld [vmem:[#allocation2 + $0xb8] sm:$0xf0]  ;;  %756 = vmatmul.bf16.vlgmr.msra.gmra.mxu3 %v5631_v23  ;;  %v3855_v37 = vor.u32 %v5133_v31, %v3854_v29  ;;  %v3539_v38 = vor.u32 %v5052_v32, %v3536_v33  ;;  %v3782_v39 = vld [vmem:[#allocation2 + $0x220] sm:$0xf] }
  0x34   :  { %804 = vmatpush.bf16.msrb.mxu3 %v3635_v47  ;;  %v5115_v40 = vld [vmem:[#allocation2 + $0x224] sm:$0xf0]  ;;  %v3846_v41 = vld [vmem:[#allocation2 + $0x2a0] sm:$0xf]  ;;  %v3603_v42 = vor.u32 %v5068_v34, %v3600_v35  ;;  %v5050_v44 = vld [vmem:[#allocation2 + $0x24] sm:$0xf] }
  0x35   :  { %763 = vmatpush.bf16.msrb.mxu0 %v3815_v54  ;;  %v5131_v43 = vld [vmem:[#allocation2 + $0x2a4] sm:$0xf0]  ;;  %v3528_v45 = vld [vmem:[#allocation2 + $0x28] sm:$0xf0]  ;;  %v5066_v46 = vld [vmem:[#allocation2 + $0xa4] sm:$0xf]  ;;  %v3783_v48 = vor.u32 %v5115_v40, %v3782_v39 }
  0x36   :  { %777 = vmatpush.bf16.msrb.mxu1 %v3879_v59  ;;  %v3592_v47 = vld [vmem:[#allocation2 + $0xa8] sm:$0xf0]  ;;  %v3847_v49 = vor.u32 %v5131_v43, %v3846_v41  ;;  %v3531_v50 = vor.u32 %v5050_v44, %v3528_v45  ;;  %v3774_v51 = vld [vmem:[#allocation2 + $0x210] sm:$0xf]  ;;  %v5113_v52 = vld [vmem:[#allocation2 + $0x214] sm:$0xf0] }
  0x37   :  { %791 = vmatpush.bf16.msrb.mxu2 %v3563_v60  ;;  %v3838_v53 = vld [vmem:[#allocation2 + $0x290] sm:$0xf]  ;;  %v3595_v54 = vor.u32 %v5066_v46, %v3592_v47  ;;  %v5129_v55 = vld [vmem:[#allocation2 + $0x294] sm:$0xf0]  ;;  %v5048_v56 = vld [vmem:[#allocation2 + $0x14] sm:$0xf]  ;;  %v3775_v61 = vor.u32 %v5113_v52, %v3774_v51 }
  0x38   :  { %805 = vmatpush.bf16.msrb.mxu3 %v3627_v0  ;;  %v3520_v57 = vld [vmem:[#allocation2 + $0x18] sm:$0xf0]  ;;  %v5064_v59 = vld [vmem:[#allocation2 + $0x94] sm:$0xf]  ;;  %v3766_v62 = vld [vmem:[#allocation2 + $0x200] sm:$0xf]  ;;  %v3839_v1 = vor.u32 %v5129_v55, %v3838_v53 }
  0x39   :  { %764 = vmatpush.bf16.msrb.mxu0 %v3807_v8  ;;  %v3584_v60 = vld [vmem:[#allocation2 + $0x98] sm:$0xf0]  ;;  %v5111_v63 = vld [vmem:[#allocation2 + $0x204] sm:$0xf0]  ;;  %v3830_v0 = vld [vmem:[#allocation2 + $0x280] sm:$0xf]  ;;  %v3523_v2 = vor.u32 %v5048_v56, %v3520_v57 }
  0x3a   :  { %778 = vmatpush.bf16.msrb.mxu1 %v3871_v12  ;;  %v5127_v3 = vld [vmem:[#allocation2 + $0x284] sm:$0xf0]  ;;  %v5046_v4 = vld [vmem:[#allocation2 + $0x4] sm:$0xf]  ;;  %v3512_v6 = vld [vmem:[#allocation2 + $0x8] sm:$0xf0]  ;;  %v3587_v7 = vor.u32 %v5064_v59, %v3584_v60  ;;  %v3767_v15 = vor.u32 %v5111_v63, %v3766_v62 }
  0x3b   :  { %792 = vmatpush.bf16.msrb.mxu2 %v3555_v13  ;;  %v5062_v8 = vld [vmem:[#allocation2 + $0x84] sm:$0xf]  ;;  %v3576_v9 = vld [vmem:[#allocation2 + $0x88] sm:$0xf0]  ;;  %v5092_v10 = vld [vmem:[#allocation2 + $0x174] sm:$0xf]  ;;  %v3831_v19 = vor.u32 %v5127_v3, %v3830_v0  ;;  %v3515_v20 = vor.u32 %v5046_v4, %v3512_v6 }
  0x3c   :  { %806 = vmatpush.bf16.msrb.mxu3 %v3619_v17  ;;  %v3696_v12 = vld [vmem:[#allocation2 + $0x178] sm:$0xf0]  ;;  %v5108_v13 = vld [vmem:[#allocation2 + $0x1f4] sm:$0xf]  ;;  %v3502_v22 = vld [vmem:[%s5906_s0 + $0x10] sm:$0xf] }
  0x3d   :  { %765 = vmatpush.bf16.msrb.mxu0 %v3799_v24  ;;  %v3760_v14 = vld [vmem:[#allocation2 + $0x1f8] sm:$0xf0]  ;;  %v5124_v16 = vld [vmem:[#allocation2 + $0x274] sm:$0xf]  ;;  %v5045_v24 = vld [vmem:[%s5906_s0 + $0x24] sm:$0xf0] }
  0x3e   :  { %779 = vmatpush.bf16.msrb.mxu1 %v3863_v25  ;;  %v3824_v17 = vld [vmem:[#allocation2 + $0x278] sm:$0xf0]  ;;  %v5140_v18 = vld [vmem:[#allocation2 + $0x2f4] sm:$0xf]  ;;  %v3579_v25 = vor.u32 %v5062_v8, %v3576_v9  ;;  %v3504_v28 = vld [vmem:[%s5906_s0 + $0x28] sm:$0xf0]  ;;  %v3763_v29 = vor.u32 %v5108_v13, %v3760_v14  ;;  %v5646_v35 = vor.u32 %v5045_v24, %v3502_v22 }
  0x3f   :  { %793 = vmatpush.bf16.msrb.mxu2 %v3547_v26  ;;  %v3888_v21 = vld [vmem:[#allocation2 + $0x2f8] sm:$0xf0]  ;;  %v3699_v26 = vor.u32 %v5092_v10, %v3696_v12  ;;  %v5042_v27 = vld [vmem:[%s5906_s0 + $0x14] sm:$0xf]  ;;  %v5090_v31 = vld [vmem:[#allocation2 + $0x164] sm:$0xf] }
  0x40   :  { %807 = vmatpush.bf16.msrb.mxu3 %v3611_v30  ;;  %v3827_v30 = vor.u32 %v5124_v16, %v3824_v17  ;;  %v3688_v32 = vld [vmem:[#allocation2 + $0x168] sm:$0xf0]  ;;  %v5106_v33 = vld [vmem:[#allocation2 + $0x1e4] sm:$0xf]  ;;  %v3891_v34 = vor.u32 %v5140_v18, %v3888_v21  ;;  %v5648_v39 = vor.u32 %v5042_v27, %v3504_v28  ;;  %v5088_v45 = vld [vmem:[#allocation2 + $0x154] sm:$0xf] }
  0x41   :  { %766 = vmatpush.bf16.msrb.mxu0 %v3791_v36  ;;  %v3752_v36 = vld [vmem:[#allocation2 + $0x1e8] sm:$0xf0]  ;;  %v5138_v40 = vld [vmem:[#allocation2 + $0x2e4] sm:$0xf]  ;;  %v3680_v46 = vld [vmem:[#allocation2 + $0x158] sm:$0xf0] }
  0x42   :  { %780 = vmatpush.bf16.msrb.mxu1 %v3855_v37  ;;  %v5122_v37 = vld [vmem:[#allocation2 + $0x264] sm:$0xf]  ;;  %v3880_v41 = vld [vmem:[#allocation2 + $0x2e8] sm:$0xf0]  ;;  %v3755_v43 = vor.u32 %v5106_v33, %v3752_v36  ;;  %v5104_v47 = vld [vmem:[#allocation2 + $0x1d4] sm:$0xf] }
  0x43   :  { %794 = vmatpush.bf16.msrb.mxu2 %v3539_v38  ;;  %v3816_v38 = vld [vmem:[#allocation2 + $0x268] sm:$0xf0]  ;;  %v3808_v51 = vld [vmem:[#allocation2 + $0x258] sm:$0xf0]  ;;  %v5136_v52 = vld [vmem:[#allocation2 + $0x2d4] sm:$0xf] }
  0x44   :  { %808 = vmatpush.bf16.msrb.mxu3 %v3603_v42  ;;  %v3691_v42 = vor.u32 %v5090_v31, %v3688_v32  ;;  %v3819_v44 = vor.u32 %v5122_v37, %v3816_v38  ;;  %v3872_v53 = vld [vmem:[#allocation2 + $0x2d8] sm:$0xf0]  ;;  %v5086_v57 = vld [vmem:[#allocation2 + $0x144] sm:$0xf]  ;;  %v3672_v59 = vld [vmem:[#allocation2 + $0x148] sm:$0xf0] }
  0x45   :  { %767 = vmatpush.bf16.msrb.mxu0 %v3783_v48  ;;  %v3883_v48 = vor.u32 %v5138_v40, %v3880_v41  ;;  %v5102_v60 = vld [vmem:[#allocation2 + $0x1c4] sm:$0xf]  ;;  %v3736_v62 = vld [vmem:[#allocation2 + $0x1c8] sm:$0xf0]  ;;  %v5084_v3 = vld [vmem:[#allocation2 + $0x134] sm:$0xf] }
  0x46   :  { %781 = vmatpush.bf16.msrb.mxu1 %v3847_v49  ;;  %v3744_v49 = vld [vmem:[#allocation2 + $0x1d8] sm:$0xf0]  ;;  %v5118_v63 = vld [vmem:[#allocation2 + $0x244] sm:$0xf]  ;;  %v3800_v0 = vld [vmem:[#allocation2 + $0x248] sm:$0xf0] }
  0x47   :  { %795 = vmatpush.bf16.msrb.mxu2 %v3531_v50  ;;  %v5120_v50 = vld [vmem:[#allocation2 + $0x254] sm:$0xf]  ;;  %v3747_v55 = vor.u32 %v5104_v47, %v3744_v49  ;;  %v3664_v4 = vld [vmem:[#allocation2 + $0x138] sm:$0xf0]  ;;  %v3803_v6 = vor.u32 %v5118_v63, %v3800_v0  ;;  %v5082_v18 = vld [vmem:[#allocation2 + $0x124] sm:$0xf] }
  0x48   :  { %809 = vmatpush.bf16.msrb.mxu3 %v3595_v54  ;;  %v3683_v54 = vor.u32 %v5088_v45, %v3680_v46  ;;  %v3811_v56 = vor.u32 %v5120_v50, %v3808_v51  ;;  %v3728_v8 = vld [vmem:[#allocation2 + $0x1b8] sm:$0xf0]  ;;  %v5116_v10 = vld [vmem:[#allocation2 + $0x234] sm:$0xf]  ;;  %v3720_v22 = vld [vmem:[#allocation2 + $0x1a8] sm:$0xf0] }
  0x49   :  { %768 = vmatpush.bf16.msrb.mxu0 %v3775_v61  ;;  %v3875_v61 = vor.u32 %v5136_v52, %v3872_v53  ;;  %v3792_v12 = vld [vmem:[#allocation2 + $0x238] sm:$0xf0]  ;;  %v5132_v13 = vld [vmem:[#allocation2 + $0x2b4] sm:$0xf]  ;;  %v5114_v24 = vld [vmem:[#allocation2 + $0x224] sm:$0xf] }
  0x4a   :  { %782 = vmatpush.bf16.msrb.mxu1 %v3839_v1  ;;  %v5134_v1 = vld [vmem:[#allocation2 + $0x2c4] sm:$0xf]  ;;  %v3856_v14 = vld [vmem:[#allocation2 + $0x2b8] sm:$0xf0]  ;;  %v3795_v17 = vor.u32 %v5116_v10, %v3792_v12  ;;  %v3848_v27 = vld [vmem:[#allocation2 + $0x2a8] sm:$0xf0] }
  0x4b   :  { %796 = vmatpush.bf16.msrb.mxu2 %v3523_v2  ;;  %v3675_v2 = vor.u32 %v5086_v57, %v3672_v59  ;;  %v3859_v21 = vor.u32 %v5132_v13, %v3856_v14  ;;  %v5080_v31 = vld [vmem:[#allocation2 + $0x114] sm:$0xf]  ;;  %v3648_v32 = vld [vmem:[#allocation2 + $0x118] sm:$0xf0]  ;;  %v3640_v46 = vld [vmem:[#allocation2 + $0x108] sm:$0xf0] }
  0x4c   :  { %810 = vmatpush.bf16.msrb.mxu3 %v3587_v7  ;;  %v5100_v7 = vld [vmem:[#allocation2 + $0x1b4] sm:$0xf]  ;;  %v3712_v36 = vld [vmem:[#allocation2 + $0x198] sm:$0xf0]  ;;  %v5094_v47 = vld [vmem:[#allocation2 + $0x184] sm:$0xf] }
  0x4d   :  { %769 = vmatpush.bf16.msrb.mxu0 %v3767_v15  ;;  %v3667_v15 = vor.u32 %v5084_v3, %v3664_v4  ;;  %v3731_v16 = vor.u32 %v5100_v7, %v3728_v8  ;;  %v5096_v33 = vld [vmem:[#allocation2 + $0x194] sm:$0xf]  ;;  %v3776_v38 = vld [vmem:[#allocation2 + $0x218] sm:$0xf0]  ;;  %v5110_v50 = vld [vmem:[#allocation2 + $0x204] sm:$0xf] }
  0x4e   :  { %783 = vmatpush.bf16.msrb.mxu1 %v3831_v19  ;;  %v3656_v19 = vld [vmem:[#allocation2 + $0x128] sm:$0xf0]  ;;  %v5112_v37 = vld [vmem:[#allocation2 + $0x214] sm:$0xf]  ;;  %v3840_v41 = vld [vmem:[#allocation2 + $0x298] sm:$0xf0] }
  0x4f   :  { %797 = vmatpush.bf16.msrb.mxu2 %v3515_v20  ;;  %v5098_v20 = vld [vmem:[#allocation2 + $0x1a4] sm:$0xf]  ;;  %v3659_v28 = vor.u32 %v5082_v18, %v3656_v19  ;;  %v5128_v40 = vld [vmem:[#allocation2 + $0x294] sm:$0xf]  ;;  %v3779_v45 = vor.u32 %v5112_v37, %v3776_v38  ;;  %v3768_v51 = vld [vmem:[#allocation2 + $0x208] sm:$0xf0] }
  0x50   :  { %811 = vmatpush.bf16.msrb.mxu3 %v3579_v25  ;;  %770 = vmatmul.bf16.vlgmr.msrb.gmra.mxu0 %v5646_v35  ;;  %v3784_v25 = vld [vmem:[#allocation2 + $0x228] sm:$0xf0]  ;;  %v3843_v49 = vor.u32 %v5128_v40, %v3840_v41  ;;  %v5126_v52 = vld [vmem:[#allocation2 + $0x284] sm:$0xf]  ;;  %v5186_v7 = vld [vmem:[#allocation4 + $0x15c] sm:$0xf0] }
  0x51   :  { %818 = vmatpush.bf16.msra.mxu0 %v3699_v26  ;;  %784 = vmatmul.bf16.vlgmr.msrb.gmra.mxu1 %v5648_v39  ;;  %v5130_v26 = vld [vmem:[#allocation2 + $0x2a4] sm:$0xf]  ;;  %v3832_v53 = vld [vmem:[#allocation2 + $0x288] sm:$0xf0]  ;;  %v4022_v13 = vld [vmem:[#allocation4 + $0x100] sm:$0xf] }
  0x52   :  { %832 = vmatpush.bf16.msra.mxu1 %v3763_v29  ;;  %798 = vmatmul.bf16.vlgmr.msrb.gmra.mxu2 %v5604_v58  ;;  %v3864_v58 = vld [vmem:[#allocation2 + $0x2c8] sm:$0xf0]  ;;  %v3723_v29 = vor.u32 %v5098_v20, %v3720_v22  ;;  %v5198_v57 = vld [vmem:[#allocation4 + $0x1c4] sm:$0xf]  ;;  %v5178_v14 = vld [vmem:[#allocation4 + $0x11c] sm:$0xf0] }
  0x53   :  { %846 = vmatpush.bf16.msra.mxu2 %v3827_v30  ;;  %812 = vmatmul.bf16.vlgmr.msrb.gmra.mxu3 %v5613_v5  ;;  %v3739_v5 = vor.u32 %v5102_v60, %v3736_v62  ;;  %v3867_v9 = vor.u32 %v5134_v1, %v3864_v58  ;;  %v3787_v30 = vor.u32 %v5114_v24, %v3784_v25  ;;  %v4120_v59 = vld [vmem:[#allocation4 + $0x1e0] sm:$0xf0]  ;;  %v4086_v1 = vld [vmem:[#allocation4 + $0x180] sm:$0xf]  ;;  %v4126_v41 = vld [vmem:[#allocation4 + $0x1c8] sm:$0xf] }
  0x54   :  { %860 = vmatpush.bf16.msra.mxu3 %v3891_v34  ;;  %v3851_v34 = vor.u32 %v5130_v26, %v3848_v27  ;;  %v3835_v62 = vor.u32 %v5126_v52, %v3832_v53  ;;  %v4123_v0 = vor.u32 %v5198_v57, %v4120_v59  ;;  %v5194_v58 = vld [vmem:[#allocation4 + $0x19c] sm:$0xf0]  ;;  %v4088_v3 = vld [vmem:[#allocation4 + $0x1a0] sm:$0xf0]  ;;  %v4096_v52 = vld [vmem:[#allocation4 + $0x1a8] sm:$0xf0] }
  0x55   :  { %819 = vmatpush.bf16.msra.mxu0 %v3691_v42  ;;  %v3651_v42 = vor.u32 %v5080_v31, %v3648_v32  ;;  %v4087_v4 = vor.u32 %v5194_v58, %v4086_v1  ;;  %v5182_v8 = vld [vmem:[#allocation4 + $0x144] sm:$0xf]  ;;  %v3990_v18 = vld [vmem:[#allocation4 + $0xc0] sm:$0xf]  ;;  %v4064_v1 = vld [vmem:[#allocation4 + $0x168] sm:$0xf0] }
  0x56   :  { %833 = vmatpush.bf16.msra.mxu1 %v3755_v43  ;;  %v5078_v43 = vld [vmem:[#allocation2 + $0x104] sm:$0xf]  ;;  %v5162_v22 = vld [vmem:[#allocation4 + $0x9c] sm:$0xf0]  ;;  %vm1892_vm0 = vcmask 130048  }
  0x57   :  { %847 = vmatpush.bf16.msra.mxu2 %v3819_v44  ;;  %v3715_v44 = vor.u32 %v5096_v33, %v3712_v36  ;;  %v5166_v19 = vld [vmem:[#allocation4 + $0xc4] sm:$0xf]  ;;  %v5146_v36 = vld [vmem:[#allocation4 + $0x1c] sm:$0xf0] }
  0x58   :  { %861 = vmatpush.bf16.msra.mxu3 %v3883_v48  ;;  %v3704_v48 = vld [vmem:[#allocation2 + $0x188] sm:$0xf0]  ;;  %v5158_v24 = vld [vmem:[#allocation4 + $0x84] sm:$0xf] }
  0x59   :  { %820 = vmatpush.bf16.msra.mxu0 %v3683_v54  ;;  %v4118_v54 = vld [vmem:[#allocation4 + $0x1c0] sm:$0xf]  ;;  %v3707_v60 = vor.u32 %v5094_v47, %v3704_v48  ;;  %v3960_v25 = vld [vmem:[#allocation4 + $0xa0] sm:$0xf0]  ;;  %v4094_v48 = vld [vmem:[#allocation4 + $0x188] sm:$0xf] }
  0x5a   :  { %834 = vmatpush.bf16.msra.mxu1 %v3747_v55  ;;  %v5202_v55 = vld [vmem:[#allocation4 + $0x1dc] sm:$0xf0]  ;;  %v3963_v27 = vor.u32 %v5158_v24, %v3960_v25  ;;  %v3928_v31 = vld [vmem:[#allocation4 + $0x60] sm:$0xf0] }
  0x5b   :  { %848 = vmatpush.bf16.msra.mxu2 %v3811_v56  ;;  %v3643_v56 = vor.u32 %v5078_v43, %v3640_v46  ;;  %v4119_v63 = vor.u32 %v5202_v55, %v4118_v54  ;;  %v5142_v37 = vld [vmem:[#allocation4 + $0x4] sm:$0xf]  ;;  %v4128_v46 = vld [vmem:[#allocation4 + $0x1e8] sm:$0xf0]  ;;  %v4374_v54 = vld [vmem:[#allocation4 + $0x3c0] sm:$0xf] }
  0x5c   :  { %862 = vmatpush.bf16.msra.mxu3 %v3875_v61  ;;  %v3771_v61 = vor.u32 %v5110_v50, %v3768_v51  ;;  %v3896_v40 = vld [vmem:[#allocation4 + $0x20] sm:$0xf0]  ;;  %v5191_v50 = vld [vmem:[#allocation4 + $0x18c] sm:$0xf]  ;;  %v5266_v55 = vld [vmem:[#allocation4 + $0x3dc] sm:$0xf0] }
  0x5d   :  { %821 = vmatpush.bf16.msra.mxu0 %v3675_v2  ;;  %v5190_v2 = vld [vmem:[#allocation4 + $0x184] sm:$0xf]  ;;  %v3899_v43 = vor.u32 %v5142_v37, %v3896_v40  ;;  %v4099_v53 = vor.u32 %v5191_v50, %v4096_v52  ;;  %v4375_v57 = vor.u32 %v5266_v55, %v4374_v54  ;;  %v4278_v24 = vld [vmem:[#allocation4 + $0x300] sm:$0xf]  ;;  %v3936_v50 = vld [vmem:[#allocation4 + $0x68] sm:$0xf0] }
  0x5e   :  { %835 = vmatpush.bf16.msra.mxu1 %v3739_v5  ;;  %v4091_v5 = vor.u32 %v5190_v2, %v4088_v3  ;;  %v4376_v59 = vld [vmem:[#allocation4 + $0x3e0] sm:$0xf0]  ;;  %v4342_v2 = vld [vmem:[#allocation4 + $0x380] sm:$0xf] }
  0x5f   :  { %849 = vmatpush.bf16.msra.mxu2 %v3803_v6  ;;  %v4054_v6 = vld [vmem:[#allocation4 + $0x140] sm:$0xf]  ;;  %v5230_v40 = vld [vmem:[#allocation4 + $0x2c4] sm:$0xf] }
  0x60   :  { %863 = vmatpush.bf16.msra.mxu3 %v3867_v9  ;;  %v4056_v9 = vld [vmem:[#allocation4 + $0x160] sm:$0xf0]  ;;  %v4055_v10 = vor.u32 %v5186_v7, %v4054_v6  ;;  %v5258_v3 = vld [vmem:[#allocation4 + $0x39c] sm:$0xf0] }
  0x61   :  { %822 = vmatpush.bf16.msra.mxu0 %v3667_v15  ;;  %v4059_v12 = vor.u32 %v5182_v8, %v4056_v9  ;;  %v5174_v15 = vld [vmem:[#allocation4 + $0x104] sm:$0xf]  ;;  %v4030_v8 = vld [vmem:[#allocation4 + $0x108] sm:$0xf]  ;;  %v5242_v25 = vld [vmem:[#allocation4 + $0x31c] sm:$0xf0] }
  0x62   :  { %836 = vmatpush.bf16.msra.mxu1 %v3731_v16  ;;  %v4023_v16 = vor.u32 %v5178_v14, %v4022_v13  ;;  %v4344_v6 = vld [vmem:[#allocation4 + $0x3a0] sm:$0xf0]  ;;  %v5179_v9 = vld [vmem:[#allocation4 + $0x124] sm:$0xf0]  ;;  %v4032_v13 = vld [vmem:[#allocation4 + $0x128] sm:$0xf0] }
  0x63   :  { %850 = vmatpush.bf16.msra.mxu2 %v3795_v17  ;;  %v4246_v37 = vld [vmem:[#allocation4 + $0x2c0] sm:$0xf]  ;;  %v5222_v55 = vld [vmem:[#allocation4 + $0x284] sm:$0xf] }
  0x64   :  { %864 = vmatpush.bf16.msra.mxu3 %v3859_v21  ;;  %v3958_v21 = vld [vmem:[#allocation4 + $0x80] sm:$0xf] }
  0x65   :  { %823 = vmatpush.bf16.msra.mxu0 %v3659_v28  ;;  %v3959_v26 = vor.u32 %v5162_v22, %v3958_v21  ;;  %v3926_v28 = vld [vmem:[#allocation4 + $0x40] sm:$0xf]  ;;  %v4000_v21 = vld [vmem:[#allocation4 + $0xe8] sm:$0xf0] }
  0x66   :  { %837 = vmatpush.bf16.msra.mxu1 %v3723_v29  ;;  %v5154_v29 = vld [vmem:[#allocation4 + $0x5c] sm:$0xf0] }
  0x67   :  { %851 = vmatpush.bf16.msra.mxu2 %v3787_v30  ;;  %v5150_v30 = vld [vmem:[#allocation4 + $0x44] sm:$0xf]  ;;  %v3927_v32 = vor.u32 %v5154_v29, %v3926_v28  ;;  %v5226_v54 = vld [vmem:[#allocation4 + $0x29c] sm:$0xf0] }
  0x68   :  { %865 = vmatpush.bf16.msra.mxu3 %v3851_v34  ;;  %v3931_v33 = vor.u32 %v5150_v30, %v3928_v31  ;;  %v3894_v34 = vld [vmem:[#allocation4] sm:$0xf]  ;;  %v4280_v28 = vld [vmem:[#allocation4 + $0x320] sm:$0xf0]  ;;  %v3966_v30 = vld [vmem:[#allocation4 + $0x88] sm:$0xf] }
  0x69   :  { %824 = vmatpush.bf16.msra.mxu0 %v3651_v42  ;;  %v3895_v38 = vor.u32 %v5146_v36, %v3894_v34  ;;  %v5203_v42 = vld [vmem:[#allocation4 + $0x1e4] sm:$0xf0]  ;;  %v3968_v34 = vld [vmem:[#allocation4 + $0xa8] sm:$0xf0] }
  0x6a   :  { %838 = vmatpush.bf16.msra.mxu1 %v3715_v44  ;;  %v4127_v44 = vor.u32 %v5203_v42, %v4126_v41  ;;  %v5163_v31 = vld [vmem:[#allocation4 + $0xa4] sm:$0xf0]  ;;  %v4248_v42 = vld [vmem:[#allocation4 + $0x2e0] sm:$0xf0] }
  0x6b   :  { %852 = vmatpush.bf16.msra.mxu2 %v3779_v45  ;;  %v5199_v45 = vld [vmem:[#allocation4 + $0x1cc] sm:$0xf] }
  0x6c   :  { %866 = vmatpush.bf16.msra.mxu3 %v3843_v49  ;;  %v4131_v47 = vor.u32 %v5199_v45, %v4128_v46  ;;  %v5195_v49 = vld [vmem:[#allocation4 + $0x1a4] sm:$0xf0]  ;;  %v5151_v46 = vld [vmem:[#allocation4 + $0x4c] sm:$0xf] }
  0x6d   :  { %825 = vmatpush.bf16.msra.mxu0 %v3643_v56  ;;  %v4095_v51 = vor.u32 %v5195_v49, %v4094_v48  ;;  %v5262_v56 = vld [vmem:[#allocation4 + $0x3c4] sm:$0xf]  ;;  %v5155_v45 = vld [vmem:[#allocation4 + $0x64] sm:$0xf0]  ;;  %v3939_v52 = vor.u32 %v5151_v46, %v3936_v50  ;;  %v5239_v50 = vld [vmem:[#allocation4 + $0x30c] sm:$0xf] }
  0x6e   :  { %839 = vmatpush.bf16.msra.mxu1 %v3707_v60  ;;  %v4062_v60 = vld [vmem:[#allocation4 + $0x148] sm:$0xf] }
  0x6f   :  { %853 = vmatpush.bf16.msra.mxu2 %v3771_v61  ;;  %v5187_v61 = vld [vmem:[#allocation4 + $0x164] sm:$0xf0] }
  0x70   :  { %867 = vmatpush.bf16.msra.mxu3 %v3835_v62  ;;  %826 = vmatmul.bf16.vlgmr.msra.gmra.mxu0 %v5621_v11  ;;  %v4024_v11 = vld [vmem:[#allocation4 + $0x120] sm:$0xf0]  ;;  %v4379_v62 = vor.u32 %v5262_v56, %v4376_v59 }
  0x71   :  { %1666 = vmatpush.bf16.msrb.mxu0 %v4119_v63  ;;  %840 = vmatmul.bf16.vlgmr.msra.gmra.mxu1 %v5631_v23  ;;  %v4027_v17 = vor.u32 %v5174_v15, %v4024_v11  ;;  %v5170_v23 = vld [vmem:[#allocation4 + $0xdc] sm:$0xf0]  ;;  %v4063_v63 = vor.u32 %v5187_v61, %v4062_v60  ;;  %v3902_v61 = vld [vmem:[#allocation4 + $0x8] sm:$0xf] }
  0x72   :  { %854 = vmatmul.bf16.vlgmr.msra.gmra.mxu2 %v5646_v35  ;;  %v3992_v35 = vld [vmem:[#allocation4 + $0xe0] sm:$0xf0]  ;;  %v3991_v20 = vor.u32 %v5170_v23, %v3990_v18  ;;  %1680 = vmatpush.bf16.msrb.mxu1 %v4375_v57  ;;  %v4310_v15 = vld [vmem:[#allocation4 + $0x340] sm:$0xf] }
  0x73   :  { %1694 = vmatpush.bf16.msrb.mxu2 %v4123_v0  ;;  %868 = vmatmul.bf16.vlgmr.msra.gmra.mxu3 %v5648_v39  ;;  %v3995_v39 = vor.u32 %v5166_v19, %v3992_v35  ;;  %v5183_v0 = vld [vmem:[#allocation4 + $0x14c] sm:$0xf]  ;;  %v5250_v11 = vld [vmem:[#allocation4 + $0x35c] sm:$0xf0]  ;;  %v4312_v18 = vld [vmem:[#allocation4 + $0x360] sm:$0xf0] }
  0x74   :  { %v4067_v58 = vor.u32 %v5183_v0, %v4064_v1  ;;  %1708 = vmatpush.bf16.msrb.mxu3 %v4379_v62  ;;  %v3998_v19 = vld [vmem:[#allocation4 + $0xc8] sm:$0xf]  ;;  %v4216_v57 = vld [vmem:[#allocation4 + $0x2a0] sm:$0xf0]  ;;  %v5143_v0 = vld [vmem:[#allocation4 + $0xc] sm:$0xf] }
  0x75   :  { %1667 = vmatpush.bf16.msrb.mxu0 %v4087_v4  ;;  %v5254_v4 = vld [vmem:[#allocation4 + $0x384] sm:$0xf]  ;;  %v5171_v35 = vld [vmem:[#allocation4 + $0xe4] sm:$0xf0]  ;;  %v4219_v60 = vor.u32 %v5222_v55, %v4216_v57  ;;  %v3904_v1 = vld [vmem:[#allocation4 + $0x28] sm:$0xf0] }
  0x76   :  { %v4347_v7 = vor.u32 %v5254_v4, %v4344_v6  ;;  %v5147_v62 = vld [vmem:[#allocation4 + $0x24] sm:$0xf0]  ;;  %v5214_v4 = vld [vmem:[#allocation4 + $0x244] sm:$0xf] }
  0x77   :  { %1695 = vmatpush.bf16.msrb.mxu2 %v4091_v5  ;;  %v4343_v5 = vor.u32 %v5258_v3, %v4342_v2  ;;  %v4182_v2 = vld [vmem:[#allocation4 + $0x240] sm:$0xf]  ;;  %v5235_v57 = vld [vmem:[#allocation4 + $0x2e4] sm:$0xf0] }
  0x78   :  { %1709 = vmatpush.bf16.msrb.mxu3 %v4347_v7  ;;  %v5218_v3 = vld [vmem:[#allocation4 + $0x25c] sm:$0xf0]  ;;  %v4184_v7 = vld [vmem:[#allocation4 + $0x260] sm:$0xf0] }
  0x79   :  { %1668 = vmatpush.bf16.msrb.mxu0 %v4055_v10  ;;  %1681 = vmatpush.bf16.msrb.mxu1 %v4343_v5  ;;  %v5175_v10 = vld [vmem:[#allocation4 + $0x10c] sm:$0xf]  ;;  %v4183_v6 = vor.u32 %v5218_v3, %v4182_v2  ;;  %v4134_v2 = vld [vmem:[#allocation4 + $0x1d0] sm:$0xf] }
  0x7a   :  { %v4035_v14 = vor.u32 %v5175_v10, %v4032_v13  ;;  %v4150_v10 = vld [vmem:[#allocation4 + $0x200] sm:$0xf]  ;;  %v5206_v13 = vld [vmem:[#allocation4 + $0x204] sm:$0xf]  ;;  %v5204_v3 = vld [vmem:[#allocation4 + $0x1ec] sm:$0xf0] }
  0x7b   :  { %1696 = vmatpush.bf16.msrb.mxu2 %v4059_v12  ;;  %v4031_v12 = vor.u32 %v5179_v9, %v4030_v8  ;;  %v4187_v9 = vor.u32 %v5214_v4, %v4184_v7  ;;  %v5200_v4 = vld [vmem:[#allocation4 + $0x1d4] sm:$0xf]  ;;  %v5223_v7 = vld [vmem:[#allocation4 + $0x28c] sm:$0xf] }
  0x7d   :  { %1669 = vmatpush.bf16.msrb.mxu0 %v4023_v16  ;;  %v5246_v16 = vld [vmem:[#allocation4 + $0x344] sm:$0xf] }
  0x7e   :  { %v4315_v23 = vor.u32 %v5246_v16, %v4312_v18  ;;  %v4382_v16 = vld [vmem:[#allocation4 + $0x3c8] sm:$0xf] }
  0x7f   :  { %1697 = vmatpush.bf16.msrb.mxu2 %v4027_v17  ;;  %v4311_v17 = vor.u32 %v5250_v11, %v4310_v15  ;;  %v4152_v11 = vld [vmem:[#allocation4 + $0x220] sm:$0xf0] }
  0x80   :  { %1710 = vmatpush.bf16.msrb.mxu3 %v4315_v23 }
  0x81   :  { %1670 = vmatpush.bf16.msrb.mxu0 %v3991_v20  ;;  %v5167_v20 = vld [vmem:[#allocation4 + $0xcc] sm:$0xf]  ;;  %1682 = vmatpush.bf16.msrb.mxu1 %v4311_v17  ;;  %v5267_v17 = vld [vmem:[#allocation4 + $0x3e4] sm:$0xf0] }
  0x82   :  { %v4003_v22 = vor.u32 %v5167_v20, %v4000_v21  ;;  %v5263_v20 = vld [vmem:[#allocation4 + $0x3cc] sm:$0xf] }
  0x83   :  { %1698 = vmatpush.bf16.msrb.mxu2 %v3995_v39  ;;  %v3999_v39 = vor.u32 %v5171_v35, %v3998_v19  ;;  %v4155_v19 = vor.u32 %v5206_v13, %v4152_v11  ;;  %v4383_v35 = vor.u32 %v5267_v17, %v4382_v16  ;;  %v4224_v13 = vld [vmem:[#allocation4 + $0x2a8] sm:$0xf0]  ;;  %v4102_v11 = vld [vmem:[#allocation4 + $0x190] sm:$0xf]  ;;  %v4135_v16 = vor.u32 %v5204_v3, %v4134_v2 }
  0x85   :  { %1671 = vmatpush.bf16.msrb.mxu0 %v3959_v26  ;;  %v5238_v26 = vld [vmem:[#allocation4 + $0x304] sm:$0xf] }
  0x86   :  { %v4283_v29 = vor.u32 %v5238_v26, %v4280_v28  ;;  %v5259_v26 = vld [vmem:[#allocation4 + $0x3a4] sm:$0xf0] }
  0x87   :  { %1699 = vmatpush.bf16.msrb.mxu2 %v3963_v27  ;;  %v4279_v27 = vor.u32 %v5242_v25, %v4278_v24  ;;  %v4350_v25 = vld [vmem:[#allocation4 + $0x388] sm:$0xf] }
  0x88   :  { %1711 = vmatpush.bf16.msrb.mxu3 %v4283_v29  ;;  %v4351_v29 = vor.u32 %v5259_v26, %v4350_v25  ;;  %v4070_v25 = vld [vmem:[#allocation4 + $0x150] sm:$0xf] }
  0x89   :  { %1672 = vmatpush.bf16.msrb.mxu0 %v3927_v32  ;;  %v5159_v32 = vld [vmem:[#allocation4 + $0x8c] sm:$0xf]  ;;  %1683 = vmatpush.bf16.msrb.mxu1 %v4279_v27  ;;  %v5188_v26 = vld [vmem:[#allocation4 + $0x16c] sm:$0xf0] }
  0x8a   :  { %v3971_v36 = vor.u32 %v5159_v32, %v3968_v34  ;;  %v5255_v27 = vld [vmem:[#allocation4 + $0x38c] sm:$0xf]  ;;  %v4318_v34 = vld [vmem:[#allocation4 + $0x348] sm:$0xf] }
  0x8b   :  { %1700 = vmatpush.bf16.msrb.mxu2 %v3931_v33  ;;  %v3967_v33 = vor.u32 %v5163_v31, %v3966_v30  ;;  %v4352_v30 = vld [vmem:[#allocation4 + $0x3a8] sm:$0xf0] }
  0x8c   :  { %v4355_v31 = vor.u32 %v5255_v27, %v4352_v30 }
  0x8d   :  { %1673 = vmatpush.bf16.msrb.mxu0 %v3895_v38  ;;  %v5234_v38 = vld [vmem:[#allocation4 + $0x2dc] sm:$0xf0] }
  0x8e   :  { %v4247_v41 = vor.u32 %v5234_v38, %v4246_v37  ;;  %v5247_v37 = vld [vmem:[#allocation4 + $0x34c] sm:$0xf] }
  0x8f   :  { %1701 = vmatpush.bf16.msrb.mxu2 %v3899_v43  ;;  %v4251_v43 = vor.u32 %v5230_v40, %v4248_v42 }
  0x90   :  { %1684 = vmatpush.bf16.msrb.mxu1 %v4247_v41  ;;  %v4320_v41 = vld [vmem:[#allocation4 + $0x368] sm:$0xf0] }
  0x91   :  { %1722 = vmatpush.bf16.msra.mxu0 %v4127_v44  ;;  %v3934_v44 = vld [vmem:[#allocation4 + $0x48] sm:$0xf]  ;;  %1712 = vmatpush.bf16.msrb.mxu3 %v4251_v43  ;;  %v4323_v43 = vor.u32 %v5247_v37, %v4320_v41 }
  0x92   :  { %v3935_v49 = vor.u32 %v5155_v45, %v3934_v44 }
  0x93   :  { %1750 = vmatpush.bf16.msra.mxu2 %v4131_v47  ;;  %v5661_v47 = vld [vmem:[%s5909_s3] sm:$0x3] }
  0x94   :  { %v192_v59 = vperm.slane %v5661_v47, 0 }
  0x95   :  { %1723 = vmatpush.bf16.msra.mxu0 %v4095_v51  ;;  %1713 = vmatpush.bf16.msrb.mxu3 %v4219_v60 }
  0x97   :  { %1751 = vmatpush.bf16.msra.mxu2 %v4099_v53  ;;  %v4214_v53 = vld [vmem:[#allocation4 + $0x280] sm:$0xf] }
  0x98   :  { %v4215_v56 = vor.u32 %v5226_v54, %v4214_v53  ;;  %v4288_v53 = vld [vmem:[#allocation4 + $0x328] sm:$0xf0] }
  0x99   :  { %1724 = vmatpush.bf16.msra.mxu0 %v4063_v63  ;;  %v3903_v63 = vor.u32 %v5147_v62, %v3902_v61  ;;  %1714 = vmatpush.bf16.msrb.mxu3 %v4187_v9  ;;  %v4291_v54 = vor.u32 %v5239_v50, %v4288_v53  ;;  %v4256_v62 = vld [vmem:[#allocation4 + $0x2e8] sm:$0xf0]  ;;  %v5172_v53 = vld [vmem:[#allocation4 + $0xec] sm:$0xf0] }
  0x9a   :  { %1685 = vmatpush.bf16.msrb.mxu1 %v4215_v56  ;;  %v4254_v56 = vld [vmem:[#allocation4 + $0x2c8] sm:$0xf] }
  0x9b   :  { %1752 = vmatpush.bf16.msra.mxu2 %v4067_v58  ;;  %v3907_v58 = vor.u32 %v5143_v0, %v3904_v1  ;;  %v4255_v61 = vor.u32 %v5235_v57, %v4254_v56 }
  0x9d   :  { %1725 = vmatpush.bf16.msra.mxu0 %v4031_v12  ;;  %v5210_v12 = vld [vmem:[#allocation4 + $0x21c] sm:$0xf0]  ;;  %1715 = vmatpush.bf16.msrb.mxu3 %v4155_v19  ;;  %v4104_v19 = vld [vmem:[#allocation4 + $0x1b0] sm:$0xf0] }
  0x9e   :  { %1686 = vmatpush.bf16.msrb.mxu1 %v4183_v6  ;;  %v4151_v15 = vor.u32 %v5210_v12, %v4150_v10  ;;  %v5227_v6 = vld [vmem:[#allocation4 + $0x2a4] sm:$0xf0]  ;;  %v4136_v10 = vld [vmem:[#allocation4 + $0x1f0] sm:$0xf0] }
  0x9f   :  { %1753 = vmatpush.bf16.msra.mxu2 %v4035_v14  ;;  %v4139_v17 = vor.u32 %v5200_v4, %v4136_v10  ;;  %v3944_v10 = vld [vmem:[#allocation4 + $0x70] sm:$0xf0] }
  0xa1   :  { %1726 = vmatpush.bf16.msra.mxu0 %v3999_v39  ;;  %v4384_v39 = vld [vmem:[#allocation4 + $0x3e8] sm:$0xf0] }
  0xa2   :  { %1687 = vmatpush.bf16.msrb.mxu1 %v4151_v15 }
  0xa3   :  { %1754 = vmatpush.bf16.msra.mxu2 %v4003_v22  ;;  %v4387_v22 = vor.u32 %v5263_v20, %v4384_v39  ;;  %v4190_v20 = vld [vmem:[#allocation4 + $0x248] sm:$0xf] }
  0xa4   :  { %v5219_v39 = vld [vmem:[#allocation4 + $0x264] sm:$0xf0] }
  0xa5   :  { %1727 = vmatpush.bf16.msra.mxu0 %v3967_v33  ;;  %1764 = vmatpush.bf16.msra.mxu3 %v4387_v22  ;;  %v4191_v22 = vor.u32 %v5219_v39, %v4190_v20  ;;  %v5144_v20 = vld [vmem:[#allocation4 + $0x14] sm:$0xf] }
  0xa6   :  { %1736 = vmatpush.bf16.msra.mxu1 %v4383_v35  ;;  %v3912_v39 = vld [vmem:[#allocation4 + $0x30] sm:$0xf0] }
  0xa7   :  { %1755 = vmatpush.bf16.msra.mxu2 %v3971_v36  ;;  %v5251_v36 = vld [vmem:[#allocation4 + $0x364] sm:$0xf0] }
  0xa8   :  { %v4319_v40 = vor.u32 %v5251_v36, %v4318_v34  ;;  %v4072_v36 = vld [vmem:[#allocation4 + $0x170] sm:$0xf0] }
  0xa9   :  { %1728 = vmatpush.bf16.msra.mxu0 %v3935_v49  ;;  %1765 = vmatpush.bf16.msra.mxu3 %v4355_v31  ;;  %v5243_v49 = vld [vmem:[#allocation4 + $0x324] sm:$0xf0]  ;;  %v5184_v31 = vld [vmem:[#allocation4 + $0x154] sm:$0xf] }
  0xaa   :  { %1737 = vmatpush.bf16.msra.mxu1 %v4351_v29 }
  0xab   :  { %1756 = vmatpush.bf16.msra.mxu2 %v3939_v52 }
  0xad   :  { %v715_v48 = vpop.f32.mrf.mxu0  ;;  %1729 = vmatpush.bf16.msra.mxu0 %v3903_v63  ;;  %1766 = vmatpush.bf16.msra.mxu3 %v4323_v43  ;;  %v4075_v43 = vor.u32 %v5184_v31, %v4072_v36  ;;  %v5197_v36 = vld [vmem:[#allocation4 + $0x1b4] sm:$0xf0] }
  0xae   :  { %v729_v51 = vpop.f32.mrf.mxu1  ;;  %v716_v5 = vadd.f32 %v715_v48, %v192_v59  ;;  %1738 = vmatpush.bf16.msra.mxu1 %v4319_v40  ;;  %v4286_v48 = vld [vmem:[#allocation4 + $0x308] sm:$0xf]  ;;  %v4160_v40 = vld [vmem:[#allocation4 + $0x228] sm:$0xf0] }
  0xaf   :  { %1757 = vmatpush.bf16.msra.mxu2 %v3907_v58  ;;  %v4287_v52 = vor.u32 %v5243_v49, %v4286_v48  ;;  %v4040_v48 = vld [vmem:[#allocation4 + $0x130] sm:$0xf0]  ;;  %v193_v49 = vperm.slane %v5661_v47, 1 }
  0xb0   :  { %v730_v18 = vadd.f32 %v729_v51, %v716_v5  ;;  %v4222_v5 = vld [vmem:[#allocation4 + $0x288] sm:$0xf]  ;;  %v3976_v47 = vld [vmem:[#allocation4 + $0xb0] sm:$0xf0] }
  0xb1   :  { %1767 = vmatpush.bf16.msra.mxu3 %v4291_v54  ;;  %v4223_v12 = vor.u32 %v5227_v6, %v4222_v5  ;;  %v5168_v54 = vld [vmem:[#allocation4 + $0xd4] sm:$0xf]  ;;  %v3942_v6 = vld [vmem:[#allocation4 + $0x50] sm:$0xf] }
  0xb2   :  { %1739 = vmatpush.bf16.msra.mxu1 %v4287_v52  ;;  %v4006_v52 = vld [vmem:[#allocation4 + $0xd0] sm:$0xf] }
  0xb5   :  { %v743_v8 = vpop.f32.mrf.mxu2  ;;  %v717_v14 = vpop.f32.mrf.mxu0 }
  0xb6   :  { %v731_v23 = vpop.f32.mrf.mxu1  ;;  %v757_v21 = vpop.f32.mrf.mxu3  ;;  %v718_v24 = vadd.f32 %v717_v14, %v192_v59  ;;  %v744_v28 = vadd.f32 %v743_v8, %v730_v18  ;;  %v5231_v59 = vld [vmem:[#allocation4 + $0x2cc] sm:$0xf]  ;;  %1740 = vmatpush.bf16.msra.mxu1 %v4255_v61  ;;  %v4227_v14 = vor.u32 %v5223_v7, %v4224_v13  ;;  %v5196_v18 = vld [vmem:[#allocation4 + $0x1ac] sm:$0xf0]  ;;  %v4007_v61 = vor.u32 %v5172_v53, %v4006_v52  ;;  %v5189_v52 = vld [vmem:[#allocation4 + $0x174] sm:$0xf0] }
  0xb7   :  { %v4259_v0 = vor.u32 %v5231_v59, %v4256_v62  ;;  %v4103_v29 = vor.u32 %v5196_v18, %v4102_v11  ;;  %v5148_v18 = vld [vmem:[#allocation4 + $0x2c] sm:$0xf0]  ;;  %v5185_v53 = vld [vmem:[#allocation4 + $0x15c] sm:$0xf] }
  0xb8   :  { %v732_v32 = vadd.f32 %v731_v23, %v718_v24  ;;  %v758_v38 = vadd.f32 %v757_v21, %v744_v28  ;;  %v5192_v23 = vld [vmem:[#allocation4 + $0x194] sm:$0xf]  ;;  %v5215_v21 = vld [vmem:[#allocation4 + $0x24c] sm:$0xf] }
  0xb9   :  { %1768 = vmatpush.bf16.msra.mxu3 %v4259_v0  ;;  %v4192_v24 = vld [vmem:[#allocation4 + $0x268] sm:$0xf0]  ;;  %v4107_v30 = vor.u32 %v5192_v23, %v4104_v19  ;;  %v5164_v0 = vld [vmem:[#allocation4 + $0xac] sm:$0xf0] }
  0xba   :  { %1741 = vmatpush.bf16.msra.mxu1 %v4223_v12  ;;  %v4195_v27 = vor.u32 %v5215_v21, %v4192_v24  ;;  %v4142_v21 = vld [vmem:[#allocation4 + $0x1d8] sm:$0xf]  ;;  %v5201_v24 = vld [vmem:[#allocation4 + $0x1dc] sm:$0xf] }
  0xbd   :  { %v745_v33 = vpop.f32.mrf.mxu2  ;;  %1769 = vmatpush.bf16.msra.mxu3 %v4227_v14 }
  0xbe   :  { %v746_v45 = vadd.f32 %v745_v33, %v732_v32  ;;  %v759_v46 = vpop.f32.mrf.mxu3  ;;  %v4158_v32 = vld [vmem:[#allocation4 + $0x208] sm:$0xf]  ;;  %1742 = vmatpush.bf16.msra.mxu1 %v4191_v22  ;;  %v5205_v22 = vld [vmem:[#allocation4 + $0x1f4] sm:$0xf0] }
  0xbf   :  { %v5211_v33 = vld [vmem:[#allocation4 + $0x224] sm:$0xf0]  ;;  %v4143_v31 = vor.u32 %v5205_v22, %v4142_v21  ;;  %v5240_v21 = vld [vmem:[#allocation4 + $0x314] sm:$0xf] }
  0xc0   :  { %v760_v55 = vadd.f32 %v759_v46, %v746_v45  ;;  %v4159_v37 = vor.u32 %v5211_v33, %v4158_v32  ;;  %v5180_v45 = vld [vmem:[#allocation4 + $0x12c] sm:$0xf0]  ;;  %v5176_v46 = vld [vmem:[#allocation4 + $0x114] sm:$0xf]  ;;  %v4110_v33 = vld [vmem:[#allocation4 + $0x198] sm:$0xf] }
  0xc1   :  { %1770 = vmatpush.bf16.msra.mxu3 %v4195_v27  ;;  %v4296_v22 = vld [vmem:[#allocation4 + $0x330] sm:$0xf0] }
  0xc2   :  { %1743 = vmatpush.bf16.msra.mxu1 %v4159_v37  ;;  %v5193_v37 = vld [vmem:[#allocation4 + $0x19c] sm:$0xf] }
  0xcd   :  { %v771_v42 = vpop.f32.mrf.mxu0 }
  0xce   :  { %v785_v44 = vpop.f32.mrf.mxu1  ;;  %v772_v51 = vadd.f32 %v771_v42, %v758_v38  ;;  %v5207_v38 = vld [vmem:[#allocation4 + $0x20c] sm:$0xf]  ;;  %v4071_v42 = vor.u32 %v5188_v26, %v4070_v25  ;;  %v4144_v25 = vld [vmem:[#allocation4 + $0x1f8] sm:$0xf0] }
  0xcf   :  { %v4163_v41 = vor.u32 %v5207_v38, %v4160_v40  ;;  %v4147_v32 = vor.u32 %v5201_v24, %v4144_v25  ;;  %v4112_v38 = vld [vmem:[#allocation4 + $0x1b8] sm:$0xf0]  ;;  %v3982_v24 = vld [vmem:[#allocation4 + $0x98] sm:$0xf] }
  0xd0   :  { %v786_v60 = vadd.f32 %v785_v44, %v772_v51  ;;  %v4038_v44 = vld [vmem:[#allocation4 + $0x110] sm:$0xf]  ;;  %v4043_v51 = vor.u32 %v5176_v46, %v4040_v48  ;;  %v4111_v46 = vor.u32 %v5197_v36, %v4110_v33  ;;  %v4115_v48 = vor.u32 %v5193_v37, %v4112_v38  ;;  %v5165_v25 = vld [vmem:[#allocation4 + $0xb4] sm:$0xf0]  ;;  %v4264_v36 = vld [vmem:[#allocation4 + $0x2f0] sm:$0xf0] }
  0xd1   :  { %1771 = vmatpush.bf16.msra.mxu3 %v4163_v41  ;;  %v4039_v50 = vor.u32 %v5180_v45, %v4038_v44  ;;  %v5268_v44 = vld [vmem:[#allocation4 + $0x3ec] sm:$0xf0]  ;;  %v3950_v37 = vld [vmem:[#allocation4 + $0x58] sm:$0xf] }
  0xd2   :  { %v874_v8 = vmax.f32 %v786_v60, 0.0  ;;  %v5157_v38 = vld [vmem:[#allocation4 + $0x74] sm:$0xf0] }
  0xd5   :  { %v773_v63 = vpop.f32.mrf.mxu0  ;;  %v799_v28 = vpop.f32.mrf.mxu2 }
  0xd6   :  { %v774_v1 = vadd.f32 %v773_v63, %v760_v55  ;;  %v787_v58 = vpop.f32.mrf.mxu1  ;;  %v813_v34 = vpop.f32.mrf.mxu3  ;;  %v4008_v55 = vld [vmem:[#allocation4 + $0xf0] sm:$0xf0]  ;;  %v800_v57 = vadd.f32 %v799_v28, %v193_v49  ;;  %v3974_v63 = vld [vmem:[#allocation4 + $0x90] sm:$0xf] }
  0xd7   :  { %v4011_v62 = vor.u32 %v5168_v54, %v4008_v55  ;;  %v3975_v4 = vor.u32 %v5164_v0, %v3974_v63  ;;  %v4080_v54 = vld [vmem:[#allocation4 + $0x178] sm:$0xf0] }
  0xd8   :  { %v788_v9 = vadd.f32 %v787_v58, %v774_v1  ;;  %v5160_v1 = vld [vmem:[#allocation4 + $0x94] sm:$0xf]  ;;  %v814_v2 = vadd.f32 %v813_v34, %v800_v57  ;;  %v4083_v0 = vor.u32 %v5185_v53, %v4080_v54  ;;  %v5145_v53 = vld [vmem:[#allocation4 + $0x1c] sm:$0xf] }
  0xd9   :  { %v3979_v5 = vor.u32 %v5160_v1, %v3976_v47  ;;  %v5256_v1 = vld [vmem:[#allocation4 + $0x394] sm:$0xf]  ;;  %v3920_v54 = vld [vmem:[#allocation4 + $0x38] sm:$0xf0] }
  0xda   :  { %v876_v15 = vmax.f32 %v788_v9, 0.0  ;;  %v5152_v9 = vld [vmem:[#allocation4 + $0x54] sm:$0xf] }
  0xdb   :  { %v4360_v47 = vld [vmem:[#allocation4 + $0x3b0] sm:$0xf0] }
  0xdc   :  { %v5664_v35 = vpack.c.bf16 %v876_v15, %v874_v8  ;;  %v5156_v8 = vld [vmem:[#allocation4 + $0x6c] sm:$0xf0] }
  0xdd   :  { %v801_v56 = vpop.f32.mrf.mxu2  ;;  %v3943_v11 = vor.u32 %v5156_v8, %v3942_v6  ;;  %v4363_v6 = vor.u32 %v5256_v1, %v4360_v47  ;;  %v5252_v8 = vld [vmem:[#allocation4 + $0x36c] sm:$0xf0] }
  0xde   :  { %1674 = vmatmul.bf16.vlgmr.msrb.gmra.mxu0 %v5664_v35  ;;  %1702 = vmatmul.bf16.vlgmr.msrb.gmra.mxu2 %v5664_v35  ;;  %v815_v59 = vpop.f32.mrf.mxu3  ;;  %v802_v3 = vadd.f32 %v801_v56, %v193_v49  ;;  %v5264_v49 = vld [vmem:[#allocation4 + $0x3d4] sm:$0xf] }
  0xdf   :  { %1778 = vmatpush.bf16.msrb.mxu0 %v4135_v16  ;;  %1806 = vmatpush.bf16.msrb.mxu2 %v4139_v17  ;;  %v3947_v16 = vor.u32 %v5152_v9, %v3944_v10  ;;  %v3910_v17 = vld [vmem:[#allocation4 + $0x10] sm:$0xf] }
  0xe0   :  { %v816_v13 = vadd.f32 %v815_v59, %v802_v3  ;;  %v3911_v28 = vor.u32 %v5148_v18, %v3910_v17  ;;  %v5177_v3 = vld [vmem:[#allocation4 + $0x11c] sm:$0xf] }
  0xe3   :  { %1779 = vmatpush.bf16.msrb.mxu0 %v4103_v29  ;;  %1807 = vmatpush.bf16.msrb.mxu2 %v4107_v30  ;;  %v3915_v29 = vor.u32 %v5144_v20, %v3912_v39 }
  0xe7   :  { %1780 = vmatpush.bf16.msrb.mxu0 %v4071_v42  ;;  %1808 = vmatpush.bf16.msrb.mxu2 %v4075_v43  ;;  %v4390_v43 = vld [vmem:[#allocation4 + $0x3d0] sm:$0xf] }
  0xe8   :  { %v4391_v57 = vor.u32 %v5268_v44, %v4390_v43  ;;  %v4230_v44 = vld [vmem:[#allocation4 + $0x290] sm:$0xf] }
  0xeb   :  { %1781 = vmatpush.bf16.msrb.mxu0 %v4039_v50  ;;  %1809 = vmatpush.bf16.msrb.mxu2 %v4043_v51  ;;  %v4392_v50 = vld [vmem:[#allocation4 + $0x3f0] sm:$0xf0]  ;;  %v4078_v51 = vld [vmem:[#allocation4 + $0x158] sm:$0xf] }
  0xec   :  { %v4395_v59 = vor.u32 %v5264_v49, %v4392_v50  ;;  %v4079_v63 = vor.u32 %v5189_v52, %v4078_v51  ;;  %v5224_v49 = vld [vmem:[#allocation4 + $0x294] sm:$0xf]  ;;  %v3918_v51 = vld [vmem:[#allocation4 + $0x18] sm:$0xf] }
  0xed   :  { %v827_v60 = vpop.f32.mrf.mxu0  ;;  %v4232_v50 = vld [vmem:[#allocation4 + $0x2b0] sm:$0xf0]  ;;  %v5149_v52 = vld [vmem:[#allocation4 + $0x34] sm:$0xf0] }
  0xee   :  { %v841_v58 = vpop.f32.mrf.mxu1  ;;  %1730 = vmatmul.bf16.vlgmr.msra.gmra.mxu0 %v5664_v35  ;;  %1758 = vmatmul.bf16.vlgmr.msra.gmra.mxu2 %v5664_v35  ;;  %v828_v7 = vadd.f32 %v827_v60, %v814_v2  ;;  %v4358_v60 = vld [vmem:[#allocation4 + $0x390] sm:$0xf]  ;;  %v5181_v2 = vld [vmem:[#allocation4 + $0x134] sm:$0xf0] }
  0xef   :  { %1782 = vmatpush.bf16.msrb.mxu0 %v4007_v61  ;;  %1810 = vmatpush.bf16.msrb.mxu2 %v4011_v62  ;;  %v5260_v61 = vld [vmem:[#allocation4 + $0x3ac] sm:$0xf0] }
  0xf0   :  { %v842_v23 = vadd.f32 %v841_v58, %v828_v7  ;;  %v4046_v58 = vld [vmem:[#allocation4 + $0x118] sm:$0xf]  ;;  %v4326_v7 = vld [vmem:[#allocation4 + $0x350] sm:$0xf] }
  0xf1   :  { %v4047_v9 = vor.u32 %v5181_v2, %v4046_v58  ;;  %v4327_v17 = vor.u32 %v5252_v8, %v4326_v7  ;;  %v4166_v58 = vld [vmem:[#allocation4 + $0x210] sm:$0xf]  ;;  %v5265_v7 = vld [vmem:[#allocation4 + $0x3dc] sm:$0xf] }
  0xf2   :  { %v5212_v2 = vld [vmem:[#allocation4 + $0x22c] sm:$0xf0]  ;;  %v4400_v8 = vld [vmem:[#allocation4 + $0x3f8] sm:$0xf0] }
  0xf3   :  { %1783 = vmatpush.bf16.msrb.mxu0 %v3975_v4  ;;  %1811 = vmatpush.bf16.msrb.mxu2 %v3979_v5  ;;  %v4048_v4 = vld [vmem:[#allocation4 + $0x138] sm:$0xf0]  ;;  %v4359_v5 = vor.u32 %v5260_v61, %v4358_v60  ;;  %v3923_v60 = vor.u32 %v5145_v53, %v3920_v54  ;;  %v5220_v61 = vld [vmem:[#allocation4 + $0x26c] sm:$0xf0] }
  0xf4   :  { %v4051_v10 = vor.u32 %v5177_v3, %v4048_v4  ;;  %v5208_v3 = vld [vmem:[#allocation4 + $0x214] sm:$0xf]  ;;  %v4176_v53 = vld [vmem:[#allocation4 + $0x238] sm:$0xf0] }
  0xf5   :  { %v855_v12 = vpop.f32.mrf.mxu2  ;;  %v829_v15 = vpop.f32.mrf.mxu0  ;;  %v4168_v4 = vld [vmem:[#allocation4 + $0x230] sm:$0xf0] }
  0xf6   :  { %v869_v14 = vpop.f32.mrf.mxu3  ;;  %v830_v19 = vadd.f32 %v829_v15, %v816_v13  ;;  %v856_v26 = vadd.f32 %v855_v12, %v842_v23  ;;  %v843_v27 = vpop.f32.mrf.mxu1  ;;  %v5248_v12 = vld [vmem:[#allocation4 + $0x354] sm:$0xf]  ;;  %v5173_v15 = vld [vmem:[#allocation4 + $0xf4] sm:$0xf0]  ;;  %v4294_v23 = vld [vmem:[#allocation4 + $0x310] sm:$0xf] }
  0xf7   :  { %1784 = vmatpush.bf16.msrb.mxu0 %v3943_v11  ;;  %1812 = vmatpush.bf16.msrb.mxu2 %v3947_v16  ;;  %v4328_v13 = vld [vmem:[#allocation4 + $0x370] sm:$0xf0]  ;;  %v5169_v11 = vld [vmem:[#allocation4 + $0xdc] sm:$0xf] }
  0xf8   :  { %v844_v30 = vadd.f32 %v843_v27, %v830_v19  ;;  %v870_v40 = vadd.f32 %v869_v14, %v856_v26  ;;  %v4014_v14 = vld [vmem:[#allocation4 + $0xd8] sm:$0xf]  ;;  %v4016_v16 = vld [vmem:[#allocation4 + $0xf8] sm:$0xf0]  ;;  %v4331_v18 = vor.u32 %v5248_v12, %v4328_v13  ;;  %v5244_v19 = vld [vmem:[#allocation4 + $0x32c] sm:$0xf0]  ;;  %v4403_v13 = vor.u32 %v5265_v7, %v4400_v8 }
  0xf9   :  { %v4015_v20 = vor.u32 %v5173_v15, %v4014_v14  ;;  %v4019_v39 = vor.u32 %v5169_v11, %v4016_v16  ;;  %v5161_v26 = vld [vmem:[#allocation4 + $0x9c] sm:$0xf]  ;;  %v4366_v14 = vld [vmem:[#allocation4 + $0x398] sm:$0xf] }
  0xfa   :  { %v875_v55 = vmax.f32 %v870_v40, 0.0  ;;  %v3984_v27 = vld [vmem:[#allocation4 + $0xb8] sm:$0xf0]  ;;  %v5261_v15 = vld [vmem:[#allocation4 + $0x3b4] sm:$0xf0] }
  0xfb   :  { %1785 = vmatpush.bf16.msrb.mxu0 %v3911_v28  ;;  %1813 = vmatpush.bf16.msrb.mxu2 %v3915_v29  ;;  %v4295_v28 = vor.u32 %v5244_v19, %v4294_v23  ;;  %v4299_v29 = vor.u32 %v5240_v21, %v4296_v22  ;;  %v3987_v33 = vor.u32 %v5161_v26, %v3984_v27  ;;  %v5153_v40 = vld [vmem:[#allocation4 + $0x5c] sm:$0xf]  ;;  %v4334_v23 = vld [vmem:[#allocation4 + $0x358] sm:$0xf] }
  0xfc   :  { %v5257_v11 = vld [vmem:[#allocation4 + $0x39c] sm:$0xf]  ;;  %v5253_v19 = vld [vmem:[#allocation4 + $0x374] sm:$0xf0] }
  0xfd   :  { %v857_v34 = vpop.f32.mrf.mxu2  ;;  %v4368_v16 = vld [vmem:[#allocation4 + $0x3b8] sm:$0xf0]  ;;  %v4302_v22 = vld [vmem:[#allocation4 + $0x318] sm:$0xf] }
  0xfe   :  { %v858_v41 = vadd.f32 %v857_v34, %v844_v30  ;;  %v871_v42 = vpop.f32.mrf.mxu3  ;;  %1786 = vmatmul.bf16.vlgmr.msrb.gmra.mxu0 %v5664_v35  ;;  %1814 = vmatmul.bf16.vlgmr.msrb.gmra.mxu2 %v5664_v35  ;;  %v4262_v30 = vld [vmem:[#allocation4 + $0x2d0] sm:$0xf]  ;;  %v5232_v34 = vld [vmem:[#allocation4 + $0x2d4] sm:$0xf]  ;;  %v4304_v26 = vld [vmem:[#allocation4 + $0x338] sm:$0xf0] }
  0xff   :  { %1834 = vmatpush.bf16.msra.mxu0 %v4143_v31  ;;  %1862 = vmatpush.bf16.msra.mxu2 %v4147_v32  ;;  %v5236_v31 = vld [vmem:[#allocation4 + $0x2ec] sm:$0xf0]  ;;  %v3983_v32 = vor.u32 %v5165_v25, %v3982_v24  ;;  %v4267_v43 = vor.u32 %v5232_v34, %v4264_v36  ;;  %v5245_v24 = vld [vmem:[#allocation4 + $0x334] sm:$0xf0]  ;;  %v5241_v25 = vld [vmem:[#allocation4 + $0x31c] sm:$0xf] }
 0x100   :  { %v872_v45 = vadd.f32 %v871_v42, %v858_v41  ;;  %v3952_v41 = vld [vmem:[#allocation4 + $0x78] sm:$0xf0]  ;;  %v4263_v42 = vor.u32 %v5236_v31, %v4262_v30  ;;  %v4303_v27 = vor.u32 %v5245_v24, %v4302_v22  ;;  %v5237_v30 = vld [vmem:[#allocation4 + $0x2f4] sm:$0xf0] }
 0x101   :  { %v5233_v31 = vld [vmem:[#allocation4 + $0x2dc] sm:$0xf]  ;;  %v4238_v36 = vld [vmem:[#allocation4 + $0x298] sm:$0xf] }
 0x102   :  { %v877_v56 = vmax.f32 %v872_v45, 0.0  ;;  %v5228_v45 = vld [vmem:[#allocation4 + $0x2ac] sm:$0xf0] }
 0x103   :  { %1835 = vmatpush.bf16.msra.mxu0 %v4111_v46  ;;  %1863 = vmatpush.bf16.msra.mxu2 %v4115_v48  ;;  %v3951_v46 = vor.u32 %v5157_v38, %v3950_v37  ;;  %v3955_v48 = vor.u32 %v5153_v40, %v3952_v41  ;;  %v5229_v37 = vld [vmem:[#allocation4 + $0x2b4] sm:$0xf0]  ;;  %v5225_v38 = vld [vmem:[#allocation4 + $0x29c] sm:$0xf] }
 0x104   :  { %v5673_v62 = vpack.c.bf16 %v877_v56, %v875_v55  ;;  %v4231_v55 = vor.u32 %v5228_v45, %v4230_v44  ;;  %v4235_v56 = vor.u32 %v5224_v49, %v4232_v50  ;;  %v4240_v40 = vld [vmem:[#allocation4 + $0x2b8] sm:$0xf0]  ;;  %v4239_v41 = vor.u32 %v5229_v37, %v4238_v36  ;;  %v5221_v44 = vld [vmem:[#allocation4 + $0x274] sm:$0xf0] }
 0x105   :  { %v5217_v45 = vld [vmem:[#allocation4 + $0x25c] sm:$0xf]  ;;  %v4174_v50 = vld [vmem:[#allocation4 + $0x218] sm:$0xf] }
 0x106   :  { %1688 = vmatmul.bf16.vlgmr.msrb.gmra.mxu1 %v5673_v62  ;;  %1716 = vmatmul.bf16.vlgmr.msrb.gmra.mxu3 %v5673_v62 }
 0x107   :  { %1792 = vmatpush.bf16.msrb.mxu1 %v4391_v57  ;;  %1820 = vmatpush.bf16.msrb.mxu3 %v4395_v59  ;;  %v4198_v57 = vld [vmem:[#allocation4 + $0x250] sm:$0xf]  ;;  %v3919_v59 = vor.u32 %v5149_v52, %v3918_v51  ;;  %v5213_v51 = vld [vmem:[#allocation4 + $0x234] sm:$0xf0]  ;;  %v5209_v52 = vld [vmem:[#allocation4 + $0x21c] sm:$0xf] }
 0x108   :  { %1836 = vmatpush.bf16.msra.mxu0 %v4079_v63  ;;  %1864 = vmatpush.bf16.msra.mxu2 %v4083_v0  ;;  %v5216_v63 = vld [vmem:[#allocation4 + $0x254] sm:$0xf]  ;;  %v4199_v1 = vor.u32 %v5220_v61, %v4198_v57  ;;  %v4175_v54 = vor.u32 %v5213_v51, %v4174_v50  ;;  %v5688_v57 = vld [vmem:[%s5911_s5] sm:$0xff] }
 0x109   :  { %v4200_v0 = vld [vmem:[#allocation4 + $0x270] sm:$0xf0]  ;;  %v4646_v50 = vld [vmem:[#allocation6 + $0x1c0] sm:$0xf] }
 0x10a   :  { %v4203_v47 = vor.u32 %v5216_v63, %v4200_v0  ;;  %v5330_v51 = vld [vmem:[#allocation6 + $0x1dc] sm:$0xf0] }
 0x10b   :  { %1793 = vmatpush.bf16.msrb.mxu1 %v4359_v5  ;;  %1821 = vmatpush.bf16.msrb.mxu3 %v4363_v6  ;;  %v4398_v5 = vld [vmem:[#allocation4 + $0x3d8] sm:$0xf] }
 0x10c   :  { %1837 = vmatpush.bf16.msra.mxu0 %v4047_v9  ;;  %1865 = vmatpush.bf16.msra.mxu2 %v4051_v10  ;;  %v5269_v6 = vld [vmem:[#allocation4 + $0x3f4] sm:$0xf0]  ;;  %v4167_v9 = vor.u32 %v5212_v2, %v4166_v58  ;;  %v4171_v10 = vor.u32 %v5208_v3, %v4168_v4 }
 0x10d   :  { %v4399_v12 = vor.u32 %v5269_v6, %v4398_v5  ;;  %v1011_v5 = vperm.slane %v5688_v57, 1 }
 0x10f   :  { %1794 = vmatpush.bf16.msrb.mxu1 %v4327_v17  ;;  %1822 = vmatpush.bf16.msrb.mxu3 %v4331_v18  ;;  %v4367_v17 = vor.u32 %v5261_v15, %v4366_v14  ;;  %v4371_v18 = vor.u32 %v5257_v11, %v4368_v16 }
 0x110   :  { %1838 = vmatpush.bf16.msra.mxu0 %v4015_v20  ;;  %1866 = vmatpush.bf16.msra.mxu2 %v4019_v39  ;;  %v5249_v20 = vld [vmem:[#allocation4 + $0x35c] sm:$0xf] }
 0x111   :  { %v4336_v39 = vld [vmem:[#allocation4 + $0x378] sm:$0xf0] }
 0x112   :  { %v4339_v21 = vor.u32 %v5249_v20, %v4336_v39  ;;  %v1890_v39 = vld [vmem:[%s5907_s1] sm:$0xff] }
 0x113   :  { %1795 = vmatpush.bf16.msrb.mxu1 %v4295_v28  ;;  %1823 = vmatpush.bf16.msrb.mxu3 %v4299_v29  ;;  %v4307_v28 = vor.u32 %v5241_v25, %v4304_v26  ;;  %v4270_v29 = vld [vmem:[#allocation4 + $0x2d8] sm:$0xf] }
 0x114   :  { %1839 = vmatpush.bf16.msra.mxu0 %v3983_v32  ;;  %1867 = vmatpush.bf16.msra.mxu2 %v3987_v33  ;;  %v4272_v32 = vld [vmem:[#allocation4 + $0x2f8] sm:$0xf0]  ;;  %v4271_v33 = vor.u32 %v5237_v30, %v4270_v29  ;;  %v1014_v30 = vperm.slane %v5688_v57, 4 }
 0x115   :  { %v4275_v34 = vor.u32 %v5233_v31, %v4272_v32 }
 0x116   :  { %1744 = vmatmul.bf16.vlgmr.msra.gmra.mxu1 %v5673_v62  ;;  %1772 = vmatmul.bf16.vlgmr.msra.gmra.mxu3 %v5673_v62 }
 0x117   :  { %1796 = vmatpush.bf16.msrb.mxu1 %v4263_v42  ;;  %1824 = vmatpush.bf16.msrb.mxu3 %v4267_v43  ;;  %v4243_v42 = vor.u32 %v5225_v38, %v4240_v40  ;;  %v4206_v43 = vld [vmem:[#allocation4 + $0x258] sm:$0xf]  ;;  %v1015_v38 = vperm.slane %v5688_v57, 5 }
 0x118   :  { %1840 = vmatpush.bf16.msra.mxu0 %v3951_v46  ;;  %1868 = vmatpush.bf16.msra.mxu2 %v3955_v48  ;;  %v4208_v46 = vld [vmem:[#allocation4 + $0x278] sm:$0xf0]  ;;  %v4207_v48 = vor.u32 %v5221_v44, %v4206_v43 }
 0x119   :  { %v4211_v49 = vor.u32 %v5217_v45, %v4208_v46 }
 0x11b   :  { %1797 = vmatpush.bf16.msrb.mxu1 %v4231_v55  ;;  %1825 = vmatpush.bf16.msrb.mxu3 %v4235_v56  ;;  %v4179_v55 = vor.u32 %v5209_v52, %v4176_v53  ;;  %v4647_v52 = vor.u32 %v5330_v51, %v4646_v50  ;;  %v4614_v53 = vld [vmem:[#allocation6 + $0x180] sm:$0xf]  ;;  %v5374_v50 = vld [vmem:[#allocation6 + $0x344] sm:$0xf] }
 0x11c   :  { %1841 = vmatpush.bf16.msra.mxu0 %v3919_v59  ;;  %1869 = vmatpush.bf16.msra.mxu2 %v3923_v60  ;;  %v1010_v60 = vperm.slane %v5688_v57, 0  ;;  %v4840_v51 = vld [vmem:[#allocation6 + $0x360] sm:$0xf0] }
 0x11f   :  { %1798 = vmatpush.bf16.msrb.mxu1 %v4199_v1  ;;  %1826 = vmatpush.bf16.msrb.mxu3 %v4203_v47 }
 0x120   :  { %1842 = vmatmul.bf16.vlgmr.msra.gmra.mxu0 %v5664_v35  ;;  %1870 = vmatmul.bf16.vlgmr.msra.gmra.mxu2 %v5664_v35  ;;  %v4335_v35 = vor.u32 %v5253_v19, %v4334_v23  ;;  %v1013_v19 = vperm.slane %v5688_v57, 3 }
 0x123   :  { %1799 = vmatpush.bf16.msrb.mxu1 %v4167_v9  ;;  %1827 = vmatpush.bf16.msrb.mxu3 %v4171_v10 }
 0x126   :  { %1800 = vmatmul.bf16.vlgmr.msrb.gmra.mxu1 %v5673_v62  ;;  %1828 = vmatmul.bf16.vlgmr.msrb.gmra.mxu3 %v5673_v62 }
 0x127   :  { %1848 = vmatpush.bf16.msra.mxu1 %v4399_v12  ;;  %1876 = vmatpush.bf16.msra.mxu3 %v4403_v13  ;;  %v1012_v13 = vperm.slane %v5688_v57, 2 }
 0x12b   :  { %1849 = vmatpush.bf16.msra.mxu1 %v4367_v17  ;;  %1877 = vmatpush.bf16.msra.mxu3 %v4371_v18 }
 0x12f   :  { %1850 = vmatpush.bf16.msra.mxu1 %v4335_v35  ;;  %1878 = vmatpush.bf16.msra.mxu3 %v4339_v21 }
 0x133   :  { %1851 = vmatpush.bf16.msra.mxu1 %v4303_v27  ;;  %1879 = vmatpush.bf16.msra.mxu3 %v4307_v28  ;;  %v1891_v28 = vld [vmem:[%s5907_s1 + $0x8] sm:$0xff] }
 0x137   :  { %1852 = vmatpush.bf16.msra.mxu1 %v4271_v33  ;;  %1880 = vmatpush.bf16.msra.mxu3 %v4275_v34 }
 0x13b   :  { %1853 = vmatpush.bf16.msra.mxu1 %v4239_v41  ;;  %1881 = vmatpush.bf16.msra.mxu3 %v4243_v42  ;;  %v4408_v41 = vld [vmem:[%s5907_s1 + $0x10] sm:$0xff] }
 0x13f   :  { %1854 = vmatpush.bf16.msra.mxu1 %v4207_v48  ;;  %1882 = vmatpush.bf16.msra.mxu3 %v4211_v49  ;;  %v4409_v48 = vld [vmem:[%s5907_s1 + $0x18] sm:$0xff] }
 0x143   :  { %1855 = vmatpush.bf16.msra.mxu1 %v4175_v54  ;;  %1883 = vmatpush.bf16.msra.mxu3 %v4179_v55  ;;  %v5322_v54 = vld [vmem:[#allocation6 + $0x19c] sm:$0xf0] }
 0x144   :  { %v4902_v55 = vld [vmem:[#allocation6 + $0x3c0] sm:$0xf] }
 0x146   :  { %1856 = vmatmul.bf16.vlgmr.msra.gmra.mxu1 %v5673_v62  ;;  %1884 = vmatmul.bf16.vlgmr.msra.gmra.mxu3 %v5673_v62 }
 0x15b   :  { %v1675_v56 = vpop.f32.mrf.mxu0 }
 0x15c   :  { %v1676_v63 = vadd.f32 %v1675_v56, %v1010_v60  ;;  %v4615_v56 = vor.u32 %v5322_v54, %v4614_v53  ;;  %v4843_v53 = vor.u32 %v5374_v50, %v4840_v51  ;;  %v4518_v54 = vld [vmem:[#allocation6 + $0xc0] sm:$0xf]  ;;  %v4622_v51 = vld [vmem:[#allocation6 + $0x188] sm:$0xf] }
 0x161   :  { %v5690_v59 = vpop.f32.mrf.mxu2 }
 0x163   :  { %v1677_v61 = vpop.f32.mrf.mxu0 }
 0x164   :  { %v1678_v62 = vadd.f32 %v1677_v61, %v1010_v60  ;;  %v5394_v60 = vld [vmem:[#allocation6 + $0x3dc] sm:$0xf0] }
 0x169   :  { %v1705_v47 = vpop.f32.mrf.mxu2 }
 0x16a   :  { %v1706_v7 = vadd.f32 %v1705_v47, %v1011_v5 }
 0x16b   :  { %v1731_v58 = vpop.f32.mrf.mxu0 }
 0x16c   :  { %v1732_v17 = vadd.f32 %v1731_v58, %v1012_v13  ;;  %v1016_v58 = vperm.slane %v5688_v57, 6 }
 0x171   :  { %v1759_v6 = vpop.f32.mrf.mxu2 }
 0x172   :  { %v1760_v22 = vadd.f32 %v1759_v6, %v1013_v19 }
 0x173   :  { %v1733_v10 = vpop.f32.mrf.mxu0 }
 0x174   :  { %v1734_v11 = vadd.f32 %v1733_v10, %v1012_v13 }
 0x179   :  { %v1761_v14 = vpop.f32.mrf.mxu2 }
 0x17a   :  { %v1762_v35 = vadd.f32 %v1761_v14, %v1013_v19  ;;  %v1017_v14 = vperm.slane %v5688_v57, 7 }
 0x17b   :  { %v1787_v23 = vpop.f32.mrf.mxu0 }
 0x17c   :  { %v1788_v34 = vadd.f32 %v1787_v23, %v1014_v30 }
 0x181   :  { %v1815_v25 = vpop.f32.mrf.mxu2 }
 0x182   :  { %v1816_v44 = vadd.f32 %v1815_v25, %v1015_v38 }
 0x183   :  { %v1689_v0 = vpop.f32.mrf.mxu1  ;;  %v1789_v29 = vpop.f32.mrf.mxu0 }
 0x184   :  { %v5693_v1 = vadd.f32 %v1689_v0, %v1676_v63  ;;  %v1790_v32 = vadd.f32 %v1789_v29, %v1014_v30  ;;  %v4903_v0 = vor.u32 %v5394_v60, %v4902_v55  ;;  %v5310_v29 = vld [vmem:[#allocation6 + $0x144] sm:$0xf]  ;;  %v5298_v55 = vld [vmem:[#allocation6 + $0xdc] sm:$0xf0] }
 0x185   :  { %v4519_v60 = vor.u32 %v5298_v55, %v4518_v54  ;;  %v4624_v55 = vld [vmem:[#allocation6 + $0x1a8] sm:$0xf0] }
 0x189   :  { %v5695_v2 = vpop.f32.mrf.mxu3  ;;  %v1817_v37 = vpop.f32.mrf.mxu2 }
 0x18a   :  { %v1818_v42 = vadd.f32 %v1817_v37, %v1015_v38  ;;  %v4872_v38 = vld [vmem:[#allocation6 + $0x3a0] sm:$0xf0] }
 0x18b   :  { %v1691_v3 = vpop.f32.mrf.mxu1 }
 0x18c   :  { %v5697_v4 = vadd.f32 %v1691_v3, %v1678_v62 }
 0x191   :  { %v1719_v8 = vpop.f32.mrf.mxu3 }
 0x192   :  { %v5702_v9 = vadd.f32 %v1719_v8, %v1706_v7  ;;  %v5326_v7 = vld [vmem:[#allocation6 + $0x1c4] sm:$0xf] }
 0x193   :  { %v1745_v12 = vpop.f32.mrf.mxu1  ;;  %v4648_v8 = vld [vmem:[#allocation6 + $0x1e0] sm:$0xf0] }
 0x194   :  { %v1746_v20 = vadd.f32 %v1745_v12, %v1732_v17  ;;  %v5318_v17 = vld [vmem:[#allocation6 + $0x184] sm:$0xf] }
 0x199   :  { %v1773_v15 = vpop.f32.mrf.mxu3 }
 0x19a   :  { %v1774_v27 = vadd.f32 %v1773_v15, %v1760_v22 }
 0x19b   :  { %v1747_v16 = vpop.f32.mrf.mxu1 }
 0x19c   :  { %v1748_v18 = vadd.f32 %v1747_v16, %v1734_v11  ;;  %v4414_v11 = vld [vmem:[%s5907_s1 + $0x20] sm:$0xff]  ;;  %v4651_v16 = vor.u32 %v5326_v7, %v4648_v8 }
 0x19d   :  { %v1843_v49 = vpop.f32.mrf.mxu0  ;;  %v5290_v7 = vld [vmem:[#allocation6 + $0x9c] sm:$0xf0] }
 0x19e   :  { %1913 = vmatpush.msrb.mxu3 %v1748_v18  ;;  %v1844_v10 = vadd.f32 %v1843_v49, %v1016_v58  ;;  %v4616_v18 = vld [vmem:[#allocation6 + $0x1a0] sm:$0xf0]  ;;  %v5378_v49 = vld [vmem:[#allocation6 + $0x35c] sm:$0xf0] }
 0x19f   :  { %v4619_v22 = vor.u32 %v5318_v17, %v4616_v18  ;;  %v4776_v17 = vld [vmem:[#allocation6 + $0x2e0] sm:$0xf0] }
 0x1a0   :  { %1914 = vmatpush.msrb.mxu3 %v1746_v20  ;;  %v5390_v20 = vld [vmem:[#allocation6 + $0x3c4] sm:$0xf] }
 0x1a1   :  { %v1775_v21 = vpop.f32.mrf.mxu3  ;;  %4404 = vmatmul.msk.f32.vlgmr.msrb.gmra.mxu3 %vm1892_vm0, %v1890_v39 }
 0x1a2   :  { %v1776_v24 = vadd.f32 %v1775_v21, %v1762_v35 }
 0x1a3   :  { %v1801_v26 = vpop.f32.mrf.mxu1  ;;  %v1871_v61 = vpop.f32.mrf.mxu2 }
 0x1a4   :  { %1936 = vmatpush.msrb.mxu0 %v1776_v24  ;;  %5422 = vmatpush.msrb.mxu1 %v1776_v24  ;;  %v1802_v40 = vadd.f32 %v1801_v26, %v1788_v34  ;;  %v1872_v35 = vadd.f32 %v1871_v61, %v1017_v14  ;;  %v4415_v26 = vld [vmem:[%s5907_s1 + $0x28] sm:$0xff]  ;;  %v5386_v34 = vld [vmem:[#allocation6 + $0x39c] sm:$0xf0]  ;;  %v4520_v61 = vld [vmem:[#allocation6 + $0xe0] sm:$0xf0] }
 0x1a5   :  { %v1845_v47 = vpop.f32.mrf.mxu0 }
 0x1a6   :  { %1937 = vmatpush.msrb.mxu0 %v1774_v27  ;;  %5423 = vmatpush.msrb.mxu1 %v1774_v27  ;;  %v1846_v3 = vadd.f32 %v1845_v47, %v1016_v58  ;;  %v4582_v27 = vld [vmem:[#allocation6 + $0x140] sm:$0xf]  ;;  %v5366_v58 = vld [vmem:[#allocation6 + $0x304] sm:$0xf] }
 0x1a7   :  { %4406 = vmatmul.msk.f32.vlgmr.msrb.gmra.mxu0 %vm1892_vm0, %v1890_v39  ;;  %4407 = vmatmul.msk.f32.vlgmr.msrb.gmra.mxu1 %vm1892_vm0, %v1891_v28  ;;  %v4904_v39 = vld [vmem:[#allocation6 + $0x3e0] sm:$0xf0]  ;;  %v5370_v47 = vld [vmem:[#allocation6 + $0x31c] sm:$0xf0] }
 0x1a8   :  { %v4907_v25 = vor.u32 %v5390_v20, %v4904_v39  ;;  %v5282_v20 = vld [vmem:[#allocation6 + $0x5c] sm:$0xf0]  ;;  %v5278_v39 = vld [vmem:[#allocation6 + $0x44] sm:$0xf] }
 0x1a9   :  { %v1829_v31 = vpop.f32.mrf.mxu3  ;;  %4405 = vmatmul.msk.f32.gmra.mxu3 %vm1892_vm0, %v1891_v28  ;;  %v5314_v28 = vld [vmem:[#allocation6 + $0x15c] sm:$0xf0] }
 0x1aa   :  { %v1830_v46 = vadd.f32 %v1829_v31, %v1816_v44  ;;  %v4583_v30 = vor.u32 %v5314_v28, %v4582_v27  ;;  %v4584_v31 = vld [vmem:[#allocation6 + $0x160] sm:$0xf0] }
 0x1ab   :  { %v1803_v33 = vpop.f32.mrf.mxu1  ;;  %v1873_v13 = vpop.f32.mrf.mxu2  ;;  %v5302_v44 = vld [vmem:[#allocation6 + $0x104] sm:$0xf] }
 0x1ac   :  { %v1804_v36 = vadd.f32 %v1803_v33, %v1790_v32  ;;  %v1874_v23 = vadd.f32 %v1873_v13, %v1017_v14  ;;  %v4587_v32 = vor.u32 %v5310_v29, %v4584_v31  ;;  %v4870_v33 = vld [vmem:[#allocation6 + $0x380] sm:$0xf]  ;;  %v4488_v13 = vld [vmem:[#allocation6 + $0xa0] sm:$0xf0] }
 0x1ad   :  { %v4871_v37 = vor.u32 %v5386_v34, %v4870_v33  ;;  %v4774_v14 = vld [vmem:[#allocation6 + $0x2c0] sm:$0xf]  ;;  %v4744_v28 = vld [vmem:[#allocation6 + $0x2a0] sm:$0xf0] }
 0x1ae   :  { %1972 = vmatpush.msrb.mxu2 %v1804_v36  ;;  %v5382_v36 = vld [vmem:[#allocation6 + $0x384] sm:$0xf]  ;;  %v4422_v29 = vld [vmem:[#allocation6] sm:$0xf] }
 0x1af   :  { %v5270_v33 = vld [vmem:[#allocation6 + $0x4] sm:$0xf] }
 0x1b0   :  { %1973 = vmatpush.msrb.mxu2 %v1802_v40  ;;  %v4550_v40 = vld [vmem:[#allocation6 + $0x100] sm:$0xf]  ;;  %v4424_v34 = vld [vmem:[#allocation6 + $0x20] sm:$0xf0] }
 0x1b1   :  { %v1831_v43 = vpop.f32.mrf.mxu3  ;;  %4410 = vmatmul.msk.f32.vlgmr.msrb.gmra.mxu2 %vm1892_vm0, %v4408_v41 }
 0x1b2   :  { %v1832_v45 = vadd.f32 %v1831_v43, %v1818_v42  ;;  %2855 = vmatpush.bf16.msra.mxu2 %v4647_v52  ;;  %v4875_v42 = vor.u32 %v5382_v36, %v4872_v38  ;;  %v4427_v36 = vor.u32 %v5270_v33, %v4424_v34  ;;  %v5331_v38 = vld [vmem:[#allocation6 + $0x1e4] sm:$0xf0] }
 0x1b3   :  { %v4526_v33 = vld [vmem:[#allocation6 + $0xc8] sm:$0xf] }
 0x1b4   :  { %1995 = vmatpush.msra.mxu3 %v1832_v45  ;;  %v4552_v45 = vld [vmem:[#allocation6 + $0x120] sm:$0xf0]  ;;  %v5299_v34 = vld [vmem:[#allocation6 + $0xe4] sm:$0xf0] }
 0x1b6   :  { %1996 = vmatpush.msra.mxu3 %v1830_v46  ;;  %2856 = vmatpush.bf16.msra.mxu2 %v4615_v56  ;;  %v4838_v46 = vld [vmem:[#allocation6 + $0x340] sm:$0xf]  ;;  %v5294_v56 = vld [vmem:[#allocation6 + $0xc4] sm:$0xf] }
 0x1b7   :  { %4412 = vmatmul.msk.f32.vlgmr.msra.gmra.mxu3 %vm1892_vm0, %v4408_v41  ;;  %v5306_v41 = vld [vmem:[#allocation6 + $0x11c] sm:$0xf0]  ;;  %v4839_v52 = vor.u32 %v5378_v49, %v4838_v46  ;;  %v4712_v49 = vld [vmem:[#allocation6 + $0x260] sm:$0xf0] }
 0x1b8   :  { %2869 = vmatpush.bf16.msrb.mxu3 %v4903_v0  ;;  %v4551_v43 = vor.u32 %v5306_v41, %v4550_v40  ;;  %v4806_v0 = vld [vmem:[#allocation6 + $0x300] sm:$0xf]  ;;  %v5327_v40 = vld [vmem:[#allocation6 + $0x1cc] sm:$0xf] }
 0x1b9   :  { %4411 = vmatmul.msk.f32.gmra.mxu2 %vm1892_vm0, %v4409_v48 }
 0x1ba   :  { %2857 = vmatpush.bf16.msra.mxu2 %v4583_v30  ;;  %v5274_v30 = vld [vmem:[#allocation6 + $0x1c] sm:$0xf0] }
 0x1bc   :  { %2870 = vmatpush.bf16.msrb.mxu3 %v4871_v37  ;;  %v4654_v37 = vld [vmem:[#allocation6 + $0x1c8] sm:$0xf] }
 0x1bd   :  { %v4655_v41 = vor.u32 %v5331_v38, %v4654_v37  ;;  %v4527_v37 = vor.u32 %v5299_v34, %v4526_v33  ;;  %v4528_v38 = vld [vmem:[#allocation6 + $0xe8] sm:$0xf0] }
 0x1be   :  { %2858 = vmatpush.bf16.msra.mxu2 %v4551_v43  ;;  %v4710_v43 = vld [vmem:[#allocation6 + $0x240] sm:$0xf] }
 0x1bf   :  { %4413 = vmatmul.msk.f32.gmra.mxu3 %vm1892_vm0, %v4409_v48  ;;  %v4555_v48 = vor.u32 %v5302_v44, %v4552_v45  ;;  %v5346_v44 = vld [vmem:[#allocation6 + $0x25c] sm:$0xf0] }
 0x1c0   :  { %2871 = vmatpush.bf16.msrb.mxu3 %v4839_v52  ;;  %v4711_v46 = vor.u32 %v5346_v44, %v4710_v43  ;;  %v5323_v52 = vld [vmem:[#allocation6 + $0x1a4] sm:$0xf0]  ;;  %v5367_v43 = vld [vmem:[#allocation6 + $0x30c] sm:$0xf] }
 0x1c1   :  { %v4623_v54 = vor.u32 %v5323_v52, %v4622_v51  ;;  %v4496_v52 = vld [vmem:[#allocation6 + $0xa8] sm:$0xf0] }
 0x1c2   :  { %2859 = vmatpush.bf16.msra.mxu2 %v4519_v60  ;;  %v5338_v60 = vld [vmem:[#allocation6 + $0x21c] sm:$0xf0] }
 0x1c3   :  { %v1857_v63 = vpop.f32.mrf.mxu1 }
 0x1c4   :  { %v1858_v15 = vadd.f32 %v1857_v63, %v1844_v10  ;;  %v4523_v63 = vor.u32 %v5294_v56, %v4520_v61  ;;  %v4678_v56 = vld [vmem:[#allocation6 + $0x200] sm:$0xf] }
 0x1c9   :  { %v1885_v62 = vpop.f32.mrf.mxu3 }
 0x1ca   :  { %v1886_v24 = vadd.f32 %v1885_v62, %v1872_v35  ;;  %v4807_v62 = vor.u32 %v5370_v47, %v4806_v0  ;;  %v5334_v0 = vld [vmem:[#allocation6 + $0x204] sm:$0xf] }
 0x1cb   :  { %v1859_v6 = vpop.f32.mrf.mxu1  ;;  %v4680_v47 = vld [vmem:[#allocation6 + $0x220] sm:$0xf0] }
 0x1cc   :  { %v1860_v12 = vadd.f32 %v1859_v6, %v1846_v3  ;;  %v4808_v3 = vld [vmem:[#allocation6 + $0x320] sm:$0xf0]  ;;  %v4486_v6 = vld [vmem:[#allocation6 + $0x80] sm:$0xf]  ;;  %2872 = vmatpush.bf16.msrb.mxu3 %v4807_v62  ;;  %v4683_v62 = vor.u32 %v5334_v0, %v4680_v47  ;;  %v4462_v0 = vld [vmem:[#allocation6 + $0x48] sm:$0xf] }
 0x1cd   :  { %v4811_v8 = vor.u32 %v5366_v58, %v4808_v3  ;;  %v4487_v10 = vor.u32 %v5290_v7, %v4486_v6  ;;  %v4910_v58 = vld [vmem:[#allocation6 + $0x3c8] sm:$0xf]  ;;  %v5391_v6 = vld [vmem:[#allocation6 + $0x3cc] sm:$0xf] }
 0x1ce   :  { %2031 = vmatpush.msra.mxu0 %v1860_v12  ;;  %v5286_v12 = vld [vmem:[#allocation6 + $0x84] sm:$0xf]  ;;  %v5395_v3 = vld [vmem:[#allocation6 + $0x3e4] sm:$0xf0]  ;;  %v4912_v7 = vld [vmem:[#allocation6 + $0x3e8] sm:$0xf0] }
 0x1cf   :  { %2860 = vmatpush.bf16.msra.mxu2 %v4487_v10  ;;  %v4915_v10 = vor.u32 %v5391_v6, %v4912_v7  ;;  %v5283_v47 = vld [vmem:[#allocation6 + $0x64] sm:$0xf0] }
 0x1d0   :  { %2032 = vmatpush.msra.mxu0 %v1858_v15  ;;  %v4491_v15 = vor.u32 %v5286_v12, %v4488_v13  ;;  %v4590_v12 = vld [vmem:[#allocation6 + $0x148] sm:$0xf] }
 0x1d1   :  { %v1887_v19 = vpop.f32.mrf.mxu3  ;;  %4416 = vmatmul.msk.f32.vlgmr.msra.gmra.mxu0 %vm1892_vm0, %v4414_v11  ;;  %v5315_v13 = vld [vmem:[#allocation6 + $0x164] sm:$0xf0] }
 0x1d2   :  { %v1888_v21 = vadd.f32 %v1887_v19, %v1874_v23  ;;  %2883 = vmatpush.bf16.msrb.mxu0 %v4651_v16  ;;  %v5358_v16 = vld [vmem:[#allocation6 + $0x2c4] sm:$0xf]  ;;  %v4454_v19 = vld [vmem:[#allocation6 + $0x40] sm:$0xf]  ;;  %v4750_v7 = vld [vmem:[#allocation6 + $0x288] sm:$0xf] }
 0x1d3   :  { %v4779_v23 = vor.u32 %v5358_v16, %v4776_v17  ;;  %v4455_v35 = vor.u32 %v5282_v20, %v4454_v19  ;;  %v4878_v17 = vld [vmem:[#allocation6 + $0x388] sm:$0xf]  ;;  %v4880_v20 = vld [vmem:[#allocation6 + $0x3a8] sm:$0xf0] }
 0x1d4   :  { %2054 = vmatpush.msra.mxu1 %v1888_v21  ;;  %v4456_v21 = vld [vmem:[#allocation6 + $0x60] sm:$0xf0] }
 0x1d5   :  { %2861 = vmatpush.bf16.msra.mxu2 %v4455_v35  ;;  %v5307_v35 = vld [vmem:[#allocation6 + $0x124] sm:$0xf0] }
 0x1d6   :  { %2055 = vmatpush.msra.mxu1 %v1886_v24  ;;  %2884 = vmatpush.bf16.msrb.mxu0 %v4619_v22  ;;  %v4459_v22 = vor.u32 %v5278_v39, %v4456_v21  ;;  %v4742_v24 = vld [vmem:[#allocation6 + $0x280] sm:$0xf]  ;;  %v4558_v39 = vld [vmem:[#allocation6 + $0x108] sm:$0xf] }
 0x1d7   :  { %4418 = vmatmul.msk.f32.vlgmr.msra.gmra.mxu1 %vm1892_vm0, %v4414_v11  ;;  %v5362_v11 = vld [vmem:[#allocation6 + $0x2dc] sm:$0xf0] }
 0x1d8   :  { %2897 = vmatpush.bf16.msrb.mxu1 %v4907_v25  ;;  %v4775_v18 = vor.u32 %v5362_v11, %v4774_v14  ;;  %v5354_v25 = vld [vmem:[#allocation6 + $0x29c] sm:$0xf0]  ;;  %v5311_v14 = vld [vmem:[#allocation6 + $0x14c] sm:$0xf] }
 0x1d9   :  { %4417 = vmatmul.msk.f32.gmra.mxu0 %vm1892_vm0, %v4415_v26  ;;  %v4743_v27 = vor.u32 %v5354_v25, %v4742_v24  ;;  %v4592_v11 = vld [vmem:[#allocation6 + $0x168] sm:$0xf0] }
 0x1da   :  { %2885 = vmatpush.bf16.msrb.mxu0 %v4587_v32  ;;  %2873 = vmatpush.bf16.msrb.mxu3 %v4775_v18  ;;  %v4423_v32 = vor.u32 %v5274_v30, %v4422_v29  ;;  %v4595_v16 = vor.u32 %v5311_v14, %v4592_v11  ;;  %v5387_v18 = vld [vmem:[#allocation6 + $0x3a4] sm:$0xf0]  ;;  %v5303_v24 = vld [vmem:[#allocation6 + $0x10c] sm:$0xf] }
 0x1db   :  { %v4879_v19 = vor.u32 %v5387_v18, %v4878_v17  ;;  %v4560_v25 = vld [vmem:[#allocation6 + $0x128] sm:$0xf0]  ;;  %v5275_v11 = vld [vmem:[#allocation6 + $0x24] sm:$0xf0] }
 0x1dc   :  { %2898 = vmatpush.bf16.msrb.mxu1 %v4875_v42  ;;  %v4656_v42 = vld [vmem:[#allocation6 + $0x1e8] sm:$0xf0]  ;;  %2862 = vmatpush.bf16.msra.mxu2 %v4423_v32 }
 0x1dd   :  { %v4659_v45 = vor.u32 %v5327_v40, %v4656_v42  ;;  %v5375_v29 = vld [vmem:[#allocation6 + $0x34c] sm:$0xf]  ;;  %v5371_v42 = vld [vmem:[#allocation6 + $0x324] sm:$0xf0] }
 0x1de   :  { %2886 = vmatpush.bf16.msrb.mxu0 %v4555_v48  ;;  %2874 = vmatpush.bf16.msrb.mxu3 %v4743_v27  ;;  %v5342_v48 = vld [vmem:[#allocation6 + $0x244] sm:$0xf]  ;;  %v4563_v27 = vor.u32 %v5303_v24, %v4560_v25  ;;  %v4848_v30 = vld [vmem:[#allocation6 + $0x368] sm:$0xf0]  ;;  %v4686_v25 = vld [vmem:[#allocation6 + $0x208] sm:$0xf] }
 0x1df   :  { %4419 = vmatmul.msk.f32.gmra.mxu1 %vm1892_vm0, %v4415_v26  ;;  %v5350_v26 = vld [vmem:[#allocation6 + $0x284] sm:$0xf]  ;;  %v4715_v50 = vor.u32 %v5342_v48, %v4712_v49  ;;  %v4851_v32 = vor.u32 %v5375_v29, %v4848_v30  ;;  %v4494_v48 = vld [vmem:[#allocation6 + $0x88] sm:$0xf]  ;;  %v4432_v18 = vld [vmem:[#allocation6 + $0x28] sm:$0xf0] }
 0x1e0   :  { %2899 = vmatpush.bf16.msrb.mxu1 %v4843_v53  ;;  %v4747_v31 = vor.u32 %v5350_v26, %v4744_v28  ;;  %2911 = vmatpush.bf16.msrb.mxu2 %v4655_v41  ;;  %v5319_v53 = vld [vmem:[#allocation6 + $0x18c] sm:$0xf]  ;;  %v4846_v26 = vld [vmem:[#allocation6 + $0x348] sm:$0xf] }
 0x1e1   :  { %v4627_v61 = vor.u32 %v5319_v53, %v4624_v55  ;;  %v5379_v28 = vld [vmem:[#allocation6 + $0x364] sm:$0xf0]  ;;  %v4688_v29 = vld [vmem:[#allocation6 + $0x228] sm:$0xf0] }
 0x1e2   :  { %2887 = vmatpush.bf16.msrb.mxu0 %v4523_v63  ;;  %2875 = vmatpush.bf16.msrb.mxu3 %v4711_v46  ;;  %v4679_v63 = vor.u32 %v5338_v60, %v4678_v56  ;;  %v4814_v41 = vld [vmem:[#allocation6 + $0x308] sm:$0xf]  ;;  %v5359_v56 = vld [vmem:[#allocation6 + $0x2cc] sm:$0xf] }
 0x1e3   :  { %v4815_v44 = vor.u32 %v5371_v42, %v4814_v41  ;;  %v5291_v49 = vld [vmem:[#allocation6 + $0xa4] sm:$0xf0] }
 0x1e4   :  { %2900 = vmatpush.bf16.msrb.mxu1 %v4811_v8  ;;  %2912 = vmatpush.bf16.msrb.mxu2 %v4623_v54  ;;  %v4911_v8 = vor.u32 %v5395_v3, %v4910_v58  ;;  %v4495_v51 = vor.u32 %v5291_v49, %v4494_v48  ;;  %v4782_v54 = vld [vmem:[#allocation6 + $0x2c8] sm:$0xf]  ;;  %v5279_v58 = vld [vmem:[#allocation6 + $0x4c] sm:$0xf]  ;;  %v5332_v48 = vld [vmem:[#allocation6 + $0x1ec] sm:$0xf0] }
 0x1e5   :  { %v5363_v55 = vld [vmem:[#allocation6 + $0x2e4] sm:$0xf0]  ;;  %v4464_v3 = vld [vmem:[#allocation6 + $0x68] sm:$0xf0]  ;;  %v5328_v49 = vld [vmem:[#allocation6 + $0x1d4] sm:$0xf] }
 0x1e6   :  { %2888 = vmatpush.bf16.msrb.mxu0 %v4491_v15  ;;  %2876 = vmatpush.bf16.msrb.mxu3 %v4679_v63  ;;  %v4591_v15 = vor.u32 %v5315_v13, %v4590_v12  ;;  %v4783_v60 = vor.u32 %v5363_v55, %v4782_v54  ;;  %v4467_v6 = vor.u32 %v5279_v58, %v4464_v3  ;;  %v4752_v13 = vld [vmem:[#allocation6 + $0x2a8] sm:$0xf0]  ;;  %v4920_v3 = vld [vmem:[#allocation6 + $0x3f0] sm:$0xf0] }
 0x1e8   :  { %2901 = vmatpush.bf16.msrb.mxu1 %v4779_v23  ;;  %v5383_v23 = vld [vmem:[#allocation6 + $0x38c] sm:$0xf]  ;;  %2913 = vmatpush.bf16.msrb.mxu2 %v4591_v15  ;;  %v4430_v15 = vld [vmem:[#allocation6 + $0x8] sm:$0xf] }
 0x1e9   :  { %v4883_v21 = vor.u32 %v5383_v23, %v4880_v20  ;;  %v4431_v17 = vor.u32 %v5275_v11, %v4430_v15  ;;  %v5347_v20 = vld [vmem:[#allocation6 + $0x264] sm:$0xf0]  ;;  %v4600_v15 = vld [vmem:[#allocation6 + $0x170] sm:$0xf0] }
 0x1ea   :  { %2889 = vmatpush.bf16.msrb.mxu0 %v4459_v22  ;;  %2925 = vmatpush.bf16.msra.mxu3 %v4911_v8  ;;  %v4559_v22 = vor.u32 %v5307_v35, %v4558_v39  ;;  %v5355_v8 = vld [vmem:[#allocation6 + $0x2a4] sm:$0xf0]  ;;  %v5343_v39 = vld [vmem:[#allocation6 + $0x24c] sm:$0xf] }
 0x1eb   :  { %v4751_v12 = vor.u32 %v5355_v8, %v4750_v7  ;;  %v4598_v8 = vld [vmem:[#allocation6 + $0x150] sm:$0xf] }
 0x1ec   :  { %2902 = vmatpush.bf16.msrb.mxu1 %v4747_v31  ;;  %v4847_v31 = vor.u32 %v5379_v28, %v4846_v26  ;;  %2914 = vmatpush.bf16.msrb.mxu2 %v4559_v22  ;;  %v5339_v26 = vld [vmem:[#allocation6 + $0x224] sm:$0xf0]  ;;  %v5335_v28 = vld [vmem:[#allocation6 + $0x20c] sm:$0xf] }
 0x1ed   :  { %v4691_v30 = vor.u32 %v5335_v28, %v4688_v29  ;;  %v4854_v28 = vld [vmem:[#allocation6 + $0x350] sm:$0xf] }
 0x1ee   :  { %2890 = vmatpush.bf16.msrb.mxu0 %v4427_v36  ;;  %2926 = vmatpush.bf16.msra.mxu3 %v4879_v19  ;;  %v5295_v36 = vld [vmem:[#allocation6 + $0xcc] sm:$0xf]  ;;  %v4718_v19 = vld [vmem:[#allocation6 + $0x248] sm:$0xf]  ;;  %v5380_v29 = vld [vmem:[#allocation6 + $0x36c] sm:$0xf0] }
 0x1ef   :  { %v4531_v40 = vor.u32 %v5295_v36, %v4528_v38  ;;  %v4719_v35 = vor.u32 %v5347_v20, %v4718_v19  ;;  %v5384_v19 = vld [vmem:[#allocation6 + $0x394] sm:$0xf] }
 0x1f0   :  { %2903 = vmatpush.bf16.msrb.mxu1 %v4715_v50  ;;  %2915 = vmatpush.bf16.msrb.mxu2 %v4527_v37  ;;  %v5287_v50 = vld [vmem:[#allocation6 + $0x8c] sm:$0xf]  ;;  %v4888_v20 = vld [vmem:[#allocation6 + $0x3b0] sm:$0xf0] }
 0x1f1   :  { %v4499_v53 = vor.u32 %v5287_v50, %v4496_v52  ;;  %v4664_v50 = vld [vmem:[#allocation6 + $0x1f0] sm:$0xf0] }
 0x1f2   :  { %2939 = vmatpush.bf16.msra.mxu0 %v4659_v45  ;;  %2927 = vmatpush.bf16.msra.mxu3 %v4847_v31  ;;  %v4816_v45 = vld [vmem:[#allocation6 + $0x328] sm:$0xf0] }
 0x1f3   :  { %v4819_v46 = vor.u32 %v5367_v43, %v4816_v45  ;;  %v4662_v43 = vld [vmem:[#allocation6 + $0x1d0] sm:$0xf] }
 0x1f4   :  { %2904 = vmatpush.bf16.msrb.mxu1 %v4683_v62  ;;  %2916 = vmatpush.bf16.msrb.mxu2 %v4495_v51  ;;  %v4463_v62 = vor.u32 %v5283_v47, %v4462_v0  ;;  %v4918_v0 = vld [vmem:[#allocation6 + $0x3d0] sm:$0xf] }
 0x1f6   :  { %2940 = vmatpush.bf16.msra.mxu0 %v4627_v61  ;;  %2928 = vmatpush.bf16.msra.mxu3 %v4815_v44  ;;  %v4784_v61 = vld [vmem:[#allocation6 + $0x2e8] sm:$0xf0]  ;;  %v1704_v44 = vadd.f32 %v5690_v59, %v1011_v5  ;;  %v5324_v59 = vld [vmem:[#allocation6 + $0x1ac] sm:$0xf0]  ;;  %v5320_v5 = vld [vmem:[#allocation6 + $0x194] sm:$0xf] }
 0x1f7   :  { %v4787_v63 = vor.u32 %v5359_v56, %v4784_v61  ;;  %v4667_v56 = vor.u32 %v5328_v49, %v4664_v50  ;;  %v4502_v49 = vld [vmem:[#allocation6 + $0x90] sm:$0xf] }
 0x1f8   :  { %2953 = vmatpush.bf16.msra.mxu1 %v4915_v10  ;;  %v5351_v10 = vld [vmem:[#allocation6 + $0x28c] sm:$0xf]  ;;  %2917 = vmatpush.bf16.msrb.mxu2 %v4463_v62  ;;  %v1718_v52 = vadd.f32 %v5695_v2, %v1704_v44  ;;  %v5396_v2 = vld [vmem:[#allocation6 + $0x3ec] sm:$0xf0]  ;;  %v5392_v62 = vld [vmem:[#allocation6 + $0x3d4] sm:$0xf] }
 0x1f9   :  { %v4755_v14 = vor.u32 %v5351_v10, %v4752_v13  ;;  %v5316_v13 = vld [vmem:[#allocation6 + $0x16c] sm:$0xf0]  ;;  %v4919_v11 = vor.u32 %v5396_v2, %v4918_v0  ;;  %v5368_v44 = vld [vmem:[#allocation6 + $0x314] sm:$0xf] }
 0x1fa   :  { %2941 = vmatpush.bf16.msra.mxu0 %v4595_v16  ;;  %2929 = vmatpush.bf16.msra.mxu3 %v4783_v60  ;;  %v5271_v16 = vld [vmem:[#allocation6 + $0xc] sm:$0xf]  ;;  %v5292_v50 = vld [vmem:[#allocation6 + $0xac] sm:$0xf0]  ;;  %v4472_v0 = vld [vmem:[#allocation6 + $0x70] sm:$0xf0] }
 0x1fb   :  { %v4435_v23 = vor.u32 %v5271_v16, %v4432_v18  ;;  %v4923_v16 = vor.u32 %v5392_v62, %v4920_v3  ;;  %v4758_v2 = vld [vmem:[#allocation6 + $0x290] sm:$0xf]  ;;  %v5352_v3 = vld [vmem:[#allocation6 + $0x294] sm:$0xf] }
 0x1fc   :  { %2954 = vmatpush.bf16.msra.mxu1 %v4883_v21  ;;  %2918 = vmatpush.bf16.msrb.mxu2 %v4431_v17  ;;  %v4720_v21 = vld [vmem:[#allocation6 + $0x268] sm:$0xf0]  ;;  %v4886_v17 = vld [vmem:[#allocation6 + $0x390] sm:$0xf] }
 0x1fd   :  { %v4723_v24 = vor.u32 %v5343_v39, %v4720_v21  ;;  %v4599_v39 = vor.u32 %v5316_v13, %v4598_v8  ;;  %v4566_v21 = vld [vmem:[#allocation6 + $0x110] sm:$0xf]  ;;  %v4440_v13 = vld [vmem:[#allocation6 + $0x30] sm:$0xf0] }
 0x1fe   :  { %2942 = vmatpush.bf16.msra.mxu0 %v4563_v27  ;;  %2930 = vmatpush.bf16.msra.mxu3 %v4751_v12  ;;  %v4687_v27 = vor.u32 %v5339_v26, %v4686_v25  ;;  %v4568_v25 = vld [vmem:[#allocation6 + $0x130] sm:$0xf0]  ;;  %v5356_v62 = vld [vmem:[#allocation6 + $0x2ac] sm:$0xf0] }
 0x1ff   :  { %v4438_v8 = vld [vmem:[#allocation6 + $0x10] sm:$0xf] }
 0x200   :  { %2955 = vmatpush.bf16.msra.mxu1 %v4851_v32 }
 0x202   :  { %2943 = vmatpush.bf16.msra.mxu0 %v4531_v40  ;;  %2931 = vmatpush.bf16.msra.mxu3 %v4719_v35 }
 0x204   :  { %2956 = vmatpush.bf16.msra.mxu1 %v4819_v46 }
 0x206   :  { %2944 = vmatpush.bf16.msra.mxu0 %v4499_v53  ;;  %2932 = vmatpush.bf16.msra.mxu3 %v4687_v27  ;;  %v4891_v27 = vor.u32 %v5384_v19, %v4888_v20  ;;  %v4726_v19 = vld [vmem:[#allocation6 + $0x250] sm:$0xf] }
 0x207   :  { %v5348_v20 = vld [vmem:[#allocation6 + $0x26c] sm:$0xf0] }
 0x208   :  { %2957 = vmatpush.bf16.msra.mxu1 %v4787_v63  ;;  %v4632_v63 = vld [vmem:[#allocation6 + $0x1b0] sm:$0xf0] }
 0x20a   :  { %2945 = vmatpush.bf16.msra.mxu0 %v4467_v6 }
 0x20c   :  { %2958 = vmatpush.bf16.msra.mxu1 %v4755_v14  ;;  %v5312_v14 = vld [vmem:[#allocation6 + $0x154] sm:$0xf] }
 0x20d   :  { %v4603_v35 = vor.u32 %v5312_v14, %v4600_v15  ;;  %v4670_v14 = vld [vmem:[#allocation6 + $0x1d8] sm:$0xf] }
 0x20e   :  { %2946 = vmatpush.bf16.msra.mxu0 %v4435_v23  ;;  %v5388_v23 = vld [vmem:[#allocation6 + $0x3ac] sm:$0xf0]  ;;  %v5333_v15 = vld [vmem:[#allocation6 + $0x1f4] sm:$0xf0] }
 0x20f   :  { %v4887_v26 = vor.u32 %v5388_v23, %v4886_v17  ;;  %v5329_v17 = vld [vmem:[#allocation6 + $0x1dc] sm:$0xf] }
 0x210   :  { %2959 = vmatpush.bf16.msra.mxu1 %v4723_v24  ;;  %v5304_v24 = vld [vmem:[#allocation6 + $0x114] sm:$0xf]  ;;  %v4672_v23 = vld [vmem:[#allocation6 + $0x1f8] sm:$0xf0] }
 0x214   :  { %2960 = vmatpush.bf16.msra.mxu1 %v4691_v30  ;;  %v5376_v30 = vld [vmem:[#allocation6 + $0x354] sm:$0xf] }
 0x224   :  { %v1916_v22 = vpop.f32.mrf.mxu3  ;;  %v1939_v31 = vpop.f32.mrf.mxu0 }
 0x225   :  { %v1942_v34 = vpop.f32.mrf.mxu1  ;;  %v1945_v40 = vadd.f32 %v1916_v22, %v5693_v1  ;;  %v4663_v1 = vor.u32 %v5332_v48, %v4662_v43  ;;  %v1946_v60 = vadd.f32 %v1939_v31, %v1718_v52  ;;  %v5308_v22 = vld [vmem:[#allocation6 + $0x12c] sm:$0xf0]  ;;  %v4856_v31 = vld [vmem:[#allocation6 + $0x370] sm:$0xf0] }
 0x226   :  { %v1948_v61 = vadd.f32 %v1942_v34, %v5702_v9  ;;  %v4635_v9 = vor.u32 %v5320_v5, %v4632_v63  ;;  %v4534_v34 = vld [vmem:[#allocation6 + $0xd0] sm:$0xf]  ;;  %v4504_v52 = vld [vmem:[#allocation6 + $0xb0] sm:$0xf0] }
 0x227   :  { %v5372_v43 = vld [vmem:[#allocation6 + $0x32c] sm:$0xf0]  ;;  %v5280_v63 = vld [vmem:[#allocation6 + $0x54] sm:$0xf] }
 0x228   :  { %v5284_v5 = vld [vmem:[#allocation6 + $0x6c] sm:$0xf0] }
 0x22c   :  { %v1919_v32 = vpop.f32.mrf.mxu3 }
 0x22d   :  { %v1947_v41 = vadd.f32 %v1919_v32, %v5697_v4  ;;  %v4630_v4 = vld [vmem:[#allocation6 + $0x190] sm:$0xf]  ;;  %v4567_v32 = vor.u32 %v5308_v22, %v4566_v21 }
 0x22e   :  { %v4631_v7 = vor.u32 %v5324_v59, %v4630_v4  ;;  %v4792_v4 = vld [vmem:[#allocation6 + $0x2f0] sm:$0xf0]  ;;  %v4470_v59 = vld [vmem:[#allocation6 + $0x50] sm:$0xf] }
 0x234   :  { %v1975_v33 = vpop.f32.mrf.mxu2 }
 0x235   :  { %v2004_v45 = vadd.f32 %v1975_v33, %v1945_v40  ;;  %v4571_v33 = vor.u32 %v5304_v24, %v4568_v25  ;;  %v4855_v40 = vor.u32 %v5380_v29, %v4854_v28  ;;  %v4671_v24 = vor.u32 %v5333_v15, %v4670_v14  ;;  %v5321_v28 = vld [vmem:[#allocation6 + $0x19c] sm:$0xf]  ;;  %v4830_v14 = vld [vmem:[#allocation6 + $0x318] sm:$0xf] }
 0x236   :  { %v4675_v25 = vor.u32 %v5329_v17, %v4672_v23  ;;  %v4727_v29 = vor.u32 %v5348_v20, %v4726_v19  ;;  %v5373_v15 = vld [vmem:[#allocation6 + $0x334] sm:$0xf0] }
 0x237   :  { %v4510_v19 = vld [vmem:[#allocation6 + $0x98] sm:$0xf] }
 0x238   :  { %v5293_v20 = vld [vmem:[#allocation6 + $0xb4] sm:$0xf0] }
 0x23a   :  { %v1998_v36 = vpop.f32.mrf.mxu3 }
 0x23b   :  { %v2005_v47 = vadd.f32 %v1998_v36, %v1946_v60  ;;  %v5300_v36 = vld [vmem:[#allocation6 + $0xec] sm:$0xf0]  ;;  %v4503_v60 = vor.u32 %v5292_v50, %v4502_v49  ;;  %v5313_v49 = vld [vmem:[#allocation6 + $0x15c] sm:$0xf] }
 0x23c   :  { %v1978_v38 = vpop.f32.mrf.mxu2  ;;  %v4608_v50 = vld [vmem:[#allocation6 + $0x178] sm:$0xf0] }
 0x23d   :  { %v2006_v46 = vadd.f32 %v1978_v38, %v1947_v41  ;;  %v4536_v38 = vld [vmem:[#allocation6 + $0xf0] sm:$0xf0]  ;;  %v4859_v41 = vor.u32 %v5376_v30, %v4856_v31  ;;  %v4640_v31 = vld [vmem:[#allocation6 + $0x1b8] sm:$0xf0] }
 0x242   :  { %v2001_v55 = vpop.f32.mrf.mxu3 }
 0x243   :  { %v2007_v58 = vadd.f32 %v2001_v55, %v1948_v61  ;;  %v4790_v55 = vld [vmem:[#allocation6 + $0x2d0] sm:$0xf] }
 0x24e   :  { %v2034_v37 = vpop.f32.mrf.mxu0 }
 0x24f   :  { %v2063_v53 = vadd.f32 %v2034_v37, %v2004_v45  ;;  %v5296_v37 = vld [vmem:[#allocation6 + $0xd4] sm:$0xf] }
 0x250   :  { %v4824_v45 = vld [vmem:[#allocation6 + $0x330] sm:$0xf0]  ;;  %v4539_v48 = vor.u32 %v5296_v37, %v4536_v38  ;;  %v4926_v37 = vld [vmem:[#allocation6 + $0x3d8] sm:$0xf] }
 0x251   :  { %v5397_v38 = vld [vmem:[#allocation6 + $0x3f4] sm:$0xf0] }
 0x254   :  { %v2057_v42 = vpop.f32.mrf.mxu1 }
 0x255   :  { %v2064_v10 = vadd.f32 %v2057_v42, %v2005_v47  ;;  %v4822_v42 = vld [vmem:[#allocation6 + $0x310] sm:$0xf] }
 0x256   :  { %v2037_v51 = vpop.f32.mrf.mxu0 }
 0x257   :  { %v2065_v54 = vadd.f32 %v2037_v51, %v2006_v46  ;;  %v4535_v46 = vor.u32 %v5300_v36, %v4534_v34  ;;  %v5288_v51 = vld [vmem:[#allocation6 + $0x94] sm:$0xf] }
 0x258   :  { %v4507_v61 = vor.u32 %v5288_v51, %v4504_v52  ;;  %v5336_v34 = vld [vmem:[#allocation6 + $0x214] sm:$0xf]  ;;  %v4927_v51 = vor.u32 %v5397_v38, %v4926_v37  ;;  %v4766_v37 = vld [vmem:[#allocation6 + $0x298] sm:$0xf] }
 0x259   :  { %v5747_v57 = vpack.c.bf16 %v2065_v54, %v2063_v53  ;;  %v4823_v53 = vor.u32 %v5372_v43, %v4822_v42  ;;  %v4827_v54 = vor.u32 %v5368_v44, %v4824_v45  ;;  %v4696_v36 = vld [vmem:[#allocation6 + $0x230] sm:$0xf0]  ;;  %v4643_v43 = vor.u32 %v5321_v28, %v4640_v31  ;;  %v4606_v44 = vld [vmem:[#allocation6 + $0x158] sm:$0xf] }
 0x25a   :  { %v4511_v28 = vor.u32 %v5293_v20, %v4510_v19  ;;  %v5285_v31 = vld [vmem:[#allocation6 + $0x74] sm:$0xf0] }
 0x25b   :  { %2863 = vmatmul.bf16.vlgmr.msra.gmra.mxu2 %v5747_v57  ;;  %2891 = vmatmul.bf16.vlgmr.msrb.gmra.mxu0 %v5747_v57  ;;  %v5357_v38 = vld [vmem:[#allocation6 + $0x2b4] sm:$0xf0] }
 0x25c   :  { %2967 = vmatpush.bf16.msra.mxu2 %v4663_v1  ;;  %2995 = vmatpush.bf16.msrb.mxu0 %v4667_v56  ;;  %v2060_v6 = vpop.f32.mrf.mxu1  ;;  %v5364_v1 = vld [vmem:[#allocation6 + $0x2ec] sm:$0xf0]  ;;  %v5360_v56 = vld [vmem:[#allocation6 + $0x2d4] sm:$0xf] }
 0x25d   :  { %v2066_v12 = vadd.f32 %v2060_v6, %v2007_v58  ;;  %v4791_v47 = vor.u32 %v5364_v1, %v4790_v55  ;;  %v4795_v58 = vor.u32 %v5360_v56, %v4792_v4  ;;  %v4760_v6 = vld [vmem:[#allocation6 + $0x2b0] sm:$0xf0]  ;;  %v5385_v55 = vld [vmem:[#allocation6 + $0x39c] sm:$0xf]  ;;  %v4611_v4 = vor.u32 %v5313_v49, %v4608_v50 }
 0x25e   :  { %v4896_v1 = vld [vmem:[#allocation6 + $0x3b8] sm:$0xf0]  ;;  %v4767_v49 = vor.u32 %v5357_v38, %v4766_v37  ;;  %v5435_v38 = vld [vmem:[%s5907_s1] sm:$0xff] }
 0x25f   :  { %v5751_v18 = vpack.c.bf16 %v2066_v12, %v2064_v10  ;;  %v5276_v10 = vld [vmem:[#allocation6 + $0x2c] sm:$0xf0]  ;;  %v5272_v12 = vld [vmem:[#allocation6 + $0x14] sm:$0xf] }
 0x260   :  { %2968 = vmatpush.bf16.msra.mxu2 %v4631_v7  ;;  %2996 = vmatpush.bf16.msrb.mxu0 %v4635_v9  ;;  %v4471_v7 = vor.u32 %v5284_v5, %v4470_v59  ;;  %v4475_v9 = vor.u32 %v5280_v63, %v4472_v0  ;;  %v4439_v21 = vor.u32 %v5276_v10, %v4438_v8  ;;  %v5305_v59 = vld [vmem:[#allocation6 + $0x11c] sm:$0xf] }
 0x261   :  { %2877 = vmatmul.bf16.vlgmr.msrb.gmra.mxu3 %v5751_v18  ;;  %2905 = vmatmul.bf16.vlgmr.msrb.gmra.mxu1 %v5751_v18  ;;  %v4443_v22 = vor.u32 %v5272_v12, %v4440_v13  ;;  %v4576_v5 = vld [vmem:[#allocation6 + $0x138] sm:$0xf0]  ;;  %v4899_v0 = vor.u32 %v5385_v55, %v4896_v1 }
 0x262   :  { %2981 = vmatpush.bf16.msrb.mxu3 %v4919_v11  ;;  %3009 = vmatpush.bf16.msrb.mxu1 %v4923_v16  ;;  %v4759_v11 = vor.u32 %v5356_v62, %v4758_v2  ;;  %v4763_v16 = vor.u32 %v5352_v3, %v4760_v6  ;;  %v5377_v2 = vld [vmem:[#allocation6 + $0x35c] sm:$0xf]  ;;  %v4579_v6 = vor.u32 %v5305_v59, %v4576_v5 }
 0x263   :  { %v4864_v62 = vld [vmem:[#allocation6 + $0x378] sm:$0xf0] }
 0x264   :  { %2969 = vmatpush.bf16.msra.mxu2 %v4599_v39  ;;  %2997 = vmatpush.bf16.msrb.mxu0 %v4603_v35  ;;  %v5344_v39 = vld [vmem:[#allocation6 + $0x254] sm:$0xf]  ;;  %v5297_v8 = vld [vmem:[#allocation6 + $0xdc] sm:$0xf]  ;;  %v4867_v13 = vor.u32 %v5377_v2, %v4864_v62 }
 0x265   :  { %v4728_v35 = vld [vmem:[#allocation6 + $0x270] sm:$0xf0]  ;;  %v4544_v10 = vld [vmem:[#allocation6 + $0xf8] sm:$0xf0] }
 0x266   :  { %2982 = vmatpush.bf16.msrb.mxu3 %v4887_v26  ;;  %3010 = vmatpush.bf16.msrb.mxu1 %v4891_v27  ;;  %v4638_v26 = vld [vmem:[#allocation6 + $0x198] sm:$0xf]  ;;  %v4731_v30 = vor.u32 %v5344_v39, %v4728_v35  ;;  %v4547_v23 = vor.u32 %v5297_v8, %v4544_v10  ;;  %v5289_v39 = vld [vmem:[#allocation6 + $0x9c] sm:$0xf] }
 0x267   :  { %v5325_v27 = vld [vmem:[#allocation6 + $0x1b4] sm:$0xf0]  ;;  %v4512_v35 = vld [vmem:[#allocation6 + $0xb8] sm:$0xf0] }
 0x268   :  { %2970 = vmatpush.bf16.msra.mxu2 %v4567_v32  ;;  %2998 = vmatpush.bf16.msrb.mxu0 %v4571_v33  ;;  %v4694_v32 = vld [vmem:[#allocation6 + $0x210] sm:$0xf]  ;;  %v4639_v42 = vor.u32 %v5325_v27, %v4638_v26  ;;  %v5361_v26 = vld [vmem:[#allocation6 + $0x2dc] sm:$0xf] }
 0x269   :  { %v5340_v33 = vld [vmem:[#allocation6 + $0x22c] sm:$0xf0]  ;;  %v4800_v27 = vld [vmem:[#allocation6 + $0x2f8] sm:$0xf0] }
 0x26a   :  { %2983 = vmatpush.bf16.msrb.mxu3 %v4855_v40  ;;  %3011 = vmatpush.bf16.msrb.mxu1 %v4859_v41  ;;  %v5393_v40 = vld [vmem:[#allocation6 + $0x3dc] sm:$0xf]  ;;  %v4695_v45 = vor.u32 %v5340_v33, %v4694_v32 }
 0x26b   :  { %2919 = vmatmul.bf16.vlgmr.msrb.gmra.mxu2 %v5747_v57  ;;  %2947 = vmatmul.bf16.vlgmr.msra.gmra.mxu0 %v5747_v57  ;;  %v4928_v41 = vld [vmem:[#allocation6 + $0x3f8] sm:$0xf0] }
 0x26c   :  { %2971 = vmatpush.bf16.msra.mxu2 %v4535_v46  ;;  %2999 = vmatpush.bf16.msrb.mxu0 %v4539_v48  ;;  %v4699_v46 = vor.u32 %v5336_v34, %v4696_v36  ;;  %v5317_v48 = vld [vmem:[#allocation6 + $0x174] sm:$0xf0]  ;;  %v4931_v52 = vor.u32 %v5393_v40, %v4928_v41  ;;  %v5281_v32 = vld [vmem:[#allocation6 + $0x5c] sm:$0xf]  ;;  %v4803_v36 = vor.u32 %v5361_v26, %v4800_v27 }
 0x26d   :  { %v4607_v56 = vor.u32 %v5317_v48, %v4606_v44  ;;  %v4480_v33 = vld [vmem:[#allocation6 + $0x78] sm:$0xf0]  ;;  %v4446_v44 = vld [vmem:[#allocation6 + $0x18] sm:$0xf] }
 0x26e   :  { %2984 = vmatpush.bf16.msrb.mxu3 %v4823_v53  ;;  %3012 = vmatpush.bf16.msrb.mxu1 %v4827_v54  ;;  %v4894_v53 = vld [vmem:[#allocation6 + $0x398] sm:$0xf]  ;;  %v5353_v40 = vld [vmem:[#allocation6 + $0x29c] sm:$0xf] }
 0x26f   :  { %v5389_v54 = vld [vmem:[#allocation6 + $0x3b4] sm:$0xf0]  ;;  %v4768_v41 = vld [vmem:[#allocation6 + $0x2b8] sm:$0xf0] }
 0x270   :  { %2972 = vmatpush.bf16.msra.mxu2 %v4503_v60  ;;  %3000 = vmatpush.bf16.msrb.mxu0 %v4507_v61  ;;  %v4574_v60 = vld [vmem:[#allocation6 + $0x118] sm:$0xf]  ;;  %v4895_v63 = vor.u32 %v5389_v54, %v4894_v53  ;;  %v4448_v48 = vld [vmem:[#allocation6 + $0x38] sm:$0xf0]  ;;  %v4771_v50 = vor.u32 %v5353_v40, %v4768_v41  ;;  %v5436_v40 = vld [vmem:[%s5907_s1 + $0x8] sm:$0xff] }
 0x271   :  { %2933 = vmatmul.bf16.vlgmr.msra.gmra.mxu3 %v5751_v18  ;;  %2961 = vmatmul.bf16.vlgmr.msra.gmra.mxu1 %v5751_v18  ;;  %v5309_v61 = vld [vmem:[#allocation6 + $0x134] sm:$0xf0]  ;;  %v5345_v53 = vld [vmem:[#allocation6 + $0x25c] sm:$0xf] }
 0x272   :  { %2985 = vmatpush.bf16.msrb.mxu3 %v4791_v47  ;;  %3013 = vmatpush.bf16.msrb.mxu1 %v4795_v58  ;;  %v4862_v47 = vld [vmem:[#allocation6 + $0x358] sm:$0xf]  ;;  %v4575_v3 = vor.u32 %v5309_v61, %v4574_v60  ;;  %v4736_v54 = vld [vmem:[#allocation6 + $0x278] sm:$0xf0] }
 0x273   :  { %v5381_v58 = vld [vmem:[#allocation6 + $0x374] sm:$0xf0]  ;;  %v5337_v59 = vld [vmem:[#allocation6 + $0x21c] sm:$0xf] }
 0x274   :  { %2973 = vmatpush.bf16.msra.mxu2 %v4471_v7  ;;  %3001 = vmatpush.bf16.msrb.mxu0 %v4475_v9  ;;  %v4542_v7 = vld [vmem:[#allocation6 + $0xd8] sm:$0xf]  ;;  %v4863_v12 = vor.u32 %v5381_v58, %v4862_v47  ;;  %v4704_v5 = vld [vmem:[#allocation6 + $0x238] sm:$0xf0]  ;;  %v5770_v47 = vld [vmem:[%s5913_s7] sm:$0xff] }
 0x275   :  { %v5301_v9 = vld [vmem:[#allocation6 + $0xf4] sm:$0xf0]  ;;  %v2200_v2 = vperm.slane %v5770_v47, 1 }
 0x276   :  { %2986 = vmatpush.bf16.msrb.mxu3 %v4759_v11  ;;  %3014 = vmatpush.bf16.msrb.mxu1 %v4763_v16  ;;  %v5369_v11 = vld [vmem:[#allocation6 + $0x31c] sm:$0xf]  ;;  %v4543_v17 = vor.u32 %v5301_v9, %v4542_v7  ;;  %v4702_v60 = vld [vmem:[#allocation6 + $0x218] sm:$0xf]  ;;  %v2199_v7 = vperm.slane %v5770_v47, 0 }
 0x277   :  { %v4832_v16 = vld [vmem:[#allocation6 + $0x338] sm:$0xf0]  ;;  %v5341_v61 = vld [vmem:[#allocation6 + $0x234] sm:$0xf0] }
 0x278   :  { %2974 = vmatpush.bf16.msra.mxu2 %v4439_v21  ;;  %3002 = vmatpush.bf16.msrb.mxu0 %v4443_v22  ;;  %v4831_v21 = vor.u32 %v5373_v15, %v4830_v14  ;;  %v4835_v22 = vor.u32 %v5369_v11, %v4832_v16 }
 0x27a   :  { %2987 = vmatpush.bf16.msrb.mxu3 %v4727_v29  ;;  %3015 = vmatpush.bf16.msrb.mxu1 %v4731_v30  ;;  %v4515_v29 = vor.u32 %v5289_v39, %v4512_v35  ;;  %v4478_v30 = vld [vmem:[#allocation6 + $0x58] sm:$0xf] }
 0x27b   :  { %2975 = vmatmul.bf16.vlgmr.msra.gmra.mxu2 %v5747_v57  ;;  %3003 = vmatmul.bf16.vlgmr.msrb.gmra.mxu0 %v5747_v57 }
 0x27c   :  { %3023 = vmatpush.bf16.msrb.mxu2 %v4671_v24  ;;  %3051 = vmatpush.bf16.msra.mxu0 %v4675_v25  ;;  %v4798_v24 = vld [vmem:[#allocation6 + $0x2d8] sm:$0xf] }
 0x27d   :  { %v5365_v25 = vld [vmem:[#allocation6 + $0x2f4] sm:$0xf0] }
 0x27e   :  { %2988 = vmatpush.bf16.msrb.mxu3 %v4695_v45  ;;  %3016 = vmatpush.bf16.msrb.mxu1 %v4699_v46  ;;  %v4799_v34 = vor.u32 %v5365_v25, %v4798_v24  ;;  %v5277_v45 = vld [vmem:[#allocation6 + $0x34] sm:$0xf0]  ;;  %v5273_v46 = vld [vmem:[#allocation6 + $0x1c] sm:$0xf]  ;;  %v2201_v24 = vperm.slane %v5770_v47, 2 }
 0x27f   :  { %v4447_v55 = vor.u32 %v5277_v45, %v4446_v44  ;;  %v4451_v1 = vor.u32 %v5273_v46, %v4448_v48 }
 0x280   :  { %3024 = vmatpush.bf16.msrb.mxu2 %v4639_v42  ;;  %3052 = vmatpush.bf16.msra.mxu0 %v4643_v43  ;;  %v4479_v42 = vor.u32 %v5285_v31, %v4478_v30  ;;  %v4483_v43 = vor.u32 %v5281_v32, %v4480_v33 }
 0x281   :  { %2989 = vmatmul.bf16.vlgmr.msrb.gmra.mxu3 %v5751_v18  ;;  %3017 = vmatmul.bf16.vlgmr.msrb.gmra.mxu1 %v5751_v18 }
 0x282   :  { %3037 = vmatpush.bf16.msra.mxu3 %v4927_v51  ;;  %3065 = vmatpush.bf16.msra.mxu1 %v4931_v52  ;;  %v4734_v51 = vld [vmem:[#allocation6 + $0x258] sm:$0xf] }
 0x283   :  { %v5349_v52 = vld [vmem:[#allocation6 + $0x274] sm:$0xf0] }
 0x284   :  { %3025 = vmatpush.bf16.msrb.mxu2 %v4607_v56  ;;  %3053 = vmatpush.bf16.msra.mxu0 %v4611_v4  ;;  %v4735_v56 = vor.u32 %v5349_v52, %v4734_v51  ;;  %v4739_v4 = vor.u32 %v5345_v53, %v4736_v54  ;;  %v2203_v51 = vperm.slane %v5770_v47, 4 }
 0x286   :  { %3038 = vmatpush.bf16.msra.mxu3 %v4895_v63  ;;  %3066 = vmatpush.bf16.msra.mxu1 %v4899_v0  ;;  %v4703_v63 = vor.u32 %v5341_v61, %v4702_v60  ;;  %v4707_v0 = vor.u32 %v5337_v59, %v4704_v5  ;;  %v5438_v61 = vld [vmem:[%s5907_s1 + $0x18] sm:$0xff] }
 0x288   :  { %3026 = vmatpush.bf16.msrb.mxu2 %v4575_v3  ;;  %3054 = vmatpush.bf16.msra.mxu0 %v4579_v6 }
 0x28a   :  { %3039 = vmatpush.bf16.msra.mxu3 %v4863_v12  ;;  %3067 = vmatpush.bf16.msra.mxu1 %v4867_v13 }
 0x28c   :  { %3027 = vmatpush.bf16.msrb.mxu2 %v4543_v17  ;;  %3055 = vmatpush.bf16.msra.mxu0 %v4547_v23 }
 0x28e   :  { %3040 = vmatpush.bf16.msra.mxu3 %v4831_v21  ;;  %3068 = vmatpush.bf16.msra.mxu1 %v4835_v22 }
 0x290   :  { %3028 = vmatpush.bf16.msrb.mxu2 %v4511_v28  ;;  %3056 = vmatpush.bf16.msra.mxu0 %v4515_v29  ;;  %v2202_v28 = vperm.slane %v5770_v47, 3 }
 0x292   :  { %3041 = vmatpush.bf16.msra.mxu3 %v4799_v34  ;;  %3069 = vmatpush.bf16.msra.mxu1 %v4803_v36 }
 0x294   :  { %3029 = vmatpush.bf16.msrb.mxu2 %v4479_v42  ;;  %3057 = vmatpush.bf16.msra.mxu0 %v4483_v43  ;;  %v2204_v43 = vperm.slane %v5770_v47, 5 }
 0x296   :  { %3042 = vmatpush.bf16.msra.mxu3 %v4767_v49  ;;  %3070 = vmatpush.bf16.msra.mxu1 %v4771_v50 }
 0x298   :  { %3030 = vmatpush.bf16.msrb.mxu2 %v4447_v55  ;;  %3058 = vmatpush.bf16.msra.mxu0 %v4451_v1  ;;  %v5437_v55 = vld [vmem:[%s5907_s1 + $0x10] sm:$0xff] }
 0x29a   :  { %3043 = vmatpush.bf16.msra.mxu3 %v4735_v56  ;;  %3071 = vmatpush.bf16.msra.mxu1 %v4739_v4 }
 0x29b   :  { %3031 = vmatmul.bf16.vlgmr.msrb.gmra.mxu2 %v5747_v57  ;;  %3059 = vmatmul.bf16.vlgmr.msra.gmra.mxu0 %v5747_v57 }
 0x29e   :  { %3044 = vmatpush.bf16.msra.mxu3 %v4703_v63  ;;  %3072 = vmatpush.bf16.msra.mxu1 %v4707_v0  ;;  %v2206_v0 = vperm.slane %v5770_v47, 7 }
 0x2a1   :  { %3045 = vmatmul.bf16.vlgmr.msra.gmra.mxu3 %v5751_v18  ;;  %3073 = vmatmul.bf16.vlgmr.msra.gmra.mxu1 %v5751_v18 }
 0x2d8   :  { %v2892_v58 = vpop.f32.mrf.mxu0 }
 0x2d9   :  { %v2893_v62 = vadd.f32 %v2892_v58, %v2200_v2 }
 0x2de   :  { %v2864_v3 = vpop.f32.mrf.mxu2  ;;  %v2906_v6 = vpop.f32.mrf.mxu1 }
 0x2df   :  { %v5774_v57 = vadd.f32 %v2906_v6, %v2893_v62  ;;  %v2865_v8 = vadd.f32 %v2864_v3, %v2199_v7 }
 0x2e0   :  { %v2894_v9 = vpop.f32.mrf.mxu0 }
 0x2e1   :  { %v2895_v12 = vadd.f32 %v2894_v9, %v2200_v2  ;;  %v2205_v9 = vperm.slane %v5770_v47, 6  ;;  %v5440_v47 = vld [vmem:[%s5907_s1 + $0x28] sm:$0xff] }
 0x2e4   :  { %v2878_v10 = vpop.f32.mrf.mxu3 }
 0x2e5   :  { %v5776_v18 = vadd.f32 %v2878_v10, %v2865_v8 }
 0x2e6   :  { %v2866_v13 = vpop.f32.mrf.mxu2  ;;  %v2908_v14 = vpop.f32.mrf.mxu1 }
 0x2e7   :  { %v5778_v15 = vadd.f32 %v2908_v14, %v2895_v12  ;;  %v2867_v16 = vadd.f32 %v2866_v13, %v2199_v7  ;;  %v5439_v13 = vld [vmem:[%s5907_s1 + $0x20] sm:$0xff] }
 0x2e8   :  { %v2948_v11 = vpop.f32.mrf.mxu0 }
 0x2e9   :  { %v2949_v36 = vadd.f32 %v2948_v11, %v2202_v28 }
 0x2ec   :  { %v2880_v17 = vpop.f32.mrf.mxu3 }
 0x2ed   :  { %v5780_v23 = vadd.f32 %v2880_v17, %v2867_v16  ;;  %v5413_v17 = vld [vmem:[%s5914_s8 + $0x78] sm:$0xff] }
 0x2ee   :  { %v2920_v19 = vpop.f32.mrf.mxu2  ;;  %v2962_v20 = vpop.f32.mrf.mxu1 }
 0x2ef   :  { %v2921_v29 = vadd.f32 %v2920_v19, %v2201_v24  ;;  %v2963_v41 = vadd.f32 %v2962_v20, %v2949_v36  ;;  %v5405_v19 = vld [vmem:[%s5914_s8 + $0x38] sm:$0xff]  ;;  %v5412_v20 = vld [vmem:[%s5914_s8 + $0x70] sm:$0xff] }
 0x2f0   :  { %v2950_v39 = vpop.f32.mrf.mxu0  ;;  %v5421_v36 = vld [vmem:[%s5916_s10 + $0x38] sm:$0xff] }
 0x2f1   :  { %v2951_v31 = vadd.f32 %v2950_v39, %v2202_v28  ;;  %v5404_v39 = vld [vmem:[%s5914_s8 + $0x30] sm:$0xff] }
 0x2f4   :  { %v2934_v35 = vpop.f32.mrf.mxu3 }
 0x2f5   :  { %v2935_v32 = vadd.f32 %v2934_v35, %v2921_v29  ;;  %v5411_v35 = vld [vmem:[%s5914_s8 + $0x68] sm:$0xff] }
 0x2f6   :  { %v2922_v21 = vpop.f32.mrf.mxu2  ;;  %v2964_v22 = vpop.f32.mrf.mxu1  ;;  %v5407_v29 = vld [vmem:[%s5914_s8 + $0x48] sm:$0xff] }
 0x2f7   :  { %v2923_v26 = vadd.f32 %v2922_v21, %v2201_v24  ;;  %v2965_v37 = vadd.f32 %v2964_v22, %v2951_v31  ;;  %v5403_v21 = vld [vmem:[%s5914_s8 + $0x28] sm:$0xff]  ;;  %v5410_v22 = vld [vmem:[%s5914_s8 + $0x60] sm:$0xff]  ;;  %v5409_v24 = vld [vmem:[%s5914_s8 + $0x58] sm:$0xff] }
 0x2f8   :  { %v3004_v25 = vpop.f32.mrf.mxu0  ;;  %v5406_v31 = vld [vmem:[%s5914_s8 + $0x40] sm:$0xff] }
 0x2f9   :  { %v3005_v48 = vadd.f32 %v3004_v25, %v2204_v43  ;;  %v5402_v25 = vld [vmem:[%s5914_s8 + $0x20] sm:$0xff] }
 0x2fc   :  { %v2936_v27 = vpop.f32.mrf.mxu3 }
 0x2fd   :  { %v2937_v30 = vadd.f32 %v2936_v27, %v2923_v26  ;;  %v5408_v26 = vld [vmem:[%s5914_s8 + $0x50] sm:$0xff]  ;;  %v5401_v27 = vld [vmem:[%s5914_s8 + $0x18] sm:$0xff] }
 0x2fe   :  { %v2976_v33 = vpop.f32.mrf.mxu2  ;;  %v3018_v34 = vpop.f32.mrf.mxu1 }
 0x2ff   :  { %3093 = vmatpush.msra.mxu2 %v2937_v30  ;;  %5424 = vmatpush.msrb.mxu3 %v2937_v30  ;;  %v3019_v52 = vadd.f32 %v3018_v34, %v3005_v48  ;;  %v2977_v1 = vadd.f32 %v2976_v33, %v2203_v51  ;;  %v5400_v30 = vld [vmem:[%s5914_s8 + $0x10] sm:$0xff]  ;;  %v5398_v34 = vld [vmem:[%s5914_s8] sm:$0xff] }
 0x300   :  { %v3006_v42 = vpop.f32.mrf.mxu0 }
 0x301   :  { %3094 = vmatpush.msra.mxu2 %v2935_v32  ;;  %5425 = vmatpush.msrb.mxu3 %v2935_v32  ;;  %v3007_v45 = vadd.f32 %v3006_v42, %v2204_v43  ;;  %v5399_v32 = vld [vmem:[%s5914_s8 + $0x8] sm:$0xff] }
 0x302   :  { %4932 = vmatmul.msk.f32.vlgmr.msra.gmra.mxu2 %vm1892_vm0, %v5435_v38  ;;  %4933 = vmatmul.msk.f32.vlgmr.msrb.gmra.mxu3 %vm1892_vm0, %v5436_v40 }
 0x303   :  { %3116 = vmatpush.msra.mxu3 %v2965_v37  ;;  %v5420_v37 = vld [vmem:[%s5916_s10 + $0x30] sm:$0xff] }
 0x304   :  { %v2990_v44 = vpop.f32.mrf.mxu3 }
 0x305   :  { %3117 = vmatpush.msra.mxu3 %v2963_v41  ;;  %v2991_v4 = vadd.f32 %v2990_v44, %v2977_v1 }
 0x306   :  { %v3020_v46 = vpop.f32.mrf.mxu1  ;;  %v2978_v50 = vpop.f32.mrf.mxu2 }
 0x307   :  { %v3021_v49 = vadd.f32 %v3020_v46, %v3007_v45  ;;  %v2979_v53 = vadd.f32 %v2978_v50, %v2203_v51 }
 0x309   :  { %3166 = vmatpush.msrb.mxu1 %v3021_v49 }
 0x30a   :  { %4934 = vmatmul.msk.f32.vlgmr.msra.gmra.mxu3 %vm1892_vm0, %v5435_v38 }
 0x30b   :  { %3167 = vmatpush.msrb.mxu1 %v3019_v52 }
 0x30c   :  { %v2992_v54 = vpop.f32.mrf.mxu3  ;;  %4938 = vmatmul.msk.f32.vlgmr.msrb.gmra.mxu1 %vm1892_vm0, %v5437_v55 }
 0x30d   :  { %v2993_v56 = vadd.f32 %v2992_v54, %v2979_v53  ;;  %3377 = vmatpush.bf16.msra.mxu1 %v5413_v17 }
 0x30f   :  { %3143 = vmatpush.msrb.mxu0 %v2993_v56 }
 0x311   :  { %3144 = vmatpush.msrb.mxu0 %v2991_v4  ;;  %3378 = vmatpush.bf16.msra.mxu1 %v5412_v20 }
 0x312   :  { %4935 = vmatmul.msk.f32.gmra.mxu3 %vm1892_vm0, %v5436_v40  ;;  %4936 = vmatmul.msk.f32.vlgmr.msrb.gmra.mxu0 %vm1892_vm0, %v5437_v55 }
 0x313   :  { %3363 = vmatpush.bf16.msra.mxu0 %v5405_v19 }
 0x314   :  { %4939 = vmatmul.msk.f32.gmra.mxu1 %vm1892_vm0, %v5438_v61 }
 0x315   :  { %3379 = vmatpush.bf16.msra.mxu1 %v5411_v35 }
 0x317   :  { %3364 = vmatpush.bf16.msra.mxu0 %v5404_v39 }
 0x318   :  { %v3060_v60 = vpop.f32.mrf.mxu0 }
 0x319   :  { %v3061_v3 = vadd.f32 %v3060_v60, %v2206_v0  ;;  %3380 = vmatpush.bf16.msra.mxu1 %v5410_v22 }
 0x31a   :  { %4937 = vmatmul.msk.f32.gmra.mxu0 %vm1892_vm0, %v5438_v61 }
 0x31b   :  { %3365 = vmatpush.bf16.msra.mxu0 %v5403_v21 }
 0x31d   :  { %3381 = vmatpush.bf16.msra.mxu1 %v5409_v24 }
 0x31e   :  { %v3032_v59 = vpop.f32.mrf.mxu2  ;;  %v3074_v5 = vpop.f32.mrf.mxu1 }
 0x31f   :  { %v3075_v8 = vadd.f32 %v3074_v5, %v3061_v3  ;;  %v3033_v14 = vadd.f32 %v3032_v59, %v2205_v9  ;;  %3366 = vmatpush.bf16.msra.mxu0 %v5402_v25  ;;  %v5419_v5 = vld [vmem:[%s5916_s10 + $0x28] sm:$0xff]  ;;  %v5433_v3 = vld [vmem:[%s5915_s9] ss:$0 sm:$0xff] }
 0x320   :  { %v3062_v63 = vpop.f32.mrf.mxu0 }
 0x321   :  { %v3063_v2 = vadd.f32 %v3062_v63, %v2206_v0  ;;  %3382 = vmatpush.bf16.msra.mxu1 %v5408_v26  ;;  %v5416_v63 = vld [vmem:[%s5916_s10 + $0x10] sm:$0xff]  ;;  %v5415_v0 = vld [vmem:[%s5916_s10 + $0x8] sm:$0xff] }
 0x323   :  { %3367 = vmatpush.bf16.msra.mxu0 %v5401_v27 }
 0x324   :  { %v3046_v58 = vpop.f32.mrf.mxu3 }
 0x325   :  { %v3047_v16 = vadd.f32 %v3046_v58, %v3033_v14  ;;  %3383 = vmatpush.bf16.msra.mxu1 %v5407_v29  ;;  %v5414_v58 = vld [vmem:[%s5916_s10] sm:$0xff] }
 0x326   :  { %v3076_v62 = vpop.f32.mrf.mxu1  ;;  %v3034_v7 = vpop.f32.mrf.mxu2 }
 0x327   :  { %v3077_v6 = vadd.f32 %v3076_v62, %v3063_v2  ;;  %v3035_v10 = vadd.f32 %v3034_v7, %v2205_v9  ;;  %3368 = vmatpush.bf16.msra.mxu0 %v5400_v30 }
 0x329   :  { %3216 = vmatpush.msrb.mxu3 %v3077_v6  ;;  %3384 = vmatpush.bf16.msra.mxu1 %v5406_v31 }
 0x32b   :  { %3217 = vmatpush.msrb.mxu3 %v3075_v8  ;;  %3369 = vmatpush.bf16.msra.mxu0 %v5399_v32 }
 0x32c   :  { %v3048_v12 = vpop.f32.mrf.mxu3  ;;  %4942 = vmatmul.msk.f32.vlgmr.msrb.gmra.mxu3 %vm1892_vm0, %v5439_v13 }
 0x32d   :  { %v3049_v11 = vadd.f32 %v3048_v12, %v3035_v10 }
 0x32f   :  { %3193 = vmatpush.msrb.mxu2 %v3049_v11  ;;  %3370 = vmatpush.bf16.msra.mxu0 %v5398_v34 }
 0x331   :  { %3194 = vmatpush.msrb.mxu2 %v3047_v16  ;;  %v5434_v16 = vld [vmem:[%s5917_s11] ss:$0 sm:$0xff] }
 0x332   :  { %4940 = vmatmul.msk.f32.vlgmr.msrb.gmra.mxu2 %vm1892_vm0, %v5439_v13 }
 0x333   :  { %3462 = vmatpush.bf16.msra.mxu2 %v5421_v36 }
 0x334   :  { %4943 = vmatmul.msk.f32.gmra.mxu3 %vm1892_vm0, %v5440_v47 }
 0x337   :  { %3463 = vmatpush.bf16.msra.mxu2 %v5420_v37 }
 0x33a   :  { %4941 = vmatmul.msk.f32.gmra.mxu2 %vm1892_vm0, %v5440_v47 }
 0x33b   :  { %3464 = vmatpush.bf16.msra.mxu2 %v5419_v5 }
 0x385   :  { %v3099_v28 = vpop.f32.mrf.mxu3  ;;  %v3096_v41 = vpop.f32.mrf.mxu2 }
 0x386   :  { %v3125_v55 = vadd.f32 %v3096_v41, %v5776_v18  ;;  %v3127_v1 = vadd.f32 %v3099_v28, %v5780_v23  ;;  %v5418_v18 = vld [vmem:[%s5916_s10 + $0x20] sm:$0xff]  ;;  %v5417_v23 = vld [vmem:[%s5916_s10 + $0x18] sm:$0xff] }
 0x387   :  { %3465 = vmatpush.bf16.msra.mxu2 %v5418_v18 }
 0x389   :  { %v3169_v40 = vpop.f32.mrf.mxu1 }
 0x38b   :  { %3466 = vmatpush.bf16.msra.mxu2 %v5417_v23 }
 0x38d   :  { %v3119_v33 = vpop.f32.mrf.mxu3 }
 0x38e   :  { %v3126_v44 = vadd.f32 %v3119_v33, %v5774_v57 }
 0x38f   :  { %v3146_v42 = vpop.f32.mrf.mxu0  ;;  %3467 = vmatpush.bf16.msra.mxu2 %v5416_v63 }
 0x390   :  { %v3176_v49 = vadd.f32 %v3169_v40, %v3126_v44  ;;  %v3175_v4 = vadd.f32 %v3146_v42, %v3125_v55 }
 0x391   :  { %v3172_v46 = vpop.f32.mrf.mxu1 }
 0x393   :  { %3468 = vmatpush.bf16.msra.mxu2 %v5415_v0 }
 0x395   :  { %v3122_v38 = vpop.f32.mrf.mxu3 }
 0x396   :  { %v3128_v45 = vadd.f32 %v3122_v38, %v5778_v15 }
 0x397   :  { %v3149_v54 = vpop.f32.mrf.mxu0  ;;  %3469 = vmatpush.bf16.msra.mxu2 %v5414_v58 }
 0x398   :  { %v3178_v50 = vadd.f32 %v3172_v46, %v3128_v45  ;;  %v3177_v60 = vadd.f32 %v3149_v54, %v3127_v1 }
 0x3af   :  { %v3219_v43 = vpop.f32.mrf.mxu3 }
 0x3b0   :  { %v3226_v52 = vadd.f32 %v3219_v43, %v3176_v49 }
 0x3b5   :  { %v3196_v48 = vpop.f32.mrf.mxu2 }
 0x3b6   :  { %v3225_v57 = vadd.f32 %v3196_v48, %v3175_v4 }
 0x3b7   :  { %v3222_v51 = vpop.f32.mrf.mxu3 }
 0x3b8   :  { %v3228_v53 = vadd.f32 %v3222_v51, %v3178_v50 }
 0x3ba   :  { %v3230_v56 = vpack.c.bf16 %v3228_v53, %v3226_v52 }
 0x3bc   :  { %3385 = vmatmul.bf16.vlgmr.msra.gmra.mxu1 %v3230_v56 }
 0x3bd   :  { %v3199_v61 = vpop.f32.mrf.mxu2 }
 0x3be   :  { %v3227_v59 = vadd.f32 %v3199_v61, %v3177_v60 }
 0x3c0   :  { %v3229_v15 = vpack.c.bf16 %v3227_v59, %v3225_v57 }
 0x3c2   :  { %3371 = vmatmul.bf16.vlgmr.msra.gmra.mxu0 %v3229_v15 }
 0x439   :  { %v3386_v2 = vpop.f32.mrf.mxu1 }
 0x43f   :  { %v3372_v62 = vpop.f32.mrf.mxu0 }
 0x440   :  { %v3373_v6 = vadd.f32 %v5433_v3, %v3372_v62 }
 0x441   :  { %v3388_v10 = vpop.f32.mrf.mxu1 }
 0x442   :  { %v3387_v9 = vadd.f32 %v3386_v2, %v3373_v6 }
 0x444   :  { %v3391_v13 = vmax.f32 %v3387_v9, 0.0 }
 0x447   :  { %v3374_v7 = vpop.f32.mrf.mxu0 }
 0x448   :  { %v3375_v8 = vadd.f32 %v5433_v3, %v3374_v7 }
 0x44a   :  { %v3389_v12 = vadd.f32 %v3388_v10, %v3375_v8 }
 0x44c   :  { %v3392_v14 = vmax.f32 %v3389_v12, 0.0 }
 0x44e   :  { %v3393_v11 = vpack.c.bf16 %v3392_v14, %v3391_v13 }
 0x450   :  { %3470 = vmatmul.bf16.vlgmr.msra.gmra.mxu2 %v3393_v11 }
 0x4d3   :  { %v3471_v47 = vpop.f32.mrf.mxu2 }
 0x4d4   :  { %v3472_v17 = vadd.f32 %v5434_v16, %v3471_v47 }
 0x4d6   :  { %3476 = vst [vmem:[%s5918_s12] sm:$0xff] %v3472_v17 }
 0x4db   :  { %v3473_v19 = vpop.f32.mrf.mxu2 }
 0x4dc   :  { %v3474_v20 = vadd.f32 %v5434_v16, %v3473_v19 }
 0x4de   :  { %3477 = vst [vmem:[%s5918_s12 + $0x8] sm:$0xff] %v3474_v20 }
 0x4df   :  { %3482 = vsyncpa [#allocation3], 1 }
 0x4e0   :  { %3483 = vsyncpa [#allocation5], 1 }

</bundles_post_ra>
